<compile_context>
chip_gen: v7x
topology: tpu7x:2x2x1
jax: 0.10.0
libtpu: 0.0.40
codegen_flags: <defaults>
</compile_context>

<pallas_src>
import functools

import jax
import jax.numpy as jnp
from jax.experimental import pallas as pl
from jax.experimental.pallas import tpu as pltpu

EPS = 1e-5  # nn.LayerNorm default eps


def _layernorm(x, gamma, beta):
    mean = jnp.mean(x, axis=-1, keepdims=True)
    var = jnp.mean((x - mean) ** 2, axis=-1, keepdims=True)
    return (x - mean) * jax.lax.rsqrt(var + EPS) * gamma + beta


# -----------------------------------------------------------------------------
# Fused kernel: Bt batch elements per grid step.
# -----------------------------------------------------------------------------
def nsa_block_kernel(x_ref, mask_ref, vecs_ref, wqkv_ref, bqkv_ref, wo_ref,
                     w1_ref, b1_ref, w2_ref, o_ref, *, num_heads, batch_tile):
    Bt = batch_tile
    _, S, D = x_ref.shape
    hd = D // num_heads
    scale = 1.0 / (hd ** 0.5)
    R = Bt * S

    # Fold batch into rows for the row-parallel matmuls (LN / QKV / MLP).
    # Leading-dim merge only (last dim untouched) -> no lane relayout.
    x = x_ref[...].reshape(R, D)                       # (R, D) f32

    g1, be1 = vecs_ref[0], vecs_ref[1]
    g2, be2 = vecs_ref[2], vecs_ref[3]
    bo, b2 = vecs_ref[4], vecs_ref[5]
    mask_bias = mask_ref[...]                          # (S, S) f32, constant input

    # ---------------- attention sub-block: y = x + Attn(LN1(x)) -------------
    n1 = _layernorm(x, g1, be1)                        # f32
    qkv = jnp.dot(n1.astype(jnp.bfloat16), wqkv_ref[...],
                  preferred_element_type=jnp.float32) + bqkv_ref[0]   # (R, 3D) f32
    qkv_bf = qkv.astype(jnp.bfloat16)                  # bf16 MXU operands for attention

    # TODO(synk): static (Bt x H) unroll is fine at H=4/hd=8; for production
    # H/hd use a fori_loop + VMEM accumulator and lane-aligned head slices.
    attn_rows = []
    for b in range(Bt):
        r0 = b * S
        acc = jnp.zeros((S, D), jnp.float32)
        for h in range(num_heads):
            qh = qkv_bf[r0:r0 + S, h * hd:(h + 1) * hd]
            kh = qkv_bf[r0:r0 + S, D + h * hd:D + (h + 1) * hd]
            vh = qkv_bf[r0:r0 + S, 2 * D + h * hd:2 * D + (h + 1) * hd]
            # QK^T: contract last dims directly (no materialized K transpose),
            # bf16 operands, f32 accumulation.
            s = jax.lax.dot_general(qh, kh, (((1,), (1,)), ((), ())),
                                    preferred_element_type=jnp.float32)
            s = s * scale + mask_bias
            m = jnp.max(s, axis=-1, keepdims=True)
            e = jnp.exp(s - m)
            l = jnp.sum(e, axis=-1, keepdims=True)
            # approx reciprocal on the EUP slot; ~1e-3 rel. error on probs.
            p = (e * pl.reciprocal(l, approx=True)).astype(jnp.bfloat16)
            ctx = jnp.dot(p, vh, preferred_element_type=jnp.float32)   # (S, hd)
            # out-projection folded per head: attn @ wo == sum_h ctx_h @ wo[h]
            acc = acc + jnp.dot(ctx.astype(jnp.bfloat16), wo_ref[h],
                                preferred_element_type=jnp.float32)
        attn_rows.append(acc)
    attn_out = attn_rows[0] if Bt == 1 else jnp.concatenate(attn_rows, axis=0)

    y = x + attn_out + bo                              # (R, D) f32

    # ---------------- MLP sub-block: z = y + MLP(LN2(y)) --------------------
    n2 = _layernorm(y, g2, be2)
    hmid = jnp.dot(n2.astype(jnp.bfloat16), w1_ref[...],
                   preferred_element_type=jnp.float32) + b1_ref[0]
    # exact GELU (PyTorch nn.GELU default): 0.5 * h * (1 + erf(h / sqrt(2)))
    hmid = 0.5 * hmid * (1.0 + jax.lax.erf(hmid * 0.7071067811865476))
    mlp_out = jnp.dot(hmid.astype(jnp.bfloat16), w2_ref[...],
                      preferred_element_type=jnp.float32) + b2
    o_ref[...] = (y + mlp_out).reshape(Bt, S, D)


# -----------------------------------------------------------------------------
# Wrapper
# -----------------------------------------------------------------------------
def _const_spec(shape, single_buffer):
    nd = len(shape)
    idx = lambda i, _n=nd: (0,) * _n
    if single_buffer:
        # constant index_map => single buffer is enough; halves resident
        # weight VMEM at production D.
        return pl.BlockSpec(shape, idx, pipeline_mode=pl.Buffered(1))
    return pl.BlockSpec(shape, idx)


def _causal_mask_bias(S):
    idx = jnp.arange(S)
    return jnp.where(idx[None, :] <= idx[:, None], 0.0, -1e30).astype(jnp.float32)


def _default_batch_tile(B):
    # v7x: 2 TensorCores/chip -> keep a parallel batch grid (one half per TC).
    # v5e/v6e: 1 TC -> fold the whole batch into one step (fills bf16 vreg
    # sublanes in the projection/MLP matmuls, drops ~0.35us/step overhead).
    try:
        kind = jax.devices()[0].device_kind.lower()
    except Exception:
        kind = ""
    n_tc = 2 if "v7" in kind else 1
    bt = max(1, B // n_tc)
    while B % bt:
        bt -= 1
    return bt


def _build_call(kernel, B, S, D, Bt, weights, out_dtype, single_buffer):
    const_specs = [_const_spec(w.shape, single_buffer) for w in weights]
    return pl.pallas_call(
        kernel,
        out_shape=jax.ShapeDtypeStruct((B, S, D), out_dtype),
        grid=(B // Bt,),
        in_specs=[pl.BlockSpec((Bt, S, D), lambda i: (i, 0, 0))] + const_specs,
        out_specs=pl.BlockSpec((Bt, S, D), lambda i: (i, 0, 0)),
        compiler_params=pltpu.CompilerParams(
            dimension_semantics=("parallel",),
            vmem_limit_bytes=32 * 1024 * 1024),
    )


def nsa_transformer_block(x, p, num_heads, batch_tile=None):
    B, S, D = x.shape
    Bt = batch_tile if batch_tile is not None else _default_batch_tile(B)
    assert B % Bt == 0 and D % num_heads == 0
    kernel = functools.partial(nsa_block_kernel, num_heads=num_heads,
                               batch_tile=Bt)
    weights = (_causal_mask_bias(S), p["vecs"], p["wqkv"], p["bqkv"],
               p["wo_h"], p["w1"], p["b1"], p["w2"])
    try:
        return _build_call(kernel, B, S, D, Bt, weights, x.dtype, True)(x, *weights)
    except Exception:
        # Fallback: this JAX build rejected single-buffered constant specs;
        # retry with default double-buffered BlockSpecs (identical semantics).
        return _build_call(kernel, B, S, D, Bt, weights, x.dtype, False)(x, *weights)


# -----------------------------------------------------------------------------
# Pure-JAX reference (same math, f32 with the bf16-rounded weights)
# -----------------------------------------------------------------------------
def _reference(x, p, num_heads):
    B, S, D = x.shape
    hd = D // num_heads
    g1, be1, g2, be2, bo, b2 = (p["vecs"][i] for i in range(6))
    wqkv = p["wqkv"].astype(jnp.float32)
    wo = p["wo_h"].astype(jnp.float32).reshape(D, D)
    w1 = p["w1"].astype(jnp.float32)
    w2 = p["w2"].astype(jnp.float32)

    def ln(v, g, b):
        m = v.mean(-1, keepdims=True)
        var = ((v - m) ** 2).mean(-1, keepdims=True)
        return (v - m) / jnp.sqrt(var + EPS) * g + b

    n1 = ln(x, g1, be1)
    qkv = n1 @ wqkv + p["bqkv"][0]
    q, k, v = qkv[..., :D], qkv[..., D:2 * D], qkv[..., 2 * D:]
    q = q.reshape(B, S, num_heads, hd).transpose(0, 2, 1, 3)
    k = k.reshape(B, S, num_heads, hd).transpose(0, 2, 1, 3)
    v = v.reshape(B, S, num_heads, hd).transpose(0, 2, 1, 3)
    s = jnp.einsum("bhqd,bhkd->bhqk", q, k) / jnp.sqrt(hd)
    mask = jnp.tril(jnp.ones((S, S), bool))
    s = jnp.where(mask, s, -jnp.inf)
    a = jax.nn.softmax(s, axis=-1)
    o = jnp.einsum("bhqk,bhkd->bhqd", a, v).transpose(0, 2, 1, 3).reshape(B, S, D)
    y = x + o @ wo + bo
    n2 = ln(y, g2, be2)
    h = n2 @ w1 + p["b1"][0]
    h = 0.5 * h * (1.0 + jax.lax.erf(h * 0.7071067811865476))
    return y + h @ w2 + b2


# -----------------------------------------------------------------------------
# Deterministic parameter construction + main
# -----------------------------------------------------------------------------
def make_params(key, hidden_dim, num_heads):
    D = hidden_dim
    H4 = 4 * D
    hd = D // num_heads
    ks = jax.random.split(key, 12)
    std = 0.02

    def n(k, shape):
        return std * jax.random.normal(k, shape, jnp.float32)

    wq, wk, wv, wo = n(ks[0], (D, D)), n(ks[1], (D, D)), n(ks[2], (D, D)), n(ks[3], (D, D))
    w1, w2 = n(ks[4], (D, H4)), n(ks[5], (H4, D))
    bq, bk, bv, bo = n(ks[6], (D,)), n(ks[7], (D,)), n(ks[8], (D,)), n(ks[9], (D,))
    b1, b2 = n(ks[10], (H4,)), n(ks[11], (D,))
    g1 = jnp.ones((D,), jnp.float32); be1 = jnp.zeros((D,), jnp.float32)
    g2 = jnp.ones((D,), jnp.float32); be2 = jnp.zeros((D,), jnp.float32)

    return {
        # six D-wide vectors packed into one input: g1, be1, g2, be2, bo, b2
        "vecs": jnp.stack([g1, be1, g2, be2, bo, b2], axis=0),               # (6, D) f32
        "wqkv": jnp.concatenate([wq, wk, wv], axis=1).astype(jnp.bfloat16),  # (D, 3D)
        "bqkv": jnp.concatenate([bq, bk, bv])[None, :],                      # (1, 3D) f32
        "wo_h": wo.reshape(num_heads, hd, D).astype(jnp.bfloat16),           # (H, hd, D)
        "w1": w1.astype(jnp.bfloat16),                                       # (D, 4D)
        "b1": b1[None, :],                                                   # (1, 4D) f32
        "w2": w2.astype(jnp.bfloat16),                                       # (4D, D)
    }


if __name__ == "__main__":
    B, S, D, H = 2, 8, 32, 4   # batch, seq, hidden_dim, num_heads

    key = jax.random.PRNGKey(0)
    kx, kp = jax.random.split(key)
    x = jax.random.normal(kx, (B, S, D), jnp.float32)
    params = make_params(kp, D, H)

    out = jax.block_until_ready(nsa_transformer_block(x, params, H))

    ref = _reference(x, params, H)
    assert out.shape == (B, S, D)
    # bf16 MXU operands (projections AND attention) -> loose tolerance
    assert jnp.allclose(out, ref, rtol=2e-2, atol=2e-2), "mismatch vs JAX reference"

    print("KERNEL_OK")
</pallas_src>

<mosaic_0001>
module attributes {stable_mosaic.version = 11 : i64} {
  func.func @nsa_block_kernel(%arg0: i32, %arg1: memref<2x8x32xf32, #tpu.memory_space<vmem>>, %arg2: memref<8x8xf32, #tpu.memory_space<vmem>>, %arg3: memref<6x32xf32, #tpu.memory_space<vmem>>, %arg4: memref<32x96xbf16, #tpu.memory_space<vmem>>, %arg5: memref<1x96xf32, #tpu.memory_space<vmem>>, %arg6: memref<4x8x32xbf16, #tpu.memory_space<vmem>>, %arg7: memref<32x128xbf16, #tpu.memory_space<vmem>>, %arg8: memref<1x128xf32, #tpu.memory_space<vmem>>, %arg9: memref<128x32xbf16, #tpu.memory_space<vmem>>, %arg10: memref<2x8x32xf32, #tpu.memory_space<vmem>>) attributes {dimension_semantics = [#tpu.dimension_semantics<parallel>], iteration_bounds = array<i64: 1>, scalar_prefetch = 0 : i64, scratch_operands = 0 : i64, tpu.core_type = #tpu.core_type<tc>, window_params = [{transform_indices = @transform_0, window_bounds = array<i64: 2, 8, 32>}, {pipeline_mode = #tpu.pipeline_mode<synchronous>, transform_indices = @transform_1, window_bounds = array<i64: 8, 8>}, {pipeline_mode = #tpu.pipeline_mode<synchronous>, transform_indices = @transform_2, window_bounds = array<i64: 6, 32>}, {pipeline_mode = #tpu.pipeline_mode<synchronous>, transform_indices = @transform_3, window_bounds = array<i64: 32, 96>}, {pipeline_mode = #tpu.pipeline_mode<synchronous>, transform_indices = @transform_4, window_bounds = array<i64: 1, 96>}, {pipeline_mode = #tpu.pipeline_mode<synchronous>, transform_indices = @transform_5, window_bounds = array<i64: 4, 8, 32>}, {pipeline_mode = #tpu.pipeline_mode<synchronous>, transform_indices = @transform_6, window_bounds = array<i64: 32, 128>}, {pipeline_mode = #tpu.pipeline_mode<synchronous>, transform_indices = @transform_7, window_bounds = array<i64: 1, 128>}, {pipeline_mode = #tpu.pipeline_mode<synchronous>, transform_indices = @transform_8, window_bounds = array<i64: 128, 32>}, {transform_indices = @transform_9, window_bounds = array<i64: 2, 8, 32>}]} {
    %c0 = arith.constant 0 : index
    %c0_0 = arith.constant 0 : index
    %c0_1 = arith.constant 0 : index
    %0 = vector.load %arg1[%c0, %c0_0, %c0_1] : memref<2x8x32xf32, #tpu.memory_space<vmem>>, vector<2x8x32xf32>
    %1 = vector.shape_cast %0 : vector<2x8x32xf32> to vector<16x32xf32>
    %c0_2 = arith.constant 0 : index
    %c0_3 = arith.constant 0 : index
    %2 = vector.load %arg3[%c0_2, %c0_3] : memref<6x32xf32, #tpu.memory_space<vmem>>, vector<1x32xf32>
    %3 = vector.shape_cast %2 : vector<1x32xf32> to vector<32xf32>
    %c1 = arith.constant 1 : index
    %c0_4 = arith.constant 0 : index
    %4 = vector.load %arg3[%c1, %c0_4] : memref<6x32xf32, #tpu.memory_space<vmem>>, vector<1x32xf32>
    %5 = vector.shape_cast %4 : vector<1x32xf32> to vector<32xf32>
    %c2 = arith.constant 2 : index
    %c0_5 = arith.constant 0 : index
    %6 = vector.load %arg3[%c2, %c0_5] : memref<6x32xf32, #tpu.memory_space<vmem>>, vector<1x32xf32>
    %7 = vector.shape_cast %6 : vector<1x32xf32> to vector<32xf32>
    %c3 = arith.constant 3 : index
    %c0_6 = arith.constant 0 : index
    %8 = vector.load %arg3[%c3, %c0_6] : memref<6x32xf32, #tpu.memory_space<vmem>>, vector<1x32xf32>
    %9 = vector.shape_cast %8 : vector<1x32xf32> to vector<32xf32>
    %c4 = arith.constant 4 : index
    %c0_7 = arith.constant 0 : index
    %10 = vector.load %arg3[%c4, %c0_7] : memref<6x32xf32, #tpu.memory_space<vmem>>, vector<1x32xf32>
    %11 = vector.shape_cast %10 : vector<1x32xf32> to vector<32xf32>
    %c5 = arith.constant 5 : index
    %c0_8 = arith.constant 0 : index
    %12 = vector.load %arg3[%c5, %c0_8] : memref<6x32xf32, #tpu.memory_space<vmem>>, vector<1x32xf32>
    %13 = vector.shape_cast %12 : vector<1x32xf32> to vector<32xf32>
    %c0_9 = arith.constant 0 : index
    %c0_10 = arith.constant 0 : index
    %14 = vector.load %arg2[%c0_9, %c0_10] : memref<8x8xf32, #tpu.memory_space<vmem>>, vector<8x8xf32>
    %cst = arith.constant dense<0.000000e+00> : vector<16xf32>
    %15 = vector.multi_reduction <add>, %1, %cst [1] : vector<16x32xf32> to vector<16xf32>
    %16 = vector.shape_cast %15 : vector<16xf32> to vector<16x1xf32>
    %cst_11 = arith.constant 3.200000e+01 : f32
    %17 = vector.broadcast %cst_11 : f32 to vector<16x1xf32>
    %18 = arith.divf %16, %17 : vector<16x1xf32>
    %19 = vector.broadcast %18 : vector<16x1xf32> to vector<16x32xf32>
    %20 = arith.subf %1, %19 : vector<16x32xf32>
    %21 = arith.mulf %20, %20 : vector<16x32xf32>
    %cst_12 = arith.constant dense<0.000000e+00> : vector<16xf32>
    %22 = vector.multi_reduction <add>, %21, %cst_12 [1] : vector<16x32xf32> to vector<16xf32>
    %23 = vector.shape_cast %22 : vector<16xf32> to vector<16x1xf32>
    %cst_13 = arith.constant 3.200000e+01 : f32
    %24 = vector.broadcast %cst_13 : f32 to vector<16x1xf32>
    %25 = arith.divf %23, %24 : vector<16x1xf32>
    %26 = vector.broadcast %18 : vector<16x1xf32> to vector<16x32xf32>
    %27 = arith.subf %1, %26 : vector<16x32xf32>
    %cst_14 = arith.constant 9.99999974E-6 : f32
    %28 = vector.broadcast %cst_14 : f32 to vector<16x1xf32>
    %29 = arith.addf %25, %28 : vector<16x1xf32>
    %30 = math.rsqrt %29 : vector<16x1xf32>
    %31 = vector.broadcast %30 : vector<16x1xf32> to vector<16x32xf32>
    %32 = arith.mulf %27, %31 : vector<16x32xf32>
    %33 = vector.shape_cast %3 : vector<32xf32> to vector<1x32xf32>
    %34 = vector.broadcast %33 : vector<1x32xf32> to vector<16x32xf32>
    %35 = arith.mulf %32, %34 : vector<16x32xf32>
    %36 = vector.shape_cast %5 : vector<32xf32> to vector<1x32xf32>
    %37 = vector.broadcast %36 : vector<1x32xf32> to vector<16x32xf32>
    %38 = arith.addf %35, %37 : vector<16x32xf32>
    %39 = arith.truncf %38 : vector<16x32xf32> to vector<16x32xbf16>
    %c0_15 = arith.constant 0 : index
    %c0_16 = arith.constant 0 : index
    %40 = vector.load %arg4[%c0_15, %c0_16] : memref<32x96xbf16, #tpu.memory_space<vmem>>, vector<32x96xbf16>
    %cst_17 = arith.constant dense<0.000000e+00> : vector<16x96xf32>
    %41 = tpu.matmul %39, %40, %cst_17 {dimension_numbers = #tpu.dot_dimension_numbers<[1], [0], [0], [1], [0, 0, 1, 1], [], []>} : vector<16x32xbf16>, vector<32x96xbf16>, vector<16x96xf32> -> vector<16x96xf32>
    %c0_18 = arith.constant 0 : index
    %c0_19 = arith.constant 0 : index
    %42 = vector.load %arg5[%c0_18, %c0_19] : memref<1x96xf32, #tpu.memory_space<vmem>>, vector<1x96xf32>
    %43 = vector.shape_cast %42 : vector<1x96xf32> to vector<96xf32>
    %44 = vector.shape_cast %43 : vector<96xf32> to vector<1x96xf32>
    %45 = vector.broadcast %44 : vector<1x96xf32> to vector<16x96xf32>
    %46 = arith.addf %41, %45 : vector<16x96xf32>
    %47 = arith.truncf %46 : vector<16x96xf32> to vector<16x96xbf16>
    %cst_20 = arith.constant 0.000000e+00 : f32
    %48 = vector.broadcast %cst_20 : f32 to vector<8x32xf32>
    %49 = vector.extract_strided_slice %47 {offsets = [0, 0], sizes = [8, 8], strides = [1, 1]} : vector<16x96xbf16> to vector<8x8xbf16>
    %50 = vector.extract_strided_slice %47 {offsets = [0, 32], sizes = [8, 8], strides = [1, 1]} : vector<16x96xbf16> to vector<8x8xbf16>
    %51 = vector.extract_strided_slice %47 {offsets = [0, 64], sizes = [8, 8], strides = [1, 1]} : vector<16x96xbf16> to vector<8x8xbf16>
    %cst_21 = arith.constant dense<0.000000e+00> : vector<8x8xf32>
    %52 = tpu.matmul %49, %50, %cst_21 {dimension_numbers = #tpu.dot_dimension_numbers<[1], [1], [0], [0], [0, 0, 1, 0], [], []>} : vector<8x8xbf16>, vector<8x8xbf16>, vector<8x8xf32> -> vector<8x8xf32>
    %cst_22 = arith.constant 0.353553385 : f32
    %53 = vector.broadcast %cst_22 : f32 to vector<8x8xf32>
    %54 = arith.mulf %52, %53 : vector<8x8xf32>
    %55 = arith.addf %54, %14 : vector<8x8xf32>
    %cst_23 = arith.constant dense<0xFF800000> : vector<8xf32>
    %56 = vector.multi_reduction <maximumf>, %55, %cst_23 [1] : vector<8x8xf32> to vector<8xf32>
    %57 = vector.shape_cast %56 : vector<8xf32> to vector<8x1xf32>
    %58 = vector.broadcast %57 : vector<8x1xf32> to vector<8x8xf32>
    %59 = arith.subf %55, %58 : vector<8x8xf32>
    %60 = math.exp %59 : vector<8x8xf32>
    %cst_24 = arith.constant dense<0.000000e+00> : vector<8xf32>
    %61 = vector.multi_reduction <add>, %60, %cst_24 [1] : vector<8x8xf32> to vector<8xf32>
    %62 = vector.shape_cast %61 : vector<8xf32> to vector<8x1xf32>
    %63 = tpu.reciprocal %62 {approx = true} : vector<8x1xf32> -> vector<8x1xf32>
    %64 = vector.broadcast %63 : vector<8x1xf32> to vector<8x8xf32>
    %65 = arith.mulf %60, %64 : vector<8x8xf32>
    %66 = arith.truncf %65 : vector<8x8xf32> to vector<8x8xbf16>
    %cst_25 = arith.constant dense<0.000000e+00> : vector<8x8xf32>
    %67 = tpu.matmul %66, %51, %cst_25 {dimension_numbers = #tpu.dot_dimension_numbers<[1], [0], [0], [1], [0, 0, 1, 1], [], []>} : vector<8x8xbf16>, vector<8x8xbf16>, vector<8x8xf32> -> vector<8x8xf32>
    %68 = arith.truncf %67 : vector<8x8xf32> to vector<8x8xbf16>
    %c0_26 = arith.constant 0 : index
    %c0_27 = arith.constant 0 : index
    %c0_28 = arith.constant 0 : index
    %69 = vector.load %arg6[%c0_26, %c0_27, %c0_28] : memref<4x8x32xbf16, #tpu.memory_space<vmem>>, vector<1x8x32xbf16>
    %70 = vector.shape_cast %69 : vector<1x8x32xbf16> to vector<8x32xbf16>
    %cst_29 = arith.constant dense<0.000000e+00> : vector<8x32xf32>
    %71 = tpu.matmul %68, %70, %cst_29 {dimension_numbers = #tpu.dot_dimension_numbers<[1], [0], [0], [1], [0, 0, 1, 1], [], []>} : vector<8x8xbf16>, vector<8x32xbf16>, vector<8x32xf32> -> vector<8x32xf32>
    %72 = arith.addf %48, %71 : vector<8x32xf32>
    %73 = vector.extract_strided_slice %47 {offsets = [0, 8], sizes = [8, 8], strides = [1, 1]} : vector<16x96xbf16> to vector<8x8xbf16>
    %74 = vector.extract_strided_slice %47 {offsets = [0, 40], sizes = [8, 8], strides = [1, 1]} : vector<16x96xbf16> to vector<8x8xbf16>
    %75 = vector.extract_strided_slice %47 {offsets = [0, 72], sizes = [8, 8], strides = [1, 1]} : vector<16x96xbf16> to vector<8x8xbf16>
    %cst_30 = arith.constant dense<0.000000e+00> : vector<8x8xf32>
    %76 = tpu.matmul %73, %74, %cst_30 {dimension_numbers = #tpu.dot_dimension_numbers<[1], [1], [0], [0], [0, 0, 1, 0], [], []>} : vector<8x8xbf16>, vector<8x8xbf16>, vector<8x8xf32> -> vector<8x8xf32>
    %cst_31 = arith.constant 0.353553385 : f32
    %77 = vector.broadcast %cst_31 : f32 to vector<8x8xf32>
    %78 = arith.mulf %76, %77 : vector<8x8xf32>
    %79 = arith.addf %78, %14 : vector<8x8xf32>
    %cst_32 = arith.constant dense<0xFF800000> : vector<8xf32>
    %80 = vector.multi_reduction <maximumf>, %79, %cst_32 [1] : vector<8x8xf32> to vector<8xf32>
    %81 = vector.shape_cast %80 : vector<8xf32> to vector<8x1xf32>
    %82 = vector.broadcast %81 : vector<8x1xf32> to vector<8x8xf32>
    %83 = arith.subf %79, %82 : vector<8x8xf32>
    %84 = math.exp %83 : vector<8x8xf32>
    %cst_33 = arith.constant dense<0.000000e+00> : vector<8xf32>
    %85 = vector.multi_reduction <add>, %84, %cst_33 [1] : vector<8x8xf32> to vector<8xf32>
    %86 = vector.shape_cast %85 : vector<8xf32> to vector<8x1xf32>
    %87 = tpu.reciprocal %86 {approx = true} : vector<8x1xf32> -> vector<8x1xf32>
    %88 = vector.broadcast %87 : vector<8x1xf32> to vector<8x8xf32>
    %89 = arith.mulf %84, %88 : vector<8x8xf32>
    %90 = arith.truncf %89 : vector<8x8xf32> to vector<8x8xbf16>
    %cst_34 = arith.constant dense<0.000000e+00> : vector<8x8xf32>
    %91 = tpu.matmul %90, %75, %cst_34 {dimension_numbers = #tpu.dot_dimension_numbers<[1], [0], [0], [1], [0, 0, 1, 1], [], []>} : vector<8x8xbf16>, vector<8x8xbf16>, vector<8x8xf32> -> vector<8x8xf32>
    %92 = arith.truncf %91 : vector<8x8xf32> to vector<8x8xbf16>
    %c1_35 = arith.constant 1 : index
    %c0_36 = arith.constant 0 : index
    %c0_37 = arith.constant 0 : index
    %93 = vector.load %arg6[%c1_35, %c0_36, %c0_37] : memref<4x8x32xbf16, #tpu.memory_space<vmem>>, vector<1x8x32xbf16>
    %94 = vector.shape_cast %93 : vector<1x8x32xbf16> to vector<8x32xbf16>
    %cst_38 = arith.constant dense<0.000000e+00> : vector<8x32xf32>
    %95 = tpu.matmul %92, %94, %cst_38 {dimension_numbers = #tpu.dot_dimension_numbers<[1], [0], [0], [1], [0, 0, 1, 1], [], []>} : vector<8x8xbf16>, vector<8x32xbf16>, vector<8x32xf32> -> vector<8x32xf32>
    %96 = arith.addf %72, %95 : vector<8x32xf32>
    %97 = vector.extract_strided_slice %47 {offsets = [0, 16], sizes = [8, 8], strides = [1, 1]} : vector<16x96xbf16> to vector<8x8xbf16>
    %98 = vector.extract_strided_slice %47 {offsets = [0, 48], sizes = [8, 8], strides = [1, 1]} : vector<16x96xbf16> to vector<8x8xbf16>
    %99 = vector.extract_strided_slice %47 {offsets = [0, 80], sizes = [8, 8], strides = [1, 1]} : vector<16x96xbf16> to vector<8x8xbf16>
    %cst_39 = arith.constant dense<0.000000e+00> : vector<8x8xf32>
    %100 = tpu.matmul %97, %98, %cst_39 {dimension_numbers = #tpu.dot_dimension_numbers<[1], [1], [0], [0], [0, 0, 1, 0], [], []>} : vector<8x8xbf16>, vector<8x8xbf16>, vector<8x8xf32> -> vector<8x8xf32>
    %cst_40 = arith.constant 0.353553385 : f32
    %101 = vector.broadcast %cst_40 : f32 to vector<8x8xf32>
    %102 = arith.mulf %100, %101 : vector<8x8xf32>
    %103 = arith.addf %102, %14 : vector<8x8xf32>
    %cst_41 = arith.constant dense<0xFF800000> : vector<8xf32>
    %104 = vector.multi_reduction <maximumf>, %103, %cst_41 [1] : vector<8x8xf32> to vector<8xf32>
    %105 = vector.shape_cast %104 : vector<8xf32> to vector<8x1xf32>
    %106 = vector.broadcast %105 : vector<8x1xf32> to vector<8x8xf32>
    %107 = arith.subf %103, %106 : vector<8x8xf32>
    %108 = math.exp %107 : vector<8x8xf32>
    %cst_42 = arith.constant dense<0.000000e+00> : vector<8xf32>
    %109 = vector.multi_reduction <add>, %108, %cst_42 [1] : vector<8x8xf32> to vector<8xf32>
    %110 = vector.shape_cast %109 : vector<8xf32> to vector<8x1xf32>
    %111 = tpu.reciprocal %110 {approx = true} : vector<8x1xf32> -> vector<8x1xf32>
    %112 = vector.broadcast %111 : vector<8x1xf32> to vector<8x8xf32>
    %113 = arith.mulf %108, %112 : vector<8x8xf32>
    %114 = arith.truncf %113 : vector<8x8xf32> to vector<8x8xbf16>
    %cst_43 = arith.constant dense<0.000000e+00> : vector<8x8xf32>
    %115 = tpu.matmul %114, %99, %cst_43 {dimension_numbers = #tpu.dot_dimension_numbers<[1], [0], [0], [1], [0, 0, 1, 1], [], []>} : vector<8x8xbf16>, vector<8x8xbf16>, vector<8x8xf32> -> vector<8x8xf32>
    %116 = arith.truncf %115 : vector<8x8xf32> to vector<8x8xbf16>
    %c2_44 = arith.constant 2 : index
    %c0_45 = arith.constant 0 : index
    %c0_46 = arith.constant 0 : index
    %117 = vector.load %arg6[%c2_44, %c0_45, %c0_46] : memref<4x8x32xbf16, #tpu.memory_space<vmem>>, vector<1x8x32xbf16>
    %118 = vector.shape_cast %117 : vector<1x8x32xbf16> to vector<8x32xbf16>
    %cst_47 = arith.constant dense<0.000000e+00> : vector<8x32xf32>
    %119 = tpu.matmul %116, %118, %cst_47 {dimension_numbers = #tpu.dot_dimension_numbers<[1], [0], [0], [1], [0, 0, 1, 1], [], []>} : vector<8x8xbf16>, vector<8x32xbf16>, vector<8x32xf32> -> vector<8x32xf32>
    %120 = arith.addf %96, %119 : vector<8x32xf32>
    %121 = vector.extract_strided_slice %47 {offsets = [0, 24], sizes = [8, 8], strides = [1, 1]} : vector<16x96xbf16> to vector<8x8xbf16>
    %122 = vector.extract_strided_slice %47 {offsets = [0, 56], sizes = [8, 8], strides = [1, 1]} : vector<16x96xbf16> to vector<8x8xbf16>
    %123 = vector.extract_strided_slice %47 {offsets = [0, 88], sizes = [8, 8], strides = [1, 1]} : vector<16x96xbf16> to vector<8x8xbf16>
    %cst_48 = arith.constant dense<0.000000e+00> : vector<8x8xf32>
    %124 = tpu.matmul %121, %122, %cst_48 {dimension_numbers = #tpu.dot_dimension_numbers<[1], [1], [0], [0], [0, 0, 1, 0], [], []>} : vector<8x8xbf16>, vector<8x8xbf16>, vector<8x8xf32> -> vector<8x8xf32>
    %cst_49 = arith.constant 0.353553385 : f32
    %125 = vector.broadcast %cst_49 : f32 to vector<8x8xf32>
    %126 = arith.mulf %124, %125 : vector<8x8xf32>
    %127 = arith.addf %126, %14 : vector<8x8xf32>
    %cst_50 = arith.constant dense<0xFF800000> : vector<8xf32>
    %128 = vector.multi_reduction <maximumf>, %127, %cst_50 [1] : vector<8x8xf32> to vector<8xf32>
    %129 = vector.shape_cast %128 : vector<8xf32> to vector<8x1xf32>
    %130 = vector.broadcast %129 : vector<8x1xf32> to vector<8x8xf32>
    %131 = arith.subf %127, %130 : vector<8x8xf32>
    %132 = math.exp %131 : vector<8x8xf32>
    %cst_51 = arith.constant dense<0.000000e+00> : vector<8xf32>
    %133 = vector.multi_reduction <add>, %132, %cst_51 [1] : vector<8x8xf32> to vector<8xf32>
    %134 = vector.shape_cast %133 : vector<8xf32> to vector<8x1xf32>
    %135 = tpu.reciprocal %134 {approx = true} : vector<8x1xf32> -> vector<8x1xf32>
    %136 = vector.broadcast %135 : vector<8x1xf32> to vector<8x8xf32>
    %137 = arith.mulf %132, %136 : vector<8x8xf32>
    %138 = arith.truncf %137 : vector<8x8xf32> to vector<8x8xbf16>
    %cst_52 = arith.constant dense<0.000000e+00> : vector<8x8xf32>
    %139 = tpu.matmul %138, %123, %cst_52 {dimension_numbers = #tpu.dot_dimension_numbers<[1], [0], [0], [1], [0, 0, 1, 1], [], []>} : vector<8x8xbf16>, vector<8x8xbf16>, vector<8x8xf32> -> vector<8x8xf32>
    %140 = arith.truncf %139 : vector<8x8xf32> to vector<8x8xbf16>
    %c3_53 = arith.constant 3 : index
    %c0_54 = arith.constant 0 : index
    %c0_55 = arith.constant 0 : index
    %141 = vector.load %arg6[%c3_53, %c0_54, %c0_55] : memref<4x8x32xbf16, #tpu.memory_space<vmem>>, vector<1x8x32xbf16>
    %142 = vector.shape_cast %141 : vector<1x8x32xbf16> to vector<8x32xbf16>
    %cst_56 = arith.constant dense<0.000000e+00> : vector<8x32xf32>
    %143 = tpu.matmul %140, %142, %cst_56 {dimension_numbers = #tpu.dot_dimension_numbers<[1], [0], [0], [1], [0, 0, 1, 1], [], []>} : vector<8x8xbf16>, vector<8x32xbf16>, vector<8x32xf32> -> vector<8x32xf32>
    %144 = arith.addf %120, %143 : vector<8x32xf32>
    %cst_57 = arith.constant 0.000000e+00 : f32
    %145 = vector.broadcast %cst_57 : f32 to vector<8x32xf32>
    %146 = vector.extract_strided_slice %47 {offsets = [8, 0], sizes = [8, 8], strides = [1, 1]} : vector<16x96xbf16> to vector<8x8xbf16>
    %147 = vector.extract_strided_slice %47 {offsets = [8, 32], sizes = [8, 8], strides = [1, 1]} : vector<16x96xbf16> to vector<8x8xbf16>
    %148 = vector.extract_strided_slice %47 {offsets = [8, 64], sizes = [8, 8], strides = [1, 1]} : vector<16x96xbf16> to vector<8x8xbf16>
    %cst_58 = arith.constant dense<0.000000e+00> : vector<8x8xf32>
    %149 = tpu.matmul %146, %147, %cst_58 {dimension_numbers = #tpu.dot_dimension_numbers<[1], [1], [0], [0], [0, 0, 1, 0], [], []>} : vector<8x8xbf16>, vector<8x8xbf16>, vector<8x8xf32> -> vector<8x8xf32>
    %cst_59 = arith.constant 0.353553385 : f32
    %150 = vector.broadcast %cst_59 : f32 to vector<8x8xf32>
    %151 = arith.mulf %149, %150 : vector<8x8xf32>
    %152 = arith.addf %151, %14 : vector<8x8xf32>
    %cst_60 = arith.constant dense<0xFF800000> : vector<8xf32>
    %153 = vector.multi_reduction <maximumf>, %152, %cst_60 [1] : vector<8x8xf32> to vector<8xf32>
    %154 = vector.shape_cast %153 : vector<8xf32> to vector<8x1xf32>
    %155 = vector.broadcast %154 : vector<8x1xf32> to vector<8x8xf32>
    %156 = arith.subf %152, %155 : vector<8x8xf32>
    %157 = math.exp %156 : vector<8x8xf32>
    %cst_61 = arith.constant dense<0.000000e+00> : vector<8xf32>
    %158 = vector.multi_reduction <add>, %157, %cst_61 [1] : vector<8x8xf32> to vector<8xf32>
    %159 = vector.shape_cast %158 : vector<8xf32> to vector<8x1xf32>
    %160 = tpu.reciprocal %159 {approx = true} : vector<8x1xf32> -> vector<8x1xf32>
    %161 = vector.broadcast %160 : vector<8x1xf32> to vector<8x8xf32>
    %162 = arith.mulf %157, %161 : vector<8x8xf32>
    %163 = arith.truncf %162 : vector<8x8xf32> to vector<8x8xbf16>
    %cst_62 = arith.constant dense<0.000000e+00> : vector<8x8xf32>
    %164 = tpu.matmul %163, %148, %cst_62 {dimension_numbers = #tpu.dot_dimension_numbers<[1], [0], [0], [1], [0, 0, 1, 1], [], []>} : vector<8x8xbf16>, vector<8x8xbf16>, vector<8x8xf32> -> vector<8x8xf32>
    %165 = arith.truncf %164 : vector<8x8xf32> to vector<8x8xbf16>
    %c0_63 = arith.constant 0 : index
    %c0_64 = arith.constant 0 : index
    %c0_65 = arith.constant 0 : index
    %166 = vector.load %arg6[%c0_63, %c0_64, %c0_65] : memref<4x8x32xbf16, #tpu.memory_space<vmem>>, vector<1x8x32xbf16>
    %167 = vector.shape_cast %166 : vector<1x8x32xbf16> to vector<8x32xbf16>
    %cst_66 = arith.constant dense<0.000000e+00> : vector<8x32xf32>
    %168 = tpu.matmul %165, %167, %cst_66 {dimension_numbers = #tpu.dot_dimension_numbers<[1], [0], [0], [1], [0, 0, 1, 1], [], []>} : vector<8x8xbf16>, vector<8x32xbf16>, vector<8x32xf32> -> vector<8x32xf32>
    %169 = arith.addf %145, %168 : vector<8x32xf32>
    %170 = vector.extract_strided_slice %47 {offsets = [8, 8], sizes = [8, 8], strides = [1, 1]} : vector<16x96xbf16> to vector<8x8xbf16>
    %171 = vector.extract_strided_slice %47 {offsets = [8, 40], sizes = [8, 8], strides = [1, 1]} : vector<16x96xbf16> to vector<8x8xbf16>
    %172 = vector.extract_strided_slice %47 {offsets = [8, 72], sizes = [8, 8], strides = [1, 1]} : vector<16x96xbf16> to vector<8x8xbf16>
    %cst_67 = arith.constant dense<0.000000e+00> : vector<8x8xf32>
    %173 = tpu.matmul %170, %171, %cst_67 {dimension_numbers = #tpu.dot_dimension_numbers<[1], [1], [0], [0], [0, 0, 1, 0], [], []>} : vector<8x8xbf16>, vector<8x8xbf16>, vector<8x8xf32> -> vector<8x8xf32>
    %cst_68 = arith.constant 0.353553385 : f32
    %174 = vector.broadcast %cst_68 : f32 to vector<8x8xf32>
    %175 = arith.mulf %173, %174 : vector<8x8xf32>
    %176 = arith.addf %175, %14 : vector<8x8xf32>
    %cst_69 = arith.constant dense<0xFF800000> : vector<8xf32>
    %177 = vector.multi_reduction <maximumf>, %176, %cst_69 [1] : vector<8x8xf32> to vector<8xf32>
    %178 = vector.shape_cast %177 : vector<8xf32> to vector<8x1xf32>
    %179 = vector.broadcast %178 : vector<8x1xf32> to vector<8x8xf32>
    %180 = arith.subf %176, %179 : vector<8x8xf32>
    %181 = math.exp %180 : vector<8x8xf32>
    %cst_70 = arith.constant dense<0.000000e+00> : vector<8xf32>
    %182 = vector.multi_reduction <add>, %181, %cst_70 [1] : vector<8x8xf32> to vector<8xf32>
    %183 = vector.shape_cast %182 : vector<8xf32> to vector<8x1xf32>
    %184 = tpu.reciprocal %183 {approx = true} : vector<8x1xf32> -> vector<8x1xf32>
    %185 = vector.broadcast %184 : vector<8x1xf32> to vector<8x8xf32>
    %186 = arith.mulf %181, %185 : vector<8x8xf32>
    %187 = arith.truncf %186 : vector<8x8xf32> to vector<8x8xbf16>
    %cst_71 = arith.constant dense<0.000000e+00> : vector<8x8xf32>
    %188 = tpu.matmul %187, %172, %cst_71 {dimension_numbers = #tpu.dot_dimension_numbers<[1], [0], [0], [1], [0, 0, 1, 1], [], []>} : vector<8x8xbf16>, vector<8x8xbf16>, vector<8x8xf32> -> vector<8x8xf32>
    %189 = arith.truncf %188 : vector<8x8xf32> to vector<8x8xbf16>
    %c1_72 = arith.constant 1 : index
    %c0_73 = arith.constant 0 : index
    %c0_74 = arith.constant 0 : index
    %190 = vector.load %arg6[%c1_72, %c0_73, %c0_74] : memref<4x8x32xbf16, #tpu.memory_space<vmem>>, vector<1x8x32xbf16>
    %191 = vector.shape_cast %190 : vector<1x8x32xbf16> to vector<8x32xbf16>
    %cst_75 = arith.constant dense<0.000000e+00> : vector<8x32xf32>
    %192 = tpu.matmul %189, %191, %cst_75 {dimension_numbers = #tpu.dot_dimension_numbers<[1], [0], [0], [1], [0, 0, 1, 1], [], []>} : vector<8x8xbf16>, vector<8x32xbf16>, vector<8x32xf32> -> vector<8x32xf32>
    %193 = arith.addf %169, %192 : vector<8x32xf32>
    %194 = vector.extract_strided_slice %47 {offsets = [8, 16], sizes = [8, 8], strides = [1, 1]} : vector<16x96xbf16> to vector<8x8xbf16>
    %195 = vector.extract_strided_slice %47 {offsets = [8, 48], sizes = [8, 8], strides = [1, 1]} : vector<16x96xbf16> to vector<8x8xbf16>
    %196 = vector.extract_strided_slice %47 {offsets = [8, 80], sizes = [8, 8], strides = [1, 1]} : vector<16x96xbf16> to vector<8x8xbf16>
    %cst_76 = arith.constant dense<0.000000e+00> : vector<8x8xf32>
    %197 = tpu.matmul %194, %195, %cst_76 {dimension_numbers = #tpu.dot_dimension_numbers<[1], [1], [0], [0], [0, 0, 1, 0], [], []>} : vector<8x8xbf16>, vector<8x8xbf16>, vector<8x8xf32> -> vector<8x8xf32>
    %cst_77 = arith.constant 0.353553385 : f32
    %198 = vector.broadcast %cst_77 : f32 to vector<8x8xf32>
    %199 = arith.mulf %197, %198 : vector<8x8xf32>
    %200 = arith.addf %199, %14 : vector<8x8xf32>
    %cst_78 = arith.constant dense<0xFF800000> : vector<8xf32>
    %201 = vector.multi_reduction <maximumf>, %200, %cst_78 [1] : vector<8x8xf32> to vector<8xf32>
    %202 = vector.shape_cast %201 : vector<8xf32> to vector<8x1xf32>
    %203 = vector.broadcast %202 : vector<8x1xf32> to vector<8x8xf32>
    %204 = arith.subf %200, %203 : vector<8x8xf32>
    %205 = math.exp %204 : vector<8x8xf32>
    %cst_79 = arith.constant dense<0.000000e+00> : vector<8xf32>
    %206 = vector.multi_reduction <add>, %205, %cst_79 [1] : vector<8x8xf32> to vector<8xf32>
    %207 = vector.shape_cast %206 : vector<8xf32> to vector<8x1xf32>
    %208 = tpu.reciprocal %207 {approx = true} : vector<8x1xf32> -> vector<8x1xf32>
    %209 = vector.broadcast %208 : vector<8x1xf32> to vector<8x8xf32>
    %210 = arith.mulf %205, %209 : vector<8x8xf32>
    %211 = arith.truncf %210 : vector<8x8xf32> to vector<8x8xbf16>
    %cst_80 = arith.constant dense<0.000000e+00> : vector<8x8xf32>
    %212 = tpu.matmul %211, %196, %cst_80 {dimension_numbers = #tpu.dot_dimension_numbers<[1], [0], [0], [1], [0, 0, 1, 1], [], []>} : vector<8x8xbf16>, vector<8x8xbf16>, vector<8x8xf32> -> vector<8x8xf32>
    %213 = arith.truncf %212 : vector<8x8xf32> to vector<8x8xbf16>
    %c2_81 = arith.constant 2 : index
    %c0_82 = arith.constant 0 : index
    %c0_83 = arith.constant 0 : index
    %214 = vector.load %arg6[%c2_81, %c0_82, %c0_83] : memref<4x8x32xbf16, #tpu.memory_space<vmem>>, vector<1x8x32xbf16>
    %215 = vector.shape_cast %214 : vector<1x8x32xbf16> to vector<8x32xbf16>
    %cst_84 = arith.constant dense<0.000000e+00> : vector<8x32xf32>
    %216 = tpu.matmul %213, %215, %cst_84 {dimension_numbers = #tpu.dot_dimension_numbers<[1], [0], [0], [1], [0, 0, 1, 1], [], []>} : vector<8x8xbf16>, vector<8x32xbf16>, vector<8x32xf32> -> vector<8x32xf32>
    %217 = arith.addf %193, %216 : vector<8x32xf32>
    %218 = vector.extract_strided_slice %47 {offsets = [8, 24], sizes = [8, 8], strides = [1, 1]} : vector<16x96xbf16> to vector<8x8xbf16>
    %219 = vector.extract_strided_slice %47 {offsets = [8, 56], sizes = [8, 8], strides = [1, 1]} : vector<16x96xbf16> to vector<8x8xbf16>
    %220 = vector.extract_strided_slice %47 {offsets = [8, 88], sizes = [8, 8], strides = [1, 1]} : vector<16x96xbf16> to vector<8x8xbf16>
    %cst_85 = arith.constant dense<0.000000e+00> : vector<8x8xf32>
    %221 = tpu.matmul %218, %219, %cst_85 {dimension_numbers = #tpu.dot_dimension_numbers<[1], [1], [0], [0], [0, 0, 1, 0], [], []>} : vector<8x8xbf16>, vector<8x8xbf16>, vector<8x8xf32> -> vector<8x8xf32>
    %cst_86 = arith.constant 0.353553385 : f32
    %222 = vector.broadcast %cst_86 : f32 to vector<8x8xf32>
    %223 = arith.mulf %221, %222 : vector<8x8xf32>
    %224 = arith.addf %223, %14 : vector<8x8xf32>
    %cst_87 = arith.constant dense<0xFF800000> : vector<8xf32>
    %225 = vector.multi_reduction <maximumf>, %224, %cst_87 [1] : vector<8x8xf32> to vector<8xf32>
    %226 = vector.shape_cast %225 : vector<8xf32> to vector<8x1xf32>
    %227 = vector.broadcast %226 : vector<8x1xf32> to vector<8x8xf32>
    %228 = arith.subf %224, %227 : vector<8x8xf32>
    %229 = math.exp %228 : vector<8x8xf32>
    %cst_88 = arith.constant dense<0.000000e+00> : vector<8xf32>
    %230 = vector.multi_reduction <add>, %229, %cst_88 [1] : vector<8x8xf32> to vector<8xf32>
    %231 = vector.shape_cast %230 : vector<8xf32> to vector<8x1xf32>
    %232 = tpu.reciprocal %231 {approx = true} : vector<8x1xf32> -> vector<8x1xf32>
    %233 = vector.broadcast %232 : vector<8x1xf32> to vector<8x8xf32>
    %234 = arith.mulf %229, %233 : vector<8x8xf32>
    %235 = arith.truncf %234 : vector<8x8xf32> to vector<8x8xbf16>
    %cst_89 = arith.constant dense<0.000000e+00> : vector<8x8xf32>
    %236 = tpu.matmul %235, %220, %cst_89 {dimension_numbers = #tpu.dot_dimension_numbers<[1], [0], [0], [1], [0, 0, 1, 1], [], []>} : vector<8x8xbf16>, vector<8x8xbf16>, vector<8x8xf32> -> vector<8x8xf32>
    %237 = arith.truncf %236 : vector<8x8xf32> to vector<8x8xbf16>
    %c3_90 = arith.constant 3 : index
    %c0_91 = arith.constant 0 : index
    %c0_92 = arith.constant 0 : index
    %238 = vector.load %arg6[%c3_90, %c0_91, %c0_92] : memref<4x8x32xbf16, #tpu.memory_space<vmem>>, vector<1x8x32xbf16>
    %239 = vector.shape_cast %238 : vector<1x8x32xbf16> to vector<8x32xbf16>
    %cst_93 = arith.constant dense<0.000000e+00> : vector<8x32xf32>
    %240 = tpu.matmul %237, %239, %cst_93 {dimension_numbers = #tpu.dot_dimension_numbers<[1], [0], [0], [1], [0, 0, 1, 1], [], []>} : vector<8x8xbf16>, vector<8x32xbf16>, vector<8x32xf32> -> vector<8x32xf32>
    %241 = arith.addf %217, %240 : vector<8x32xf32>
    %242 = tpu.concatenate %144, %241 in 0 : vector<8x32xf32>, vector<8x32xf32> -> vector<16x32xf32>
    %243 = arith.addf %1, %242 : vector<16x32xf32>
    %244 = vector.shape_cast %11 : vector<32xf32> to vector<1x32xf32>
    %245 = vector.broadcast %244 : vector<1x32xf32> to vector<16x32xf32>
    %246 = arith.addf %243, %245 : vector<16x32xf32>
    %cst_94 = arith.constant dense<0.000000e+00> : vector<16xf32>
    %247 = vector.multi_reduction <add>, %246, %cst_94 [1] : vector<16x32xf32> to vector<16xf32>
    %248 = vector.shape_cast %247 : vector<16xf32> to vector<16x1xf32>
    %cst_95 = arith.constant 3.200000e+01 : f32
    %249 = vector.broadcast %cst_95 : f32 to vector<16x1xf32>
    %250 = arith.divf %248, %249 : vector<16x1xf32>
    %251 = vector.broadcast %250 : vector<16x1xf32> to vector<16x32xf32>
    %252 = arith.subf %246, %251 : vector<16x32xf32>
    %253 = arith.mulf %252, %252 : vector<16x32xf32>
    %cst_96 = arith.constant dense<0.000000e+00> : vector<16xf32>
    %254 = vector.multi_reduction <add>, %253, %cst_96 [1] : vector<16x32xf32> to vector<16xf32>
    %255 = vector.shape_cast %254 : vector<16xf32> to vector<16x1xf32>
    %cst_97 = arith.constant 3.200000e+01 : f32
    %256 = vector.broadcast %cst_97 : f32 to vector<16x1xf32>
    %257 = arith.divf %255, %256 : vector<16x1xf32>
    %258 = vector.broadcast %250 : vector<16x1xf32> to vector<16x32xf32>
    %259 = arith.subf %246, %258 : vector<16x32xf32>
    %cst_98 = arith.constant 9.99999974E-6 : f32
    %260 = vector.broadcast %cst_98 : f32 to vector<16x1xf32>
    %261 = arith.addf %257, %260 : vector<16x1xf32>
    %262 = math.rsqrt %261 : vector<16x1xf32>
    %263 = vector.broadcast %262 : vector<16x1xf32> to vector<16x32xf32>
    %264 = arith.mulf %259, %263 : vector<16x32xf32>
    %265 = vector.shape_cast %7 : vector<32xf32> to vector<1x32xf32>
    %266 = vector.broadcast %265 : vector<1x32xf32> to vector<16x32xf32>
    %267 = arith.mulf %264, %266 : vector<16x32xf32>
    %268 = vector.shape_cast %9 : vector<32xf32> to vector<1x32xf32>
    %269 = vector.broadcast %268 : vector<1x32xf32> to vector<16x32xf32>
    %270 = arith.addf %267, %269 : vector<16x32xf32>
    %271 = arith.truncf %270 : vector<16x32xf32> to vector<16x32xbf16>
    %c0_99 = arith.constant 0 : index
    %c0_100 = arith.constant 0 : index
    %272 = vector.load %arg7[%c0_99, %c0_100] : memref<32x128xbf16, #tpu.memory_space<vmem>>, vector<32x128xbf16>
    %cst_101 = arith.constant dense<0.000000e+00> : vector<16x128xf32>
    %273 = tpu.matmul %271, %272, %cst_101 {dimension_numbers = #tpu.dot_dimension_numbers<[1], [0], [0], [1], [0, 0, 1, 1], [], []>} : vector<16x32xbf16>, vector<32x128xbf16>, vector<16x128xf32> -> vector<16x128xf32>
    %c0_102 = arith.constant 0 : index
    %c0_103 = arith.constant 0 : index
    %274 = vector.load %arg8[%c0_102, %c0_103] : memref<1x128xf32, #tpu.memory_space<vmem>>, vector<1x128xf32>
    %275 = vector.shape_cast %274 : vector<1x128xf32> to vector<128xf32>
    %276 = vector.shape_cast %275 : vector<128xf32> to vector<1x128xf32>
    %277 = vector.broadcast %276 : vector<1x128xf32> to vector<16x128xf32>
    %278 = arith.addf %273, %277 : vector<16x128xf32>
    %cst_104 = arith.constant 5.000000e-01 : f32
    %279 = vector.broadcast %cst_104 : f32 to vector<16x128xf32>
    %280 = arith.mulf %279, %278 : vector<16x128xf32>
    %cst_105 = arith.constant 0.707106769 : f32
    %281 = vector.broadcast %cst_105 : f32 to vector<16x128xf32>
    %282 = arith.mulf %278, %281 : vector<16x128xf32>
    %283 = math.erf %282 : vector<16x128xf32>
    %cst_106 = arith.constant 1.000000e+00 : f32
    %284 = vector.broadcast %cst_106 : f32 to vector<16x128xf32>
    %285 = arith.addf %284, %283 : vector<16x128xf32>
    %286 = arith.mulf %280, %285 : vector<16x128xf32>
    %287 = arith.truncf %286 : vector<16x128xf32> to vector<16x128xbf16>
    %c0_107 = arith.constant 0 : index
    %c0_108 = arith.constant 0 : index
    %288 = vector.load %arg9[%c0_107, %c0_108] : memref<128x32xbf16, #tpu.memory_space<vmem>>, vector<128x32xbf16>
    %cst_109 = arith.constant dense<0.000000e+00> : vector<16x32xf32>
    %289 = tpu.matmul %287, %288, %cst_109 {dimension_numbers = #tpu.dot_dimension_numbers<[1], [0], [0], [1], [0, 0, 1, 1], [], []>} : vector<16x128xbf16>, vector<128x32xbf16>, vector<16x32xf32> -> vector<16x32xf32>
    %290 = vector.shape_cast %13 : vector<32xf32> to vector<1x32xf32>
    %291 = vector.broadcast %290 : vector<1x32xf32> to vector<16x32xf32>
    %292 = arith.addf %289, %291 : vector<16x32xf32>
    %293 = arith.addf %246, %292 : vector<16x32xf32>
    %294 = vector.shape_cast %293 : vector<16x32xf32> to vector<2x8x32xf32>
    %c0_110 = arith.constant 0 : index
    %c0_111 = arith.constant 0 : index
    %c0_112 = arith.constant 0 : index
    %295 = vector.load %arg10[%c0_110, %c0_111, %c0_112] : memref<2x8x32xf32, #tpu.memory_space<vmem>>, vector<2x8x32xf32>
    tpu.vector_store %arg10[%c0_110, %c0_111, %c0_112], %294 {strides = array<i32>} : memref<2x8x32xf32, #tpu.memory_space<vmem>>, vector<2x8x32xf32>,
    return
  }
  func.func @transform_0(%arg0: i32) -> (i32, i32, i32) {
    %c0_i32 = arith.constant 0 : i32
    %c0_i32_0 = arith.constant 0 : i32
    %c0_i32_1 = arith.constant 0 : i32
    return %arg0, %c0_i32, %c0_i32_0 : i32, i32, i32
  }
  func.func @transform_1(%arg0: i32) -> (i32, i32) {
    %c0_i32 = arith.constant 0 : i32
    %c0_i32_0 = arith.constant 0 : i32
    %c0_i32_1 = arith.constant 0 : i32
    return %c0_i32, %c0_i32_0 : i32, i32
  }
  func.func @transform_2(%arg0: i32) -> (i32, i32) {
    %c0_i32 = arith.constant 0 : i32
    %c0_i32_0 = arith.constant 0 : i32
    %c0_i32_1 = arith.constant 0 : i32
    return %c0_i32, %c0_i32_0 : i32, i32
  }
  func.func @transform_3(%arg0: i32) -> (i32, i32) {
    %c0_i32 = arith.constant 0 : i32
    %c0_i32_0 = arith.constant 0 : i32
    %c0_i32_1 = arith.constant 0 : i32
    return %c0_i32, %c0_i32_0 : i32, i32
  }
  func.func @transform_4(%arg0: i32) -> (i32, i32) {
    %c0_i32 = arith.constant 0 : i32
    %c0_i32_0 = arith.constant 0 : i32
    %c0_i32_1 = arith.constant 0 : i32
    return %c0_i32, %c0_i32_0 : i32, i32
  }
  func.func @transform_5(%arg0: i32) -> (i32, i32, i32) {
    %c0_i32 = arith.constant 0 : i32
    %c0_i32_0 = arith.constant 0 : i32
    %c0_i32_1 = arith.constant 0 : i32
    %c0_i32_2 = arith.constant 0 : i32
    return %c0_i32, %c0_i32_0, %c0_i32_1 : i32, i32, i32
  }
  func.func @transform_6(%arg0: i32) -> (i32, i32) {
    %c0_i32 = arith.constant 0 : i32
    %c0_i32_0 = arith.constant 0 : i32
    %c0_i32_1 = arith.constant 0 : i32
    return %c0_i32, %c0_i32_0 : i32, i32
  }
  func.func @transform_7(%arg0: i32) -> (i32, i32) {
    %c0_i32 = arith.constant 0 : i32
    %c0_i32_0 = arith.constant 0 : i32
    %c0_i32_1 = arith.constant 0 : i32
    return %c0_i32, %c0_i32_0 : i32, i32
  }
  func.func @transform_8(%arg0: i32) -> (i32, i32) {
    %c0_i32 = arith.constant 0 : i32
    %c0_i32_0 = arith.constant 0 : i32
    %c0_i32_1 = arith.constant 0 : i32
    return %c0_i32, %c0_i32_0 : i32, i32
  }
  func.func @transform_9(%arg0: i32) -> (i32, i32, i32) {
    %c0_i32 = arith.constant 0 : i32
    %c0_i32_0 = arith.constant 0 : i32
    %c0_i32_1 = arith.constant 0 : i32
    return %arg0, %c0_i32, %c0_i32_0 : i32, i32, i32
  }
}

module attributes {stable_mosaic.version = 11 : i64} {
  func.func @nsa_block_kernel(%arg0: i32, %arg1: memref<2x8x32xf32, #tpu.memory_space<vmem>>, %arg2: memref<8x8xf32, #tpu.memory_space<vmem>>, %arg3: memref<6x32xf32, #tpu.memory_space<vmem>>, %arg4: memref<32x96xbf16, #tpu.memory_space<vmem>>, %arg5: memref<1x96xf32, #tpu.memory_space<vmem>>, %arg6: memref<4x8x32xbf16, #tpu.memory_space<vmem>>, %arg7: memref<32x128xbf16, #tpu.memory_space<vmem>>, %arg8: memref<1x128xf32, #tpu.memory_space<vmem>>, %arg9: memref<128x32xbf16, #tpu.memory_space<vmem>>, %arg10: memref<2x8x32xf32, #tpu.memory_space<vmem>>) attributes {dimension_semantics = [#tpu.dimension_semantics<parallel>], iteration_bounds = array<i64: 1>, scalar_prefetch = 0 : i64, scratch_operands = 0 : i64, tpu.core_type = #tpu.core_type<tc>, window_params = [{transform_indices = @transform_0, window_bounds = array<i64: 2, 8, 32>}, {pipeline_mode = #tpu.pipeline_mode<synchronous>, transform_indices = @transform_1, window_bounds = array<i64: 8, 8>}, {pipeline_mode = #tpu.pipeline_mode<synchronous>, transform_indices = @transform_2, window_bounds = array<i64: 6, 32>}, {pipeline_mode = #tpu.pipeline_mode<synchronous>, transform_indices = @transform_3, window_bounds = array<i64: 32, 96>}, {pipeline_mode = #tpu.pipeline_mode<synchronous>, transform_indices = @transform_4, window_bounds = array<i64: 1, 96>}, {pipeline_mode = #tpu.pipeline_mode<synchronous>, transform_indices = @transform_5, window_bounds = array<i64: 4, 8, 32>}, {pipeline_mode = #tpu.pipeline_mode<synchronous>, transform_indices = @transform_6, window_bounds = array<i64: 32, 128>}, {pipeline_mode = #tpu.pipeline_mode<synchronous>, transform_indices = @transform_7, window_bounds = array<i64: 1, 128>}, {pipeline_mode = #tpu.pipeline_mode<synchronous>, transform_indices = @transform_8, window_bounds = array<i64: 128, 32>}, {transform_indices = @transform_9, window_bounds = array<i64: 2, 8, 32>}]} {
    %c0 = arith.constant 0 : index
    %c0_0 = arith.constant 0 : index
    %c0_1 = arith.constant 0 : index
    %0 = vector.load %arg1[%c0, %c0_0, %c0_1] : memref<2x8x32xf32, #tpu.memory_space<vmem>>, vector<2x8x32xf32>
    %1 = vector.shape_cast %0 : vector<2x8x32xf32> to vector<16x32xf32>
    %c0_2 = arith.constant 0 : index
    %c0_3 = arith.constant 0 : index
    %2 = vector.load %arg3[%c0_2, %c0_3] : memref<6x32xf32, #tpu.memory_space<vmem>>, vector<1x32xf32>
    %3 = vector.shape_cast %2 : vector<1x32xf32> to vector<32xf32>
    %c1 = arith.constant 1 : index
    %c0_4 = arith.constant 0 : index
    %4 = vector.load %arg3[%c1, %c0_4] : memref<6x32xf32, #tpu.memory_space<vmem>>, vector<1x32xf32>
    %5 = vector.shape_cast %4 : vector<1x32xf32> to vector<32xf32>
    %c2 = arith.constant 2 : index
    %c0_5 = arith.constant 0 : index
    %6 = vector.load %arg3[%c2, %c0_5] : memref<6x32xf32, #tpu.memory_space<vmem>>, vector<1x32xf32>
    %7 = vector.shape_cast %6 : vector<1x32xf32> to vector<32xf32>
    %c3 = arith.constant 3 : index
    %c0_6 = arith.constant 0 : index
    %8 = vector.load %arg3[%c3, %c0_6] : memref<6x32xf32, #tpu.memory_space<vmem>>, vector<1x32xf32>
    %9 = vector.shape_cast %8 : vector<1x32xf32> to vector<32xf32>
    %c4 = arith.constant 4 : index
    %c0_7 = arith.constant 0 : index
    %10 = vector.load %arg3[%c4, %c0_7] : memref<6x32xf32, #tpu.memory_space<vmem>>, vector<1x32xf32>
    %11 = vector.shape_cast %10 : vector<1x32xf32> to vector<32xf32>
    %c5 = arith.constant 5 : index
    %c0_8 = arith.constant 0 : index
    %12 = vector.load %arg3[%c5, %c0_8] : memref<6x32xf32, #tpu.memory_space<vmem>>, vector<1x32xf32>
    %13 = vector.shape_cast %12 : vector<1x32xf32> to vector<32xf32>
    %c0_9 = arith.constant 0 : index
    %c0_10 = arith.constant 0 : index
    %14 = vector.load %arg2[%c0_9, %c0_10] : memref<8x8xf32, #tpu.memory_space<vmem>>, vector<8x8xf32>
    %cst = arith.constant dense<0.000000e+00> : vector<16xf32>
    %15 = vector.multi_reduction <add>, %1, %cst [1] : vector<16x32xf32> to vector<16xf32>
    %16 = vector.shape_cast %15 : vector<16xf32> to vector<16x1xf32>
    %cst_11 = arith.constant 3.200000e+01 : f32
    %17 = vector.broadcast %cst_11 : f32 to vector<16x1xf32>
    %18 = arith.divf %16, %17 : vector<16x1xf32>
    %19 = vector.broadcast %18 : vector<16x1xf32> to vector<16x32xf32>
    %20 = arith.subf %1, %19 : vector<16x32xf32>
    %21 = arith.mulf %20, %20 : vector<16x32xf32>
    %cst_12 = arith.constant dense<0.000000e+00> : vector<16xf32>
    %22 = vector.multi_reduction <add>, %21, %cst_12 [1] : vector<16x32xf32> to vector<16xf32>
    %23 = vector.shape_cast %22 : vector<16xf32> to vector<16x1xf32>
    %cst_13 = arith.constant 3.200000e+01 : f32
    %24 = vector.broadcast %cst_13 : f32 to vector<16x1xf32>
    %25 = arith.divf %23, %24 : vector<16x1xf32>
    %26 = vector.broadcast %18 : vector<16x1xf32> to vector<16x32xf32>
    %27 = arith.subf %1, %26 : vector<16x32xf32>
    %cst_14 = arith.constant 9.99999974E-6 : f32
    %28 = vector.broadcast %cst_14 : f32 to vector<16x1xf32>
    %29 = arith.addf %25, %28 : vector<16x1xf32>
    %30 = math.rsqrt %29 : vector<16x1xf32>
    %31 = vector.broadcast %30 : vector<16x1xf32> to vector<16x32xf32>
    %32 = arith.mulf %27, %31 : vector<16x32xf32>
    %33 = vector.shape_cast %3 : vector<32xf32> to vector<1x32xf32>
    %34 = vector.broadcast %33 : vector<1x32xf32> to vector<16x32xf32>
    %35 = arith.mulf %32, %34 : vector<16x32xf32>
    %36 = vector.shape_cast %5 : vector<32xf32> to vector<1x32xf32>
    %37 = vector.broadcast %36 : vector<1x32xf32> to vector<16x32xf32>
    %38 = arith.addf %35, %37 : vector<16x32xf32>
    %39 = arith.truncf %38 : vector<16x32xf32> to vector<16x32xbf16>
    %c0_15 = arith.constant 0 : index
    %c0_16 = arith.constant 0 : index
    %40 = vector.load %arg4[%c0_15, %c0_16] : memref<32x96xbf16, #tpu.memory_space<vmem>>, vector<32x96xbf16>
    %cst_17 = arith.constant dense<0.000000e+00> : vector<16x96xf32>
    %41 = tpu.matmul %39, %40, %cst_17 {dimension_numbers = #tpu.dot_dimension_numbers<[1], [0], [0], [1], [0, 0, 1, 1], [], []>} : vector<16x32xbf16>, vector<32x96xbf16>, vector<16x96xf32> -> vector<16x96xf32>
    %c0_18 = arith.constant 0 : index
    %c0_19 = arith.constant 0 : index
    %42 = vector.load %arg5[%c0_18, %c0_19] : memref<1x96xf32, #tpu.memory_space<vmem>>, vector<1x96xf32>
    %43 = vector.shape_cast %42 : vector<1x96xf32> to vector<96xf32>
    %44 = vector.shape_cast %43 : vector<96xf32> to vector<1x96xf32>
    %45 = vector.broadcast %44 : vector<1x96xf32> to vector<16x96xf32>
    %46 = arith.addf %41, %45 : vector<16x96xf32>
    %47 = arith.truncf %46 : vector<16x96xf32> to vector<16x96xbf16>
    %cst_20 = arith.constant 0.000000e+00 : f32
    %48 = vector.broadcast %cst_20 : f32 to vector<8x32xf32>
    %49 = vector.extract_strided_slice %47 {offsets = [0, 0], sizes = [8, 8], strides = [1, 1]} : vector<16x96xbf16> to vector<8x8xbf16>
    %50 = vector.extract_strided_slice %47 {offsets = [0, 32], sizes = [8, 8], strides = [1, 1]} : vector<16x96xbf16> to vector<8x8xbf16>
    %51 = vector.extract_strided_slice %47 {offsets = [0, 64], sizes = [8, 8], strides = [1, 1]} : vector<16x96xbf16> to vector<8x8xbf16>
    %cst_21 = arith.constant dense<0.000000e+00> : vector<8x8xf32>
    %52 = tpu.matmul %49, %50, %cst_21 {dimension_numbers = #tpu.dot_dimension_numbers<[1], [1], [0], [0], [0, 0, 1, 0], [], []>} : vector<8x8xbf16>, vector<8x8xbf16>, vector<8x8xf32> -> vector<8x8xf32>
    %cst_22 = arith.constant 0.353553385 : f32
    %53 = vector.broadcast %cst_22 : f32 to vector<8x8xf32>
    %54 = arith.mulf %52, %53 : vector<8x8xf32>
    %55 = arith.addf %54, %14 : vector<8x8xf32>
    %cst_23 = arith.constant dense<0xFF800000> : vector<8xf32>
    %56 = vector.multi_reduction <maximumf>, %55, %cst_23 [1] : vector<8x8xf32> to vector<8xf32>
    %57 = vector.shape_cast %56 : vector<8xf32> to vector<8x1xf32>
    %58 = vector.broadcast %57 : vector<8x1xf32> to vector<8x8xf32>
    %59 = arith.subf %55, %58 : vector<8x8xf32>
    %60 = math.exp %59 : vector<8x8xf32>
    %cst_24 = arith.constant dense<0.000000e+00> : vector<8xf32>
    %61 = vector.multi_reduction <add>, %60, %cst_24 [1] : vector<8x8xf32> to vector<8xf32>
    %62 = vector.shape_cast %61 : vector<8xf32> to vector<8x1xf32>
    %63 = tpu.reciprocal %62 {approx = true} : vector<8x1xf32> -> vector<8x1xf32>
    %64 = vector.broadcast %63 : vector<8x1xf32> to vector<8x8xf32>
    %65 = arith.mulf %60, %64 : vector<8x8xf32>
    %66 = arith.truncf %65 : vector<8x8xf32> to vector<8x8xbf16>
    %cst_25 = arith.constant dense<0.000000e+00> : vector<8x8xf32>
    %67 = tpu.matmul %66, %51, %cst_25 {dimension_numbers = #tpu.dot_dimension_numbers<[1], [0], [0], [1], [0, 0, 1, 1], [], []>} : vector<8x8xbf16>, vector<8x8xbf16>, vector<8x8xf32> -> vector<8x8xf32>
    %68 = arith.truncf %67 : vector<8x8xf32> to vector<8x8xbf16>
    %c0_26 = arith.constant 0 : index
    %c0_27 = arith.constant 0 : index
    %c0_28 = arith.constant 0 : index
    %69 = vector.load %arg6[%c0_26, %c0_27, %c0_28] : memref<4x8x32xbf16, #tpu.memory_space<vmem>>, vector<1x8x32xbf16>
    %70 = vector.shape_cast %69 : vector<1x8x32xbf16> to vector<8x32xbf16>
    %cst_29 = arith.constant dense<0.000000e+00> : vector<8x32xf32>
    %71 = tpu.matmul %68, %70, %cst_29 {dimension_numbers = #tpu.dot_dimension_numbers<[1], [0], [0], [1], [0, 0, 1, 1], [], []>} : vector<8x8xbf16>, vector<8x32xbf16>, vector<8x32xf32> -> vector<8x32xf32>
    %72 = arith.addf %48, %71 : vector<8x32xf32>
    %73 = vector.extract_strided_slice %47 {offsets = [0, 8], sizes = [8, 8], strides = [1, 1]} : vector<16x96xbf16> to vector<8x8xbf16>
    %74 = vector.extract_strided_slice %47 {offsets = [0, 40], sizes = [8, 8], strides = [1, 1]} : vector<16x96xbf16> to vector<8x8xbf16>
    %75 = vector.extract_strided_slice %47 {offsets = [0, 72], sizes = [8, 8], strides = [1, 1]} : vector<16x96xbf16> to vector<8x8xbf16>
    %cst_30 = arith.constant dense<0.000000e+00> : vector<8x8xf32>
    %76 = tpu.matmul %73, %74, %cst_30 {dimension_numbers = #tpu.dot_dimension_numbers<[1], [1], [0], [0], [0, 0, 1, 0], [], []>} : vector<8x8xbf16>, vector<8x8xbf16>, vector<8x8xf32> -> vector<8x8xf32>
    %cst_31 = arith.constant 0.353553385 : f32
    %77 = vector.broadcast %cst_31 : f32 to vector<8x8xf32>
    %78 = arith.mulf %76, %77 : vector<8x8xf32>
    %79 = arith.addf %78, %14 : vector<8x8xf32>
    %cst_32 = arith.constant dense<0xFF800000> : vector<8xf32>
    %80 = vector.multi_reduction <maximumf>, %79, %cst_32 [1] : vector<8x8xf32> to vector<8xf32>
    %81 = vector.shape_cast %80 : vector<8xf32> to vector<8x1xf32>
    %82 = vector.broadcast %81 : vector<8x1xf32> to vector<8x8xf32>
    %83 = arith.subf %79, %82 : vector<8x8xf32>
    %84 = math.exp %83 : vector<8x8xf32>
    %cst_33 = arith.constant dense<0.000000e+00> : vector<8xf32>
    %85 = vector.multi_reduction <add>, %84, %cst_33 [1] : vector<8x8xf32> to vector<8xf32>
    %86 = vector.shape_cast %85 : vector<8xf32> to vector<8x1xf32>
    %87 = tpu.reciprocal %86 {approx = true} : vector<8x1xf32> -> vector<8x1xf32>
    %88 = vector.broadcast %87 : vector<8x1xf32> to vector<8x8xf32>
    %89 = arith.mulf %84, %88 : vector<8x8xf32>
    %90 = arith.truncf %89 : vector<8x8xf32> to vector<8x8xbf16>
    %cst_34 = arith.constant dense<0.000000e+00> : vector<8x8xf32>
    %91 = tpu.matmul %90, %75, %cst_34 {dimension_numbers = #tpu.dot_dimension_numbers<[1], [0], [0], [1], [0, 0, 1, 1], [], []>} : vector<8x8xbf16>, vector<8x8xbf16>, vector<8x8xf32> -> vector<8x8xf32>
    %92 = arith.truncf %91 : vector<8x8xf32> to vector<8x8xbf16>
    %c1_35 = arith.constant 1 : index
    %c0_36 = arith.constant 0 : index
    %c0_37 = arith.constant 0 : index
    %93 = vector.load %arg6[%c1_35, %c0_36, %c0_37] : memref<4x8x32xbf16, #tpu.memory_space<vmem>>, vector<1x8x32xbf16>
    %94 = vector.shape_cast %93 : vector<1x8x32xbf16> to vector<8x32xbf16>
    %cst_38 = arith.constant dense<0.000000e+00> : vector<8x32xf32>
    %95 = tpu.matmul %92, %94, %cst_38 {dimension_numbers = #tpu.dot_dimension_numbers<[1], [0], [0], [1], [0, 0, 1, 1], [], []>} : vector<8x8xbf16>, vector<8x32xbf16>, vector<8x32xf32> -> vector<8x32xf32>
    %96 = arith.addf %72, %95 : vector<8x32xf32>
    %97 = vector.extract_strided_slice %47 {offsets = [0, 16], sizes = [8, 8], strides = [1, 1]} : vector<16x96xbf16> to vector<8x8xbf16>
    %98 = vector.extract_strided_slice %47 {offsets = [0, 48], sizes = [8, 8], strides = [1, 1]} : vector<16x96xbf16> to vector<8x8xbf16>
    %99 = vector.extract_strided_slice %47 {offsets = [0, 80], sizes = [8, 8], strides = [1, 1]} : vector<16x96xbf16> to vector<8x8xbf16>
    %cst_39 = arith.constant dense<0.000000e+00> : vector<8x8xf32>
    %100 = tpu.matmul %97, %98, %cst_39 {dimension_numbers = #tpu.dot_dimension_numbers<[1], [1], [0], [0], [0, 0, 1, 0], [], []>} : vector<8x8xbf16>, vector<8x8xbf16>, vector<8x8xf32> -> vector<8x8xf32>
    %cst_40 = arith.constant 0.353553385 : f32
    %101 = vector.broadcast %cst_40 : f32 to vector<8x8xf32>
    %102 = arith.mulf %100, %101 : vector<8x8xf32>
    %103 = arith.addf %102, %14 : vector<8x8xf32>
    %cst_41 = arith.constant dense<0xFF800000> : vector<8xf32>
    %104 = vector.multi_reduction <maximumf>, %103, %cst_41 [1] : vector<8x8xf32> to vector<8xf32>
    %105 = vector.shape_cast %104 : vector<8xf32> to vector<8x1xf32>
    %106 = vector.broadcast %105 : vector<8x1xf32> to vector<8x8xf32>
    %107 = arith.subf %103, %106 : vector<8x8xf32>
    %108 = math.exp %107 : vector<8x8xf32>
    %cst_42 = arith.constant dense<0.000000e+00> : vector<8xf32>
    %109 = vector.multi_reduction <add>, %108, %cst_42 [1] : vector<8x8xf32> to vector<8xf32>
    %110 = vector.shape_cast %109 : vector<8xf32> to vector<8x1xf32>
    %111 = tpu.reciprocal %110 {approx = true} : vector<8x1xf32> -> vector<8x1xf32>
    %112 = vector.broadcast %111 : vector<8x1xf32> to vector<8x8xf32>
    %113 = arith.mulf %108, %112 : vector<8x8xf32>
    %114 = arith.truncf %113 : vector<8x8xf32> to vector<8x8xbf16>
    %cst_43 = arith.constant dense<0.000000e+00> : vector<8x8xf32>
    %115 = tpu.matmul %114, %99, %cst_43 {dimension_numbers = #tpu.dot_dimension_numbers<[1], [0], [0], [1], [0, 0, 1, 1], [], []>} : vector<8x8xbf16>, vector<8x8xbf16>, vector<8x8xf32> -> vector<8x8xf32>
    %116 = arith.truncf %115 : vector<8x8xf32> to vector<8x8xbf16>
    %c2_44 = arith.constant 2 : index
    %c0_45 = arith.constant 0 : index
    %c0_46 = arith.constant 0 : index
    %117 = vector.load %arg6[%c2_44, %c0_45, %c0_46] : memref<4x8x32xbf16, #tpu.memory_space<vmem>>, vector<1x8x32xbf16>
    %118 = vector.shape_cast %117 : vector<1x8x32xbf16> to vector<8x32xbf16>
    %cst_47 = arith.constant dense<0.000000e+00> : vector<8x32xf32>
    %119 = tpu.matmul %116, %118, %cst_47 {dimension_numbers = #tpu.dot_dimension_numbers<[1], [0], [0], [1], [0, 0, 1, 1], [], []>} : vector<8x8xbf16>, vector<8x32xbf16>, vector<8x32xf32> -> vector<8x32xf32>
    %120 = arith.addf %96, %119 : vector<8x32xf32>
    %121 = vector.extract_strided_slice %47 {offsets = [0, 24], sizes = [8, 8], strides = [1, 1]} : vector<16x96xbf16> to vector<8x8xbf16>
    %122 = vector.extract_strided_slice %47 {offsets = [0, 56], sizes = [8, 8], strides = [1, 1]} : vector<16x96xbf16> to vector<8x8xbf16>
    %123 = vector.extract_strided_slice %47 {offsets = [0, 88], sizes = [8, 8], strides = [1, 1]} : vector<16x96xbf16> to vector<8x8xbf16>
    %cst_48 = arith.constant dense<0.000000e+00> : vector<8x8xf32>
    %124 = tpu.matmul %121, %122, %cst_48 {dimension_numbers = #tpu.dot_dimension_numbers<[1], [1], [0], [0], [0, 0, 1, 0], [], []>} : vector<8x8xbf16>, vector<8x8xbf16>, vector<8x8xf32> -> vector<8x8xf32>
    %cst_49 = arith.constant 0.353553385 : f32
    %125 = vector.broadcast %cst_49 : f32 to vector<8x8xf32>
    %126 = arith.mulf %124, %125 : vector<8x8xf32>
    %127 = arith.addf %126, %14 : vector<8x8xf32>
    %cst_50 = arith.constant dense<0xFF800000> : vector<8xf32>
    %128 = vector.multi_reduction <maximumf>, %127, %cst_50 [1] : vector<8x8xf32> to vector<8xf32>
    %129 = vector.shape_cast %128 : vector<8xf32> to vector<8x1xf32>
    %130 = vector.broadcast %129 : vector<8x1xf32> to vector<8x8xf32>
    %131 = arith.subf %127, %130 : vector<8x8xf32>
    %132 = math.exp %131 : vector<8x8xf32>
    %cst_51 = arith.constant dense<0.000000e+00> : vector<8xf32>
    %133 = vector.multi_reduction <add>, %132, %cst_51 [1] : vector<8x8xf32> to vector<8xf32>
    %134 = vector.shape_cast %133 : vector<8xf32> to vector<8x1xf32>
    %135 = tpu.reciprocal %134 {approx = true} : vector<8x1xf32> -> vector<8x1xf32>
    %136 = vector.broadcast %135 : vector<8x1xf32> to vector<8x8xf32>
    %137 = arith.mulf %132, %136 : vector<8x8xf32>
    %138 = arith.truncf %137 : vector<8x8xf32> to vector<8x8xbf16>
    %cst_52 = arith.constant dense<0.000000e+00> : vector<8x8xf32>
    %139 = tpu.matmul %138, %123, %cst_52 {dimension_numbers = #tpu.dot_dimension_numbers<[1], [0], [0], [1], [0, 0, 1, 1], [], []>} : vector<8x8xbf16>, vector<8x8xbf16>, vector<8x8xf32> -> vector<8x8xf32>
    %140 = arith.truncf %139 : vector<8x8xf32> to vector<8x8xbf16>
    %c3_53 = arith.constant 3 : index
    %c0_54 = arith.constant 0 : index
    %c0_55 = arith.constant 0 : index
    %141 = vector.load %arg6[%c3_53, %c0_54, %c0_55] : memref<4x8x32xbf16, #tpu.memory_space<vmem>>, vector<1x8x32xbf16>
    %142 = vector.shape_cast %141 : vector<1x8x32xbf16> to vector<8x32xbf16>
    %cst_56 = arith.constant dense<0.000000e+00> : vector<8x32xf32>
    %143 = tpu.matmul %140, %142, %cst_56 {dimension_numbers = #tpu.dot_dimension_numbers<[1], [0], [0], [1], [0, 0, 1, 1], [], []>} : vector<8x8xbf16>, vector<8x32xbf16>, vector<8x32xf32> -> vector<8x32xf32>
    %144 = arith.addf %120, %143 : vector<8x32xf32>
    %cst_57 = arith.constant 0.000000e+00 : f32
    %145 = vector.broadcast %cst_57 : f32 to vector<8x32xf32>
    %146 = vector.extract_strided_slice %47 {offsets = [8, 0], sizes = [8, 8], strides = [1, 1]} : vector<16x96xbf16> to vector<8x8xbf16>
    %147 = vector.extract_strided_slice %47 {offsets = [8, 32], sizes = [8, 8], strides = [1, 1]} : vector<16x96xbf16> to vector<8x8xbf16>
    %148 = vector.extract_strided_slice %47 {offsets = [8, 64], sizes = [8, 8], strides = [1, 1]} : vector<16x96xbf16> to vector<8x8xbf16>
    %cst_58 = arith.constant dense<0.000000e+00> : vector<8x8xf32>
    %149 = tpu.matmul %146, %147, %cst_58 {dimension_numbers = #tpu.dot_dimension_numbers<[1], [1], [0], [0], [0, 0, 1, 0], [], []>} : vector<8x8xbf16>, vector<8x8xbf16>, vector<8x8xf32> -> vector<8x8xf32>
    %cst_59 = arith.constant 0.353553385 : f32
    %150 = vector.broadcast %cst_59 : f32 to vector<8x8xf32>
    %151 = arith.mulf %149, %150 : vector<8x8xf32>
    %152 = arith.addf %151, %14 : vector<8x8xf32>
    %cst_60 = arith.constant dense<0xFF800000> : vector<8xf32>
    %153 = vector.multi_reduction <maximumf>, %152, %cst_60 [1] : vector<8x8xf32> to vector<8xf32>
    %154 = vector.shape_cast %153 : vector<8xf32> to vector<8x1xf32>
    %155 = vector.broadcast %154 : vector<8x1xf32> to vector<8x8xf32>
    %156 = arith.subf %152, %155 : vector<8x8xf32>
    %157 = math.exp %156 : vector<8x8xf32>
    %cst_61 = arith.constant dense<0.000000e+00> : vector<8xf32>
    %158 = vector.multi_reduction <add>, %157, %cst_61 [1] : vector<8x8xf32> to vector<8xf32>
    %159 = vector.shape_cast %158 : vector<8xf32> to vector<8x1xf32>
    %160 = tpu.reciprocal %159 {approx = true} : vector<8x1xf32> -> vector<8x1xf32>
    %161 = vector.broadcast %160 : vector<8x1xf32> to vector<8x8xf32>
    %162 = arith.mulf %157, %161 : vector<8x8xf32>
    %163 = arith.truncf %162 : vector<8x8xf32> to vector<8x8xbf16>
    %cst_62 = arith.constant dense<0.000000e+00> : vector<8x8xf32>
    %164 = tpu.matmul %163, %148, %cst_62 {dimension_numbers = #tpu.dot_dimension_numbers<[1], [0], [0], [1], [0, 0, 1, 1], [], []>} : vector<8x8xbf16>, vector<8x8xbf16>, vector<8x8xf32> -> vector<8x8xf32>
    %165 = arith.truncf %164 : vector<8x8xf32> to vector<8x8xbf16>
    %c0_63 = arith.constant 0 : index
    %c0_64 = arith.constant 0 : index
    %c0_65 = arith.constant 0 : index
    %166 = vector.load %arg6[%c0_63, %c0_64, %c0_65] : memref<4x8x32xbf16, #tpu.memory_space<vmem>>, vector<1x8x32xbf16>
    %167 = vector.shape_cast %166 : vector<1x8x32xbf16> to vector<8x32xbf16>
    %cst_66 = arith.constant dense<0.000000e+00> : vector<8x32xf32>
    %168 = tpu.matmul %165, %167, %cst_66 {dimension_numbers = #tpu.dot_dimension_numbers<[1], [0], [0], [1], [0, 0, 1, 1], [], []>} : vector<8x8xbf16>, vector<8x32xbf16>, vector<8x32xf32> -> vector<8x32xf32>
    %169 = arith.addf %145, %168 : vector<8x32xf32>
    %170 = vector.extract_strided_slice %47 {offsets = [8, 8], sizes = [8, 8], strides = [1, 1]} : vector<16x96xbf16> to vector<8x8xbf16>
    %171 = vector.extract_strided_slice %47 {offsets = [8, 40], sizes = [8, 8], strides = [1, 1]} : vector<16x96xbf16> to vector<8x8xbf16>
    %172 = vector.extract_strided_slice %47 {offsets = [8, 72], sizes = [8, 8], strides = [1, 1]} : vector<16x96xbf16> to vector<8x8xbf16>
    %cst_67 = arith.constant dense<0.000000e+00> : vector<8x8xf32>
    %173 = tpu.matmul %170, %171, %cst_67 {dimension_numbers = #tpu.dot_dimension_numbers<[1], [1], [0], [0], [0, 0, 1, 0], [], []>} : vector<8x8xbf16>, vector<8x8xbf16>, vector<8x8xf32> -> vector<8x8xf32>
    %cst_68 = arith.constant 0.353553385 : f32
    %174 = vector.broadcast %cst_68 : f32 to vector<8x8xf32>
    %175 = arith.mulf %173, %174 : vector<8x8xf32>
    %176 = arith.addf %175, %14 : vector<8x8xf32>
    %cst_69 = arith.constant dense<0xFF800000> : vector<8xf32>
    %177 = vector.multi_reduction <maximumf>, %176, %cst_69 [1] : vector<8x8xf32> to vector<8xf32>
    %178 = vector.shape_cast %177 : vector<8xf32> to vector<8x1xf32>
    %179 = vector.broadcast %178 : vector<8x1xf32> to vector<8x8xf32>
    %180 = arith.subf %176, %179 : vector<8x8xf32>
    %181 = math.exp %180 : vector<8x8xf32>
    %cst_70 = arith.constant dense<0.000000e+00> : vector<8xf32>
    %182 = vector.multi_reduction <add>, %181, %cst_70 [1] : vector<8x8xf32> to vector<8xf32>
    %183 = vector.shape_cast %182 : vector<8xf32> to vector<8x1xf32>
    %184 = tpu.reciprocal %183 {approx = true} : vector<8x1xf32> -> vector<8x1xf32>
    %185 = vector.broadcast %184 : vector<8x1xf32> to vector<8x8xf32>
    %186 = arith.mulf %181, %185 : vector<8x8xf32>
    %187 = arith.truncf %186 : vector<8x8xf32> to vector<8x8xbf16>
    %cst_71 = arith.constant dense<0.000000e+00> : vector<8x8xf32>
    %188 = tpu.matmul %187, %172, %cst_71 {dimension_numbers = #tpu.dot_dimension_numbers<[1], [0], [0], [1], [0, 0, 1, 1], [], []>} : vector<8x8xbf16>, vector<8x8xbf16>, vector<8x8xf32> -> vector<8x8xf32>
    %189 = arith.truncf %188 : vector<8x8xf32> to vector<8x8xbf16>
    %c1_72 = arith.constant 1 : index
    %c0_73 = arith.constant 0 : index
    %c0_74 = arith.constant 0 : index
    %190 = vector.load %arg6[%c1_72, %c0_73, %c0_74] : memref<4x8x32xbf16, #tpu.memory_space<vmem>>, vector<1x8x32xbf16>
    %191 = vector.shape_cast %190 : vector<1x8x32xbf16> to vector<8x32xbf16>
    %cst_75 = arith.constant dense<0.000000e+00> : vector<8x32xf32>
    %192 = tpu.matmul %189, %191, %cst_75 {dimension_numbers = #tpu.dot_dimension_numbers<[1], [0], [0], [1], [0, 0, 1, 1], [], []>} : vector<8x8xbf16>, vector<8x32xbf16>, vector<8x32xf32> -> vector<8x32xf32>
    %193 = arith.addf %169, %192 : vector<8x32xf32>
    %194 = vector.extract_strided_slice %47 {offsets = [8, 16], sizes = [8, 8], strides = [1, 1]} : vector<16x96xbf16> to vector<8x8xbf16>
    %195 = vector.extract_strided_slice %47 {offsets = [8, 48], sizes = [8, 8], strides = [1, 1]} : vector<16x96xbf16> to vector<8x8xbf16>
    %196 = vector.extract_strided_slice %47 {offsets = [8, 80], sizes = [8, 8], strides = [1, 1]} : vector<16x96xbf16> to vector<8x8xbf16>
    %cst_76 = arith.constant dense<0.000000e+00> : vector<8x8xf32>
    %197 = tpu.matmul %194, %195, %cst_76 {dimension_numbers = #tpu.dot_dimension_numbers<[1], [1], [0], [0], [0, 0, 1, 0], [], []>} : vector<8x8xbf16>, vector<8x8xbf16>, vector<8x8xf32> -> vector<8x8xf32>
    %cst_77 = arith.constant 0.353553385 : f32
    %198 = vector.broadcast %cst_77 : f32 to vector<8x8xf32>
    %199 = arith.mulf %197, %198 : vector<8x8xf32>
    %200 = arith.addf %199, %14 : vector<8x8xf32>
    %cst_78 = arith.constant dense<0xFF800000> : vector<8xf32>
    %201 = vector.multi_reduction <maximumf>, %200, %cst_78 [1] : vector<8x8xf32> to vector<8xf32>
    %202 = vector.shape_cast %201 : vector<8xf32> to vector<8x1xf32>
    %203 = vector.broadcast %202 : vector<8x1xf32> to vector<8x8xf32>
    %204 = arith.subf %200, %203 : vector<8x8xf32>
    %205 = math.exp %204 : vector<8x8xf32>
    %cst_79 = arith.constant dense<0.000000e+00> : vector<8xf32>
    %206 = vector.multi_reduction <add>, %205, %cst_79 [1] : vector<8x8xf32> to vector<8xf32>
    %207 = vector.shape_cast %206 : vector<8xf32> to vector<8x1xf32>
    %208 = tpu.reciprocal %207 {approx = true} : vector<8x1xf32> -> vector<8x1xf32>
    %209 = vector.broadcast %208 : vector<8x1xf32> to vector<8x8xf32>
    %210 = arith.mulf %205, %209 : vector<8x8xf32>
    %211 = arith.truncf %210 : vector<8x8xf32> to vector<8x8xbf16>
    %cst_80 = arith.constant dense<0.000000e+00> : vector<8x8xf32>
    %212 = tpu.matmul %211, %196, %cst_80 {dimension_numbers = #tpu.dot_dimension_numbers<[1], [0], [0], [1], [0, 0, 1, 1], [], []>} : vector<8x8xbf16>, vector<8x8xbf16>, vector<8x8xf32> -> vector<8x8xf32>
    %213 = arith.truncf %212 : vector<8x8xf32> to vector<8x8xbf16>
    %c2_81 = arith.constant 2 : index
    %c0_82 = arith.constant 0 : index
    %c0_83 = arith.constant 0 : index
    %214 = vector.load %arg6[%c2_81, %c0_82, %c0_83] : memref<4x8x32xbf16, #tpu.memory_space<vmem>>, vector<1x8x32xbf16>
    %215 = vector.shape_cast %214 : vector<1x8x32xbf16> to vector<8x32xbf16>
    %cst_84 = arith.constant dense<0.000000e+00> : vector<8x32xf32>
    %216 = tpu.matmul %213, %215, %cst_84 {dimension_numbers = #tpu.dot_dimension_numbers<[1], [0], [0], [1], [0, 0, 1, 1], [], []>} : vector<8x8xbf16>, vector<8x32xbf16>, vector<8x32xf32> -> vector<8x32xf32>
    %217 = arith.addf %193, %216 : vector<8x32xf32>
    %218 = vector.extract_strided_slice %47 {offsets = [8, 24], sizes = [8, 8], strides = [1, 1]} : vector<16x96xbf16> to vector<8x8xbf16>
    %219 = vector.extract_strided_slice %47 {offsets = [8, 56], sizes = [8, 8], strides = [1, 1]} : vector<16x96xbf16> to vector<8x8xbf16>
    %220 = vector.extract_strided_slice %47 {offsets = [8, 88], sizes = [8, 8], strides = [1, 1]} : vector<16x96xbf16> to vector<8x8xbf16>
    %cst_85 = arith.constant dense<0.000000e+00> : vector<8x8xf32>
    %221 = tpu.matmul %218, %219, %cst_85 {dimension_numbers = #tpu.dot_dimension_numbers<[1], [1], [0], [0], [0, 0, 1, 0], [], []>} : vector<8x8xbf16>, vector<8x8xbf16>, vector<8x8xf32> -> vector<8x8xf32>
    %cst_86 = arith.constant 0.353553385 : f32
    %222 = vector.broadcast %cst_86 : f32 to vector<8x8xf32>
    %223 = arith.mulf %221, %222 : vector<8x8xf32>
    %224 = arith.addf %223, %14 : vector<8x8xf32>
    %cst_87 = arith.constant dense<0xFF800000> : vector<8xf32>
    %225 = vector.multi_reduction <maximumf>, %224, %cst_87 [1] : vector<8x8xf32> to vector<8xf32>
    %226 = vector.shape_cast %225 : vector<8xf32> to vector<8x1xf32>
    %227 = vector.broadcast %226 : vector<8x1xf32> to vector<8x8xf32>
    %228 = arith.subf %224, %227 : vector<8x8xf32>
    %229 = math.exp %228 : vector<8x8xf32>
    %cst_88 = arith.constant dense<0.000000e+00> : vector<8xf32>
    %230 = vector.multi_reduction <add>, %229, %cst_88 [1] : vector<8x8xf32> to vector<8xf32>
    %231 = vector.shape_cast %230 : vector<8xf32> to vector<8x1xf32>
    %232 = tpu.reciprocal %231 {approx = true} : vector<8x1xf32> -> vector<8x1xf32>
    %233 = vector.broadcast %232 : vector<8x1xf32> to vector<8x8xf32>
    %234 = arith.mulf %229, %233 : vector<8x8xf32>
    %235 = arith.truncf %234 : vector<8x8xf32> to vector<8x8xbf16>
    %cst_89 = arith.constant dense<0.000000e+00> : vector<8x8xf32>
    %236 = tpu.matmul %235, %220, %cst_89 {dimension_numbers = #tpu.dot_dimension_numbers<[1], [0], [0], [1], [0, 0, 1, 1], [], []>} : vector<8x8xbf16>, vector<8x8xbf16>, vector<8x8xf32> -> vector<8x8xf32>
    %237 = arith.truncf %236 : vector<8x8xf32> to vector<8x8xbf16>
    %c3_90 = arith.constant 3 : index
    %c0_91 = arith.constant 0 : index
    %c0_92 = arith.constant 0 : index
    %238 = vector.load %arg6[%c3_90, %c0_91, %c0_92] : memref<4x8x32xbf16, #tpu.memory_space<vmem>>, vector<1x8x32xbf16>
    %239 = vector.shape_cast %238 : vector<1x8x32xbf16> to vector<8x32xbf16>
    %cst_93 = arith.constant dense<0.000000e+00> : vector<8x32xf32>
    %240 = tpu.matmul %237, %239, %cst_93 {dimension_numbers = #tpu.dot_dimension_numbers<[1], [0], [0], [1], [0, 0, 1, 1], [], []>} : vector<8x8xbf16>, vector<8x32xbf16>, vector<8x32xf32> -> vector<8x32xf32>
    %241 = arith.addf %217, %240 : vector<8x32xf32>
    %242 = tpu.concatenate %144, %241 in 0 : vector<8x32xf32>, vector<8x32xf32> -> vector<16x32xf32>
    %243 = arith.addf %1, %242 : vector<16x32xf32>
    %244 = vector.shape_cast %11 : vector<32xf32> to vector<1x32xf32>
    %245 = vector.broadcast %244 : vector<1x32xf32> to vector<16x32xf32>
    %246 = arith.addf %243, %245 : vector<16x32xf32>
    %cst_94 = arith.constant dense<0.000000e+00> : vector<16xf32>
    %247 = vector.multi_reduction <add>, %246, %cst_94 [1] : vector<16x32xf32> to vector<16xf32>
    %248 = vector.shape_cast %247 : vector<16xf32> to vector<16x1xf32>
    %cst_95 = arith.constant 3.200000e+01 : f32
    %249 = vector.broadcast %cst_95 : f32 to vector<16x1xf32>
    %250 = arith.divf %248, %249 : vector<16x1xf32>
    %251 = vector.broadcast %250 : vector<16x1xf32> to vector<16x32xf32>
    %252 = arith.subf %246, %251 : vector<16x32xf32>
    %253 = arith.mulf %252, %252 : vector<16x32xf32>
    %cst_96 = arith.constant dense<0.000000e+00> : vector<16xf32>
    %254 = vector.multi_reduction <add>, %253, %cst_96 [1] : vector<16x32xf32> to vector<16xf32>
    %255 = vector.shape_cast %254 : vector<16xf32> to vector<16x1xf32>
    %cst_97 = arith.constant 3.200000e+01 : f32
    %256 = vector.broadcast %cst_97 : f32 to vector<16x1xf32>
    %257 = arith.divf %255, %256 : vector<16x1xf32>
    %258 = vector.broadcast %250 : vector<16x1xf32> to vector<16x32xf32>
    %259 = arith.subf %246, %258 : vector<16x32xf32>
    %cst_98 = arith.constant 9.99999974E-6 : f32
    %260 = vector.broadcast %cst_98 : f32 to vector<16x1xf32>
    %261 = arith.addf %257, %260 : vector<16x1xf32>
    %262 = math.rsqrt %261 : vector<16x1xf32>
    %263 = vector.broadcast %262 : vector<16x1xf32> to vector<16x32xf32>
    %264 = arith.mulf %259, %263 : vector<16x32xf32>
    %265 = vector.shape_cast %7 : vector<32xf32> to vector<1x32xf32>
    %266 = vector.broadcast %265 : vector<1x32xf32> to vector<16x32xf32>
    %267 = arith.mulf %264, %266 : vector<16x32xf32>
    %268 = vector.shape_cast %9 : vector<32xf32> to vector<1x32xf32>
    %269 = vector.broadcast %268 : vector<1x32xf32> to vector<16x32xf32>
    %270 = arith.addf %267, %269 : vector<16x32xf32>
    %271 = arith.truncf %270 : vector<16x32xf32> to vector<16x32xbf16>
    %c0_99 = arith.constant 0 : index
    %c0_100 = arith.constant 0 : index
    %272 = vector.load %arg7[%c0_99, %c0_100] : memref<32x128xbf16, #tpu.memory_space<vmem>>, vector<32x128xbf16>
    %cst_101 = arith.constant dense<0.000000e+00> : vector<16x128xf32>
    %273 = tpu.matmul %271, %272, %cst_101 {dimension_numbers = #tpu.dot_dimension_numbers<[1], [0], [0], [1], [0, 0, 1, 1], [], []>} : vector<16x32xbf16>, vector<32x128xbf16>, vector<16x128xf32> -> vector<16x128xf32>
    %c0_102 = arith.constant 0 : index
    %c0_103 = arith.constant 0 : index
    %274 = vector.load %arg8[%c0_102, %c0_103] : memref<1x128xf32, #tpu.memory_space<vmem>>, vector<1x128xf32>
    %275 = vector.shape_cast %274 : vector<1x128xf32> to vector<128xf32>
    %276 = vector.shape_cast %275 : vector<128xf32> to vector<1x128xf32>
    %277 = vector.broadcast %276 : vector<1x128xf32> to vector<16x128xf32>
    %278 = arith.addf %273, %277 : vector<16x128xf32>
    %cst_104 = arith.constant 5.000000e-01 : f32
    %279 = vector.broadcast %cst_104 : f32 to vector<16x128xf32>
    %280 = arith.mulf %279, %278 : vector<16x128xf32>
    %cst_105 = arith.constant 0.707106769 : f32
    %281 = vector.broadcast %cst_105 : f32 to vector<16x128xf32>
    %282 = arith.mulf %278, %281 : vector<16x128xf32>
    %283 = math.erf %282 : vector<16x128xf32>
    %cst_106 = arith.constant 1.000000e+00 : f32
    %284 = vector.broadcast %cst_106 : f32 to vector<16x128xf32>
    %285 = arith.addf %284, %283 : vector<16x128xf32>
    %286 = arith.mulf %280, %285 : vector<16x128xf32>
    %287 = arith.truncf %286 : vector<16x128xf32> to vector<16x128xbf16>
    %c0_107 = arith.constant 0 : index
    %c0_108 = arith.constant 0 : index
    %288 = vector.load %arg9[%c0_107, %c0_108] : memref<128x32xbf16, #tpu.memory_space<vmem>>, vector<128x32xbf16>
    %cst_109 = arith.constant dense<0.000000e+00> : vector<16x32xf32>
    %289 = tpu.matmul %287, %288, %cst_109 {dimension_numbers = #tpu.dot_dimension_numbers<[1], [0], [0], [1], [0, 0, 1, 1], [], []>} : vector<16x128xbf16>, vector<128x32xbf16>, vector<16x32xf32> -> vector<16x32xf32>
    %290 = vector.shape_cast %13 : vector<32xf32> to vector<1x32xf32>
    %291 = vector.broadcast %290 : vector<1x32xf32> to vector<16x32xf32>
    %292 = arith.addf %289, %291 : vector<16x32xf32>
    %293 = arith.addf %246, %292 : vector<16x32xf32>
    %294 = vector.shape_cast %293 : vector<16x32xf32> to vector<2x8x32xf32>
    %c0_110 = arith.constant 0 : index
    %c0_111 = arith.constant 0 : index
    %c0_112 = arith.constant 0 : index
    %295 = vector.load %arg10[%c0_110, %c0_111, %c0_112] : memref<2x8x32xf32, #tpu.memory_space<vmem>>, vector<2x8x32xf32>
    tpu.vector_store %arg10[%c0_110, %c0_111, %c0_112], %294 {strides = array<i32>} : memref<2x8x32xf32, #tpu.memory_space<vmem>>, vector<2x8x32xf32>,
    return
  }
  func.func @transform_0(%arg0: i32) -> (i32, i32, i32) {
    %c0_i32 = arith.constant 0 : i32
    %c0_i32_0 = arith.constant 0 : i32
    %c0_i32_1 = arith.constant 0 : i32
    return %arg0, %c0_i32, %c0_i32_0 : i32, i32, i32
  }
  func.func @transform_1(%arg0: i32) -> (i32, i32) {
    %c0_i32 = arith.constant 0 : i32
    %c0_i32_0 = arith.constant 0 : i32
    %c0_i32_1 = arith.constant 0 : i32
    return %c0_i32, %c0_i32_0 : i32, i32
  }
  func.func @transform_2(%arg0: i32) -> (i32, i32) {
    %c0_i32 = arith.constant 0 : i32
    %c0_i32_0 = arith.constant 0 : i32
    %c0_i32_1 = arith.constant 0 : i32
    return %c0_i32, %c0_i32_0 : i32, i32
  }
  func.func @transform_3(%arg0: i32) -> (i32, i32) {
    %c0_i32 = arith.constant 0 : i32
    %c0_i32_0 = arith.constant 0 : i32
    %c0_i32_1 = arith.constant 0 : i32
    return %c0_i32, %c0_i32_0 : i32, i32
  }
  func.func @transform_4(%arg0: i32) -> (i32, i32) {
    %c0_i32 = arith.constant 0 : i32
    %c0_i32_0 = arith.constant 0 : i32
    %c0_i32_1 = arith.constant 0 : i32
    return %c0_i32, %c0_i32_0 : i32, i32
  }
  func.func @transform_5(%arg0: i32) -> (i32, i32, i32) {
    %c0_i32 = arith.constant 0 : i32
    %c0_i32_0 = arith.constant 0 : i32
    %c0_i32_1 = arith.constant 0 : i32
    %c0_i32_2 = arith.constant 0 : i32
    return %c0_i32, %c0_i32_0, %c0_i32_1 : i32, i32, i32
  }
  func.func @transform_6(%arg0: i32) -> (i32, i32) {
    %c0_i32 = arith.constant 0 : i32
    %c0_i32_0 = arith.constant 0 : i32
    %c0_i32_1 = arith.constant 0 : i32
    return %c0_i32, %c0_i32_0 : i32, i32
  }
  func.func @transform_7(%arg0: i32) -> (i32, i32) {
    %c0_i32 = arith.constant 0 : i32
    %c0_i32_0 = arith.constant 0 : i32
    %c0_i32_1 = arith.constant 0 : i32
    return %c0_i32, %c0_i32_0 : i32, i32
  }
  func.func @transform_8(%arg0: i32) -> (i32, i32) {
    %c0_i32 = arith.constant 0 : i32
    %c0_i32_0 = arith.constant 0 : i32
    %c0_i32_1 = arith.constant 0 : i32
    return %c0_i32, %c0_i32_0 : i32, i32
  }
  func.func @transform_9(%arg0: i32) -> (i32, i32, i32) {
    %c0_i32 = arith.constant 0 : i32
    %c0_i32_0 = arith.constant 0 : i32
    %c0_i32_1 = arith.constant 0 : i32
    return %arg0, %c0_i32, %c0_i32_0 : i32, i32, i32
  }
}

</mosaic_0001>

<bundles_post_ra>
// kernel: tpu_custom_call.1
= control target key start
LH: loop header
LB: loop body
LE: loop exit
PB: predicated region body
PF: predicated region fallthrough
CT: control target
= control target key end

     0   :  { %vm43_vm0 = vcmask 261120   ;;  %s2495_s0 = inlined_call_operand.vmem [shape: f32[2,8,32], index: 0, kind: input, shape index: {}]   ;;  %s2496_s1 = inlined_call_operand.vmem [shape: f32[8,8], index: 1, kind: input, shape index: {}]   ;;  %s2497_s2 = inlined_call_operand.vmem [shape: f32[6,32], index: 2, kind: input, shape index: {}]   ;;  %s2498_s3 = inlined_call_operand.vmem [shape: bf16[32,96], index: 3, kind: input, shape index: {}]   ;;  %s2499_s4 = inlined_call_operand.vmem [shape: f32[1,96], index: 4, kind: input, shape index: {}]   ;;  %s2500_s5 = inlined_call_operand.vmem [shape: bf16[4,8,32], index: 5, kind: input, shape index: {}]   ;;  %s2501_s6 = inlined_call_operand.vmem [shape: bf16[32,128], index: 6, kind: input, shape index: {}]   ;;  %s2502_s7 = inlined_call_operand.vmem [shape: f32[1,128], index: 7, kind: input, shape index: {}]   ;;  %s2503_s8 = inlined_call_operand.vmem [shape: bf16[128,32], index: 8, kind: input, shape index: {}]   ;;  %s2504_s9 = inlined_call_operand.hbm [shape: f32[2,8,32], index: 9, kind: output, shape index: {}]  }
   0x1   :  { %v2134_v0 = vld [vmem:[%s2495_s0] sm:$0xff]  ;;  %v2139_v1 = vld [vmem:[%s2495_s0 + $0x8] sm:$0xff] }
   0x2   :  { %v44_v2 = vsel %vm43_vm0, %v2134_v0, 0.0  ;;  %v47_v3 = vsel %vm43_vm0, %v2139_v1, 0.0 }
   0x3   :  { %45 = vadd.xlane.f32.xlu0 %v44_v2 }
   0x7   :  { %48 = vadd.xlane.f32.xlu0 %v47_v3 }
   0x8   :  { %14 = vsyncpa [#allocation3], 0  ;;  %v1985_v14 = vld [vmem:[%s2498_s3] sm:$0xff]   ;;  %v2065_v15 = vmov 0.0   ;;  %v1986_v16 = vld [vmem:[%s2498_s3 + $0x8] sm:$0xff]   ;;  %vm2066_vm1 = vmmov 0  }
   0x9   :  { %1789 = vmatprep.subr.bf16.mxu1 %v2065_v15  ;;  %1815 = vmatprep.subr.bf16.mxu0 %v2065_v15  ;;  %v1677_v25 = vld [vmem:[%s2497_s2] ss:$0 sm:$0xff]  ;;  %v1678_v29 = vld [vmem:[%s2497_s2 + $0x1] ss:$0 sm:$0xff]  ;;  %s2067_s21 = smov 96   ;;  %s2068_s22 = smov 88  }
   0xa   :  { %1790 = vmatpush3.bf16.msra.mxu1 %v1985_v14  ;;  %1793 = vmatprep.mubr.msk.bf16.mxu1 %vm2066_vm1, %v2065_v15  ;;  %v1679_v34 = vld [vmem:[%s2499_s4] ss:$0 sm:$0xff]  ;;  %vm155_vm2 = vcmask 64512   ;;  %s2069_s24 = smov 64   ;;  %vm221_vm3 = vcmask 1043456   ;;  %s2071_s25 = smov 56  }
   0xb   :  { %1791 = vmatprep.subr.bf16.mxu1 %v2065_v15  ;;  %1817 = vmatprep.mubr.msk.bf16.mxu0 %vm2066_vm1, %v2065_v15  ;;  %v2190_v45 = vld [vmem:[%s2496_s1] sm:$0xff]  ;;  %s2070_s1 = smov 120   ;;  %s2072_s26 = smov 112  }
   0xc   :  { %s2073_s27 = smov 80   ;;  %s2074_s11 = smov 72  }
   0xd   :  { %s2075_s12 = smov 104   ;;  %s2076_s0 = smov 48  }
   0xe   :  { %1792 = vmatpush3.bf16.msra.mxu1 %v1986_v16  ;;  %s2077_s15 = smov 40   ;;  %s2078_s17 = smov [#allocation2]  }
   0xf   :  { %1797 = vmatprep.subr.bf16.mxu1 %v2065_v15  ;;  %s1666_s18 = sshll.u32 %s2078_s17, 4  ;;  %s1667_s18 = int_to_ptr.vmem [resolvable:$true] %s1666_s18 }
  0x10   :  { %s2041_s19 = scalar_lea.vmem %s1667_s18, 256  ;;  %p2046_p1 = scmp.lt.s32.totalorder %s1667_s18, %s1667_s18 }
  0x11   :  { %p2042_p0 = scmp.ne.s32.totalorder %s1667_s18, %s2041_s19  ;;  %p2047_p2 = scmp.lt.s32.totalorder %s2041_s19, %s2041_s19 }
  0x13   :  { %p2048_p3 = por %p2047_p2, %p2046_p1 }
  0x15   :  { %p2049_p4 = pnand %p2048_p3, %p2042_p0 }
  0x90   :  { %v46_v4 = vpop.xlane.xlu0 %45 }
  0x91   :  { %v51_v5 = vmul.f32 0.03125, %v46_v4 }
  0x93   :  { %v53_v6 = vsub.f32 %v2134_v0, %v51_v5 }
  0x94   :  { %v49_v7 = vpop.xlane.xlu0 %48 }
  0x95   :  { %v52_v8 = vmul.f32 0.03125, %v49_v7  ;;  %v55_v9 = vmul.f32 %v53_v6, %v53_v6 }
  0x97   :  { %v54_v10 = vsub.f32 %v2139_v1, %v52_v8  ;;  %v57_v11 = vsel %vm43_vm0, %v55_v9, 0.0 }
  0x98   :  { %58 = vadd.xlane.f32.xlu1 %v57_v11 }
  0x99   :  { %v56_v12 = vmul.f32 %v54_v10, %v54_v10 }
  0x9b   :  { %v60_v13 = vsel %vm43_vm0, %v56_v12, 0.0 }
  0x9c   :  { %61 = vadd.xlane.f32.xlu1 %v60_v13 }
 0x125   :  { %v59_v17 = vpop.xlane.xlu1 %58 }
 0x126   :  { %v63_v18 = vmul.f32 0.03125, %v59_v17 }
 0x128   :  { %v65_v19 = vadd.f32 1e-05, %v63_v18 }
 0x129   :  { %v62_v20 = vpop.xlane.xlu1 %61 }
 0x12a   :  { %1997 = vrsqrt.f32 %v65_v19  ;;  %v64_v21 = vmul.f32 0.03125, %v62_v20 }
 0x12c   :  { %v66_v22 = vadd.f32 1e-05, %v64_v21 }
 0x12e   :  { %1999 = vrsqrt.f32 %v66_v22 }
 0x134   :  { %v1998_v23 = vpop.eup %1997 }
 0x135   :  { %v69_v24 = vmul.f32 %v1998_v23, %v53_v6  ;;  %v1687_v23 = vld [vmem:[%s2500_s5 + $0x4] sm:$0xf] }
 0x137   :  { %v75_v28 = vmul.f32 %v1677_v25, %v69_v24  ;;  %v2224_v24 = vsel %vm221_vm3, %v1687_v23, 0 }
 0x138   :  { %v2000_v26 = vpop.eup %1999 }
 0x139   :  { %v70_v27 = vmul.f32 %v2000_v26, %v54_v10  ;;  %v81_v31 = vadd.f32 %v1678_v29, %v75_v28 }
 0x13b   :  { %v76_v30 = vmul.f32 %v1677_v25, %v70_v27  ;;  %v266_v27 = vld [vmem:[%s2500_s5] sm:$0xf] }
 0x13d   :  { %v82_v32 = vadd.f32 %v1678_v29, %v76_v30  ;;  %v2232_v30 = vsel %vm221_vm3, %v266_v27, 0 }
 0x13f   :  { %v83_v33 = vpack.c.bf16 %v82_v32, %v81_v31 }
 0x141   :  { %1794 = vmatmul.mubr.msk.bf16.vlgmr.msra.gmra.mrb[0].mxu1 %vm43_vm0, %v83_v33 }
 0x142   :  { %1799 = vmatprep.mubr.msk.bf16.mxu1 %vm2066_vm1, %v2065_v15 }
 0x214   :  { %v144_v35 = vpop.f32.mrb[0].mxu1 }
 0x215   :  { %v1795_v36 = vpop.f32.mrb[1].mxu1  ;;  %v145_v38 = vadd.f32 %v1679_v34, %v144_v35 }
 0x216   :  { %v147_v37 = vpop.f32.mrb[2].mxu1 }
 0x217   :  { %v148_v39 = vadd.f32 %v1679_v34, %v147_v37  ;;  %v1796_v40 = vpop.f32.mrb[3].mxu1 }
 0x219   :  { %v2175_v41 = vpack.c.bf16 %v148_v39, %v145_v38 }
 0x21b   :  { %153 = vrot.lane.b32.xlu0 %v2175_v41, %s2067_s21 }
 0x21f   :  { %269 = vrot.lane.b32.xlu0 %v2175_v41, %s2068_s22 }
 0x28d   :  { %v154_v42 = vpop.permute.xlu0 %153 }
 0x28e   :  { %v160_v43 = vsel %vm155_vm2, %v154_v42, 0 }
 0x28f   :  { %1798 = vmatpush3.bf16.xpose.msra.mxu1 %v160_v43 }
 0x290   :  { %1803 = vmatprep.subr.bf16.mxu1 %v2065_v15 }
 0x291   :  { %v270_v62 = vpop.permute.xlu0 %269 }
 0x292   :  { %v275_v2 = vsel %vm155_vm2, %v270_v62, 0 }
 0x296   :  { %1800 = vmatmul.mubr.msk.bf16.vlgmr.msra.gmra.mrb[4].mxu1 %vm155_vm2, %v2175_v41 }
 0x297   :  { %1805 = vmatprep.mubr.msk.bf16.mxu1 %vm2066_vm1, %v2065_v15 }
 0x369   :  { %v196_v44 = vpop.f32.mrb[4].mxu1 }
 0x36a   :  { %v202_v46 = vmul.f32 0.35355338, %v196_v44  ;;  %v1801_v47 = vpop.f32.mrb[5].mxu1 }
 0x36b   :  { %v199_v48 = vpop.f32.mrb[6].mxu1 }
 0x36c   :  { %v1802_v49 = vpop.f32.mrb[7].mxu1  ;;  %v203_v50 = vadd.f32 %v202_v46, %v2190_v45 }
 0x36e   :  { %v204_v51 = vsel %vm155_vm2, %v203_v50, -inf }
 0x36f   :  { %205 = vmax.xlane.f32.xlu1 %v204_v51 }
 0x3fc   :  { %v206_v52 = vpop.xlane.xlu1 %205 }
 0x3fd   :  { %v207_v53 = vsub.f32 %v203_v50, %v206_v52 }
 0x3ff   :  { %v208_v54 = vmul.f32 1.442695, %v207_v53 }
 0x401   :  { %2001 = vpow2.f32 %v208_v54 }
 0x40b   :  { %v2002_v55 = vpop.eup %2001 }
 0x40c   :  { %v210_v56 = vsel %vm155_vm2, %v2002_v55, 0.0 }
 0x40d   :  { %211 = vadd.xlane.f32.xlu1 %v210_v56 }
 0x41e   :  { %216 = vrot.lane.b32.xlu1 %v2175_v41, %s2069_s24 }
 0x422   :  { %267 = vrot.lane.b32.xlu1 %v2175_v41, %s2070_s1 }
 0x49a   :  { %v212_v57 = vpop.xlane.xlu1 %211 }
 0x49b   :  { %2003 = vrcp.f32 %v212_v57 }
 0x49e   :  { %v217_v58 = vpop.permute.xlu1 %216 }
 0x49f   :  { %v223_v59 = vsel %vm221_vm3, %v217_v58, 0 }
 0x4a0   :  { %1804 = vmatpush3.bf16.msra.mxu1 %v223_v59 }
 0x4a1   :  { %1809 = vmatprep.subr.bf16.mxu1 %v2065_v15 }
 0x4a2   :  { %v268_v3 = vpop.permute.xlu1 %267 }
 0x4a5   :  { %v2004_v60 = vpop.eup %2003 }
 0x4a6   :  { %v214_v61 = vmul.f32 %v2004_v60, %v2002_v55 }
 0x4a8   :  { %v215_v63 = vpack.c.bf16 %v214_v61, %v214_v61 }
 0x4aa   :  { %1806 = vmatmul.mubr.msk.bf16.vlgmr.msra.gmra.mrb[8].mxu1 %vm155_vm2, %v215_v63 }
 0x4ab   :  { %1810 = vmatpush3.bf16.xpose.msra.mxu1 %v275_v2  ;;  %1811 = vmatprep.mubr.msk.bf16.mxu1 %vm2066_vm1, %v2065_v15 }
 0x4ac   :  { %1821 = vmatprep.subr.bf16.mxu1 %v2065_v15 }
 0x4b2   :  { %1812 = vmatmul.mubr.msk.bf16.vlgmr.msra.gmra.mrb[12].mxu1 %vm155_vm2, %v268_v3 }
 0x4b3   :  { %1823 = vmatprep.mubr.msk.bf16.mxu1 %vm2066_vm1, %v2065_v15  ;;  %1822 = vmatpush3.bf16.msra.mxu1 %v2224_v24 }
 0x4b4   :  { %1833 = vmatprep.subr.bf16.mxu1 %v2065_v15 }
 0x57d   :  { %v259_v4 = vpop.f32.mrb[8].mxu1 }
 0x57e   :  { %v1807_v5 = vpop.f32.mrb[9].mxu1  ;;  %v265_v31 = vpack.c.bf16 %v259_v4, %v259_v4 }
 0x57f   :  { %v262_v6 = vpop.f32.mrb[10].mxu1 }
 0x580   :  { %v1808_v7 = vpop.f32.mrb[11].mxu1 }
 0x585   :  { %v311_v8 = vpop.f32.mrb[12].mxu1 }
 0x586   :  { %v317_v9 = vmul.f32 0.35355338, %v311_v8  ;;  %v1813_v10 = vpop.f32.mrb[13].mxu1 }
 0x587   :  { %v314_v11 = vpop.f32.mrb[14].mxu1  ;;  %v1692_v10 = vld [vmem:[%s2500_s5 + $0x8] sm:$0xf] }
 0x588   :  { %v1814_v12 = vpop.f32.mrb[15].mxu1  ;;  %v318_v13 = vadd.f32 %v317_v9, %v2190_v45  ;;  %v2275_v11 = vsel %vm221_vm3, %v1692_v10, 0 }
 0x58a   :  { %v319_v14 = vsel %vm155_vm2, %v318_v13, -inf }
 0x58b   :  { %320 = vmax.xlane.f32.xlu0 %v319_v14 }
 0x5a1   :  { %331 = vrot.lane.b32.xlu0 %v2175_v41, %s2071_s25 }
 0x5a5   :  { %474 = vrot.lane.b32.xlu0 %v2175_v41, %s2072_s26 }
 0x618   :  { %v321_v16 = vpop.xlane.xlu0 %320 }
 0x619   :  { %v322_v17 = vsub.f32 %v318_v13, %v321_v16 }
 0x61b   :  { %v323_v18 = vmul.f32 1.442695, %v322_v17 }
 0x61c   :  { %v332_v19 = vpop.permute.xlu0 %331 }
 0x61d   :  { %2005 = vpow2.f32 %v323_v18  ;;  %v337_v20 = vsel %vm221_vm3, %v332_v19, 0 }
 0x61e   :  { %1816 = vmatpush3.bf16.msra.mxu0 %v337_v20 }
 0x61f   :  { %1827 = vmatprep.subr.bf16.mxu0 %v2065_v15 }
 0x620   :  { %v475_v42 = vpop.permute.xlu0 %474 }
 0x627   :  { %v2006_v21 = vpop.eup %2005 }
 0x628   :  { %v325_v22 = vsel %vm155_vm2, %v2006_v21, 0.0 }
 0x629   :  { %326 = vadd.xlane.f32.xlu1 %v325_v22 }
 0x63a   :  { %476 = vrot.lane.b32.xlu1 %v2175_v41, %s2073_s27 }
 0x6b6   :  { %v327_v25 = vpop.xlane.xlu1 %326 }
 0x6b7   :  { %2007 = vrcp.f32 %v327_v25 }
 0x6ba   :  { %v477_v32 = vpop.permute.xlu1 %476 }
 0x6bb   :  { %v482_v37 = vsel %vm155_vm2, %v477_v32, 0 }
 0x6c1   :  { %v2008_v26 = vpop.eup %2007 }
 0x6c2   :  { %v329_v28 = vmul.f32 %v2008_v26, %v2006_v21  ;;  %v2287_v26 = vrot.slane %v2175_v41, 4 }
 0x6c4   :  { %v330_v29 = vpack.c.bf16 %v329_v28, %v329_v28 }
 0x6c6   :  { %1818 = vmatmul.mubr.msk.bf16.vlgmr.msra.gmra.mrb[0].mxu0 %vm155_vm2, %v330_v29 }
 0x6c7   :  { %1828 = vmatpush3.bf16.msra.mxu0 %v2232_v30  ;;  %1829 = vmatprep.mubr.msk.bf16.mxu0 %vm2066_vm1, %v2065_v15 }
 0x6c8   :  { %1839 = vmatprep.subr.bf16.mxu0 %v2065_v15 }
 0x6ce   :  { %1830 = vmatmul.mubr.msk.bf16.vlgmr.msra.gmra.mrb[4].mxu0 %vm155_vm2, %v265_v31 }
 0x6cf   :  { %1841 = vmatprep.mubr.msk.bf16.mxu0 %vm2066_vm1, %v2065_v15 }
 0x799   :  { %v373_v33 = vpop.f32.mrb[0].mxu0 }
 0x79a   :  { %v379_v34 = vpack.c.bf16 %v373_v33, %v373_v33  ;;  %v1819_v35 = vpop.f32.mrb[1].mxu0 }
 0x79b   :  { %v376_v36 = vpop.f32.mrb[2].mxu0 }
 0x79c   :  { %v1820_v38 = vpop.f32.mrb[3].mxu0  ;;  %1824 = vmatmul.mubr.msk.bf16.vlgmr.msra.gmra.mrb[16].mxu1 %vm155_vm2, %v379_v34 }
 0x79d   :  { %1834 = vmatpush3.bf16.xpose.msra.mxu1 %v482_v37  ;;  %1835 = vmatprep.mubr.msk.bf16.mxu1 %vm2066_vm1, %v2065_v15 }
 0x79e   :  { %1845 = vmatprep.subr.bf16.mxu1 %v2065_v15 }
 0x7a1   :  { %v468_v39 = vpop.f32.mrb[4].mxu0 }
 0x7a2   :  { %v1831_v40 = vpop.f32.mrb[5].mxu0 }
 0x7a3   :  { %v471_v43 = vpop.f32.mrb[6].mxu0 }
 0x7a4   :  { %v1832_v44 = vpop.f32.mrb[7].mxu0  ;;  %1836 = vmatmul.mubr.msk.bf16.vlgmr.msra.gmra.mrb[20].mxu1 %vm155_vm2, %v475_v42 }
 0x7a5   :  { %1847 = vmatprep.mubr.msk.bf16.mxu1 %vm2066_vm1, %v2065_v15  ;;  %1846 = vmatpush3.bf16.msra.mxu1 %v2275_v11 }
 0x7a6   :  { %1857 = vmatprep.subr.bf16.mxu1 %v2065_v15 }
 0x86f   :  { %v422_v46 = vpop.f32.mrb[16].mxu1 }
 0x870   :  { %v2250_v47 = vadd.f32 %v468_v39, %v422_v46  ;;  %v1825_v48 = vpop.f32.mrb[17].mxu1 }
 0x871   :  { %v425_v49 = vpop.f32.mrb[18].mxu1 }
 0x872   :  { %v1826_v50 = vpop.f32.mrb[19].mxu1 }
 0x873   :  { %v1696_v50 = vld [vmem:[%s2500_s5 + $0xc] sm:$0xf] }
 0x877   :  { %v518_v51 = vpop.f32.mrb[20].mxu1 }
 0x878   :  { %v524_v52 = vmul.f32 0.35355338, %v518_v51  ;;  %v1837_v53 = vpop.f32.mrb[21].mxu1  ;;  %v2321_v51 = vsel %vm221_vm3, %v1696_v50, 0 }
 0x879   :  { %v521_v54 = vpop.f32.mrb[22].mxu1 }
 0x87a   :  { %v1838_v55 = vpop.f32.mrb[23].mxu1  ;;  %v525_v56 = vadd.f32 %v524_v52, %v2190_v45 }
 0x87c   :  { %v526_v57 = vsel %vm155_vm2, %v525_v56, -inf }
 0x87d   :  { %527 = vmax.xlane.f32.xlu1 %v526_v57 }
 0x88e   :  { %638 = vrot.lane.b32.xlu1 %v2175_v41, %s2074_s11 }
 0x892   :  { %636 = vrot.lane.b32.xlu1 %v2175_v41, %s2075_s12 }
 0x90a   :  { %v528_v58 = vpop.xlane.xlu1 %527 }
 0x90b   :  { %v529_v59 = vsub.f32 %v525_v56, %v528_v58 }
 0x90d   :  { %v530_v60 = vmul.f32 1.442695, %v529_v59 }
 0x90e   :  { %v639_v6 = vpop.permute.xlu1 %638 }
 0x90f   :  { %2009 = vpow2.f32 %v530_v60  ;;  %v644_v8 = vsel %vm155_vm2, %v639_v6, 0 }
 0x912   :  { %v637_v9 = vpop.permute.xlu1 %636 }
 0x919   :  { %v2010_v61 = vpop.eup %2009 }
 0x91a   :  { %v532_v62 = vsel %vm155_vm2, %v2010_v61, 0.0 }
 0x91b   :  { %533 = vadd.xlane.f32.xlu0 %v532_v62 }
 0x931   :  { %538 = vrot.lane.b32.xlu0 %v2175_v41, %s2076_s0 }
 0x9a8   :  { %v534_v63 = vpop.xlane.xlu0 %533 }
 0x9a9   :  { %2011 = vrcp.f32 %v534_v63 }
 0x9ac   :  { %v539_v2 = vpop.permute.xlu0 %538 }
 0x9ad   :  { %v544_v3 = vsel %vm221_vm3, %v539_v2, 0 }
 0x9ae   :  { %1840 = vmatpush3.bf16.msra.mxu0 %v544_v3 }
 0x9af   :  { %1851 = vmatprep.subr.bf16.mxu0 %v2065_v15 }
 0x9b3   :  { %v2012_v4 = vpop.eup %2011 }
 0x9b4   :  { %v536_v5 = vmul.f32 %v2012_v4, %v2010_v61 }
 0x9b6   :  { %v537_v7 = vpack.c.bf16 %v536_v5, %v536_v5 }
 0x9b8   :  { %1842 = vmatmul.mubr.msk.bf16.vlgmr.msra.gmra.mrb[8].mxu0 %vm155_vm2, %v537_v7 }
 0x9b9   :  { %1852 = vmatpush3.bf16.xpose.msra.mxu0 %v644_v8  ;;  %1853 = vmatprep.mubr.msk.bf16.mxu0 %vm2066_vm1, %v2065_v15 }
 0x9ba   :  { %1863 = vmatprep.subr.bf16.mxu0 %v2065_v15 }
 0x9c0   :  { %1854 = vmatmul.mubr.msk.bf16.vlgmr.msra.gmra.mrb[12].mxu0 %vm155_vm2, %v637_v9 }
 0x9c1   :  { %1865 = vmatprep.mubr.msk.bf16.mxu0 %vm2066_vm1, %v2065_v15  ;;  %1864 = vmatpush3.bf16.msra.mxu0 %v2321_v51 }
 0x9c2   :  { %1875 = vmatprep.subr.bf16.mxu0 %v2065_v15 }
 0xa8b   :  { %v580_v12 = vpop.f32.mrb[8].mxu0 }
 0xa8c   :  { %v586_v13 = vpack.c.bf16 %v580_v12, %v580_v12  ;;  %v1843_v14 = vpop.f32.mrb[9].mxu0 }
 0xa8d   :  { %v583_v16 = vpop.f32.mrb[10].mxu0 }
 0xa8e   :  { %v1844_v17 = vpop.f32.mrb[11].mxu0  ;;  %1848 = vmatmul.mubr.msk.bf16.vlgmr.msra.gmra.mrb[24].mxu1 %vm155_vm2, %v586_v13 }
 0xa8f   :  { %1859 = vmatprep.mubr.msk.bf16.mxu1 %vm2066_vm1, %v2065_v15 }
 0xa93   :  { %v680_v18 = vpop.f32.mrb[12].mxu0 }
 0xa94   :  { %v686_v19 = vmul.f32 0.35355338, %v680_v18  ;;  %v1855_v20 = vpop.f32.mrb[13].mxu0 }
 0xa95   :  { %v683_v21 = vpop.f32.mrb[14].mxu0 }
 0xa96   :  { %v1856_v22 = vpop.f32.mrb[15].mxu0  ;;  %v687_v23 = vadd.f32 %v686_v19, %v2190_v45 }
 0xa98   :  { %v688_v25 = vsel %vm155_vm2, %v687_v23, -inf }
 0xa99   :  { %689 = vmax.xlane.f32.xlu0 %v688_v25 }
 0xaaf   :  { %700 = vrot.lane.b32.xlu0 %v2175_v41, %s2077_s15 }
 0xab3   :  { %912 = vrot.lane.b32.xlu0 %v2287_v26, %s2068_s22 }
 0xb26   :  { %v690_v27 = vpop.xlane.xlu0 %689 }
 0xb27   :  { %v691_v28 = vsub.f32 %v687_v23, %v690_v27 }
 0xb29   :  { %v692_v29 = vmul.f32 1.442695, %v691_v28 }
 0xb2a   :  { %v701_v31 = vpop.permute.xlu0 %700 }
 0xb2b   :  { %2013 = vpow2.f32 %v692_v29  ;;  %v706_v32 = vsel %vm221_vm3, %v701_v31, 0 }
 0xb2c   :  { %1858 = vmatpush3.bf16.msra.mxu1 %v706_v32 }
 0xb2d   :  { %1869 = vmatprep.subr.bf16.mxu1 %v2065_v15 }
 0xb35   :  { %v2014_v33 = vpop.eup %2013 }
 0xb36   :  { %v694_v34 = vsel %vm155_vm2, %v2014_v33, 0.0 }
 0xb37   :  { %695 = vadd.xlane.f32.xlu1 %v694_v34 }
 0xb48   :  { %799 = vrot.lane.b32.xlu1 %v2287_v26, %s2067_s21 }
 0xb4c   :  { %910 = vrot.lane.b32.xlu1 %v2287_v26, %s2070_s1 }
 0xb61   :  { %v629_v41 = vpop.f32.mrb[24].mxu1 }
 0xb62   :  { %v2299_v35 = vadd.f32 %v629_v41, %v2250_v47  ;;  %v1849_v36 = vpop.f32.mrb[25].mxu1  ;;  %v913_v47 = vpop.permute.xlu0 %912 }
 0xb63   :  { %v632_v37 = vpop.f32.mrb[26].mxu1  ;;  %v918_v48 = vsel %vm155_vm2, %v913_v47, 0 }
 0xb64   :  { %v1850_v38 = vpop.f32.mrb[27].mxu1 }
 0xbc4   :  { %v696_v39 = vpop.xlane.xlu1 %695 }
 0xbc5   :  { %2015 = vrcp.f32 %v696_v39 }
 0xbc8   :  { %v800_v43 = vpop.permute.xlu1 %799 }
 0xbc9   :  { %v805_v46 = vsel %vm155_vm2, %v800_v43, 0 }
 0xbcc   :  { %v911_v49 = vpop.permute.xlu1 %910 }
 0xbcf   :  { %v2016_v40 = vpop.eup %2015 }
 0xbd0   :  { %v698_v42 = vmul.f32 %v2016_v40, %v2014_v33 }
 0xbd2   :  { %v699_v44 = vpack.c.bf16 %v698_v42, %v698_v42 }
 0xbd4   :  { %1860 = vmatmul.mubr.msk.bf16.vlgmr.msra.gmra.mrb[28].mxu1 %vm155_vm2, %v699_v44 }
 0xbd5   :  { %1870 = vmatpush3.bf16.xpose.msra.mxu1 %v805_v46  ;;  %1871 = vmatprep.mubr.msk.bf16.mxu1 %vm2066_vm1, %v2065_v15 }
 0xbd6   :  { %1881 = vmatprep.subr.bf16.mxu1 %v2065_v15 }
 0xbdc   :  { %1872 = vmatmul.mubr.msk.bf16.vlgmr.msra.gmra.mrb[32].mxu1 %vm155_vm2, %v2287_v26 }
 0xbdd   :  { %1882 = vmatpush3.bf16.xpose.msra.mxu1 %v918_v48  ;;  %1883 = vmatprep.mubr.msk.bf16.mxu1 %vm2066_vm1, %v2065_v15 }
 0xbde   :  { %1893 = vmatprep.subr.bf16.mxu1 %v2065_v15 }
 0xbe4   :  { %1884 = vmatmul.mubr.msk.bf16.vlgmr.msra.gmra.mrb[36].mxu1 %vm155_vm2, %v911_v49 }
 0xbe5   :  { %1894 = vmatpush3.bf16.msra.mxu1 %v2224_v24  ;;  %1895 = vmatprep.mubr.msk.bf16.mxu1 %vm2066_vm1, %v2065_v15 }
 0xbe6   :  { %1905 = vmatprep.subr.bf16.mxu1 %v2065_v15 }
 0xca7   :  { %v742_v52 = vpop.f32.mrb[28].mxu1 }
 0xca8   :  { %v748_v53 = vpack.c.bf16 %v742_v52, %v742_v52  ;;  %v1861_v54 = vpop.f32.mrb[29].mxu1 }
 0xca9   :  { %v745_v24 = vpop.f32.mrb[30].mxu1 }
 0xcaa   :  { %v1862_v55 = vpop.f32.mrb[31].mxu1  ;;  %1866 = vmatmul.mubr.msk.bf16.vlgmr.msra.gmra.mrb[16].mxu0 %vm155_vm2, %v748_v53 }
 0xcab   :  { %1877 = vmatprep.mubr.msk.bf16.mxu0 %vm2066_vm1, %v2065_v15 }
 0xcaf   :  { %v841_v56 = vpop.f32.mrb[32].mxu1 }
 0xcb0   :  { %v847_v57 = vmul.f32 0.35355338, %v841_v56  ;;  %v1873_v58 = vpop.f32.mrb[33].mxu1 }
 0xcb1   :  { %v844_v59 = vpop.f32.mrb[34].mxu1 }
 0xcb2   :  { %v1874_v60 = vpop.f32.mrb[35].mxu1  ;;  %v848_v61 = vadd.f32 %v847_v57, %v2190_v45 }
 0xcb4   :  { %v849_v62 = vsel %vm155_vm2, %v848_v61, -inf }
 0xcb5   :  { %850 = vmax.xlane.f32.xlu0 %v849_v62 }
 0xcb7   :  { %v954_v63 = vpop.f32.mrb[36].mxu1 }
 0xcb8   :  { %v960_v2 = vmul.f32 0.35355338, %v954_v63  ;;  %v1885_v3 = vpop.f32.mrb[37].mxu1 }
 0xcb9   :  { %v957_v4 = vpop.f32.mrb[38].mxu1 }
 0xcba   :  { %v1886_v5 = vpop.f32.mrb[39].mxu1  ;;  %v961_v6 = vadd.f32 %v960_v2, %v2190_v45 }
 0xcbc   :  { %v962_v7 = vsel %vm155_vm2, %v961_v6, -inf }
 0xcbd   :  { %963 = vmax.xlane.f32.xlu1 %v962_v7 }
 0xcce   :  { %974 = vrot.lane.b32.xlu1 %v2287_v26, %s2071_s25 }
 0xcd2   :  { %1111 = vrot.lane.b32.xlu1 %v2287_v26, %s2073_s27 }
 0xcd6   :  { %1109 = vrot.lane.b32.xlu1 %v2287_v26, %s2072_s26 }
 0xd42   :  { %v851_v8 = vpop.xlane.xlu0 %850 }
 0xd43   :  { %v852_v9 = vsub.f32 %v848_v61, %v851_v8 }
 0xd45   :  { %v853_v10 = vmul.f32 1.442695, %v852_v9 }
 0xd47   :  { %2017 = vpow2.f32 %v853_v10 }
 0xd4a   :  { %v964_v12 = vpop.xlane.xlu1 %963 }
 0xd4b   :  { %v965_v13 = vsub.f32 %v961_v6, %v964_v12 }
 0xd4d   :  { %v966_v14 = vmul.f32 1.442695, %v965_v13 }
 0xd4e   :  { %v975_v34 = vpop.permute.xlu1 %974 }
 0xd4f   :  { %2019 = vpow2.f32 %v966_v14 }
 0xd51   :  { %v2018_v16 = vpop.eup %2017 }
 0xd52   :  { %v855_v17 = vsel %vm155_vm2, %v2018_v16, 0.0  ;;  %v1112_v46 = vpop.permute.xlu1 %1111 }
 0xd53   :  { %856 = vadd.xlane.f32.xlu0 %v855_v17  ;;  %v1117_v50 = vsel %vm155_vm2, %v1112_v46, 0 }
 0xd56   :  { %v1110_v53 = vpop.permute.xlu1 %1109 }
 0xd59   :  { %v2020_v18 = vpop.eup %2019 }
 0xd5a   :  { %v968_v19 = vsel %vm155_vm2, %v2020_v18, 0.0 }
 0xd5b   :  { %969 = vadd.xlane.f32.xlu0 %v968_v19 }
 0xd71   :  { %861 = vrot.lane.b32.xlu0 %v2287_v26, %s2069_s24 }
 0xd7d   :  { %v791_v20 = vpop.f32.mrb[16].mxu0 }
 0xd7e   :  { %v2343_v21 = vadd.f32 %v791_v20, %v2299_v35  ;;  %v1867_v22 = vpop.f32.mrb[17].mxu0  ;;  %v980_v35 = vsel %vm221_vm3, %v975_v34, 0  ;;  %v1710_v34 = vld [vmem:[%s2497_s2 + $0x4] ss:$0 sm:$0xff] }
 0xd7f   :  { %v794_v23 = vpop.f32.mrb[18].mxu0 }
 0xd80   :  { %v1868_v25 = vpop.f32.mrb[19].mxu0 }
 0xde0   :  { %v857_v27 = vpop.xlane.xlu0 %856 }
 0xde1   :  { %2021 = vrcp.f32 %v857_v27 }
 0xde8   :  { %v970_v28 = vpop.xlane.xlu0 %969 }
 0xde9   :  { %2023 = vrcp.f32 %v970_v28 }
 0xdeb   :  { %v2022_v29 = vpop.eup %2021 }
 0xdec   :  { %v859_v31 = vmul.f32 %v2022_v29, %v2018_v16  ;;  %v862_v32 = vpop.permute.xlu0 %861 }
 0xded   :  { %v867_v33 = vsel %vm221_vm3, %v862_v32, 0  ;;  %v1423_v32 = vadd.f32 %v2343_v21, %v2134_v0 }
 0xdee   :  { %1876 = vmatpush3.bf16.msra.mxu0 %v867_v33  ;;  %v860_v41 = vpack.c.bf16 %v859_v31, %v859_v31 }
 0xdef   :  { %1887 = vmatprep.subr.bf16.mxu0 %v2065_v15 }
 0xdf1   :  { %1878 = vmatmul.mubr.msk.bf16.vlgmr.msra.gmra.mrb[20].mxu0 %vm155_vm2, %v860_v41 }
 0xdf2   :  { %1888 = vmatpush3.bf16.msra.mxu0 %v980_v35  ;;  %1889 = vmatprep.mubr.msk.bf16.mxu0 %vm2066_vm1, %v2065_v15 }
 0xdf3   :  { %v2024_v36 = vpop.eup %2023  ;;  %1899 = vmatprep.subr.bf16.mxu0 %v2065_v15 }
 0xdf4   :  { %v972_v37 = vmul.f32 %v2024_v36, %v2020_v18 }
 0xdf6   :  { %v973_v38 = vpack.c.bf16 %v972_v37, %v972_v37  ;;  %v2402_v37 = vadd.f32 %v1710_v34, %v1423_v32 }
 0xdf9   :  { %1890 = vmatmul.mubr.msk.bf16.vlgmr.msra.gmra.mrb[24].mxu0 %vm155_vm2, %v973_v38 }
 0xdfa   :  { %1900 = vmatpush3.bf16.msra.mxu0 %v2232_v30  ;;  %1901 = vmatprep.mubr.msk.bf16.mxu0 %vm2066_vm1, %v2065_v15 }
 0xdfb   :  { %1911 = vmatprep.subr.bf16.mxu0 %v2065_v15 }
 0xec4   :  { %v903_v39 = vpop.f32.mrb[20].mxu0 }
 0xec5   :  { %v909_v40 = vpack.c.bf16 %v903_v39, %v903_v39  ;;  %v1879_v42 = vpop.f32.mrb[21].mxu0  ;;  %v1431_v39 = vsel %vm43_vm0, %v2402_v37, 0.0 }
 0xec6   :  { %v906_v43 = vpop.f32.mrb[22].mxu0 }
 0xec7   :  { %v1880_v44 = vpop.f32.mrb[23].mxu0  ;;  %1902 = vmatmul.mubr.msk.bf16.vlgmr.msra.gmra.mrb[28].mxu0 %vm155_vm2, %v909_v40 }
 0xec8   :  { %1913 = vmatprep.mubr.msk.bf16.mxu0 %vm2066_vm1, %v2065_v15 }
 0xecc   :  { %v1016_v47 = vpop.f32.mrb[24].mxu0 }
 0xecd   :  { %v1022_v48 = vpack.c.bf16 %v1016_v47, %v1016_v47  ;;  %v1891_v49 = vpop.f32.mrb[25].mxu0 }
 0xece   :  { %v1019_v30 = vpop.f32.mrb[26].mxu0 }
 0xecf   :  { %v1892_v52 = vpop.f32.mrb[27].mxu0  ;;  %1896 = vmatmul.mubr.msk.bf16.vlgmr.msra.gmra.mrb[40].mxu1 %vm155_vm2, %v1022_v48 }
 0xed0   :  { %1906 = vmatpush3.bf16.xpose.msra.mxu1 %v1117_v50  ;;  %1907 = vmatprep.mubr.msk.bf16.mxu1 %vm2066_vm1, %v2065_v15 }
 0xed1   :  { %1917 = vmatprep.subr.bf16.mxu1 %v2065_v15 }
 0xed7   :  { %1908 = vmatmul.mubr.msk.bf16.vlgmr.msra.gmra.mrb[44].mxu1 %vm155_vm2, %v1110_v53 }
 0xed8   :  { %1918 = vmatpush3.bf16.msra.mxu1 %v2275_v11  ;;  %1919 = vmatprep.mubr.msk.bf16.mxu1 %vm2066_vm1, %v2065_v15 }
 0xed9   :  { %1929 = vmatprep.subr.bf16.mxu1 %v2065_v15 }
 0xf9a   :  { %v1103_v54 = vpop.f32.mrb[28].mxu0 }
 0xf9b   :  { %v1903_v24 = vpop.f32.mrb[29].mxu0 }
 0xf9c   :  { %v1106_v55 = vpop.f32.mrb[30].mxu0 }
 0xf9d   :  { %v1904_v56 = vpop.f32.mrb[31].mxu0 }
 0xfa2   :  { %v1060_v57 = vpop.f32.mrb[40].mxu1 }
 0xfa3   :  { %v2370_v58 = vadd.f32 %v1103_v54, %v1060_v57  ;;  %v1897_v59 = vpop.f32.mrb[41].mxu1 }
 0xfa4   :  { %v1063_v60 = vpop.f32.mrb[42].mxu1 }
 0xfa5   :  { %v1898_v61 = vpop.f32.mrb[43].mxu1 }
 0xfaa   :  { %v1153_v62 = vpop.f32.mrb[44].mxu1 }
 0xfab   :  { %v1159_v63 = vmul.f32 0.35355338, %v1153_v62  ;;  %v1909_v2 = vpop.f32.mrb[45].mxu1 }
 0xfac   :  { %v1156_v3 = vpop.f32.mrb[46].mxu1 }
 0xfad   :  { %v1910_v11 = vpop.f32.mrb[47].mxu1  ;;  %v1160_v4 = vadd.f32 %v1159_v63, %v2190_v45 }
 0xfaf   :  { %v1161_v5 = vsel %vm155_vm2, %v1160_v4, -inf }
 0xfb0   :  { %1162 = vmax.xlane.f32.xlu0 %v1161_v5 }
 0xfc6   :  { %1173 = vrot.lane.b32.xlu0 %v2287_v26, %s2076_s0 }
 0xfca   :  { %1266 = vrot.lane.b32.xlu0 %v2287_v26, %s2075_s12 }
0x103d   :  { %v1163_v6 = vpop.xlane.xlu0 %1162 }
0x103e   :  { %v1164_v7 = vsub.f32 %v1160_v4, %v1163_v6 }
0x1040   :  { %v1165_v8 = vmul.f32 1.442695, %v1164_v7 }
0x1041   :  { %v1174_v9 = vpop.permute.xlu0 %1173 }
0x1042   :  { %2025 = vpow2.f32 %v1165_v8  ;;  %v1179_v10 = vsel %vm221_vm3, %v1174_v9, 0 }
0x1043   :  { %1912 = vmatpush3.bf16.msra.mxu0 %v1179_v10 }
0x1044   :  { %1923 = vmatprep.subr.bf16.mxu0 %v2065_v15 }
0x1045   :  { %v1267_v22 = vpop.permute.xlu0 %1266 }
0x104c   :  { %v2026_v12 = vpop.eup %2025 }
0x104d   :  { %v1167_v13 = vsel %vm155_vm2, %v2026_v12, 0.0 }
0x104e   :  { %1168 = vadd.xlane.f32.xlu1 %v1167_v13 }
0x105f   :  { %1268 = vrot.lane.b32.xlu1 %v2287_v26, %s2074_s11 }
0x10db   :  { %v1169_v14 = vpop.xlane.xlu1 %1168 }
0x10dc   :  { %2027 = vrcp.f32 %v1169_v14  ;;  %v1988_v14 = vld [vmem:[%s2501_s6 + $0x8] sm:$0xff]  }
0x10df   :  { %v1269_v18 = vpop.permute.xlu1 %1268 }
0x10e0   :  { %v1274_v20 = vsel %vm155_vm2, %v1269_v18, 0 }
0x10e6   :  { %v2028_v16 = vpop.eup %2027 }
0x10e7   :  { %v1171_v17 = vmul.f32 %v2028_v16, %v2026_v12  ;;  %v1989_v16 = vld [vmem:[%s2503_s8] sm:$0xff]  }
0x10e9   :  { %v1172_v19 = vpack.c.bf16 %v1171_v17, %v1171_v17  ;;  %v1990_v17 = vld [vmem:[%s2503_s8 + $0x8] sm:$0xff]  }
0x10eb   :  { %1914 = vmatmul.mubr.msk.bf16.vlgmr.msra.gmra.mrb[32].mxu0 %vm155_vm2, %v1172_v19 }
0x10ec   :  { %1924 = vmatpush3.bf16.xpose.msra.mxu0 %v1274_v20  ;;  %1925 = vmatprep.mubr.msk.bf16.mxu0 %vm2066_vm1, %v2065_v15 }
0x10ed   :  { %1935 = vmatprep.subr.bf16.mxu0 %v2065_v15 }
0x10f3   :  { %1926 = vmatmul.mubr.msk.bf16.vlgmr.msra.gmra.mrb[36].mxu0 %vm155_vm2, %v1267_v22 }
0x10f4   :  { %1936 = vmatpush3.bf16.msra.mxu0 %v2321_v51  ;;  %1937 = vmatprep.mubr.msk.bf16.mxu0 %vm2066_vm1, %v2065_v15 }
0x10f5   :  { %1949 = vmatprep.subr.bf16.mxu0 %v2065_v15 }
0x11be   :  { %v1215_v23 = vpop.f32.mrb[32].mxu0 }
0x11bf   :  { %v1221_v25 = vpack.c.bf16 %v1215_v23, %v1215_v23  ;;  %v1915_v27 = vpop.f32.mrb[33].mxu0 }
0x11c0   :  { %v1218_v28 = vpop.f32.mrb[34].mxu0 }
0x11c1   :  { %v1916_v29 = vpop.f32.mrb[35].mxu0  ;;  %1920 = vmatmul.mubr.msk.bf16.vlgmr.msra.gmra.mrb[48].mxu1 %vm155_vm2, %v1221_v25 }
0x11c2   :  { %1931 = vmatprep.mubr.msk.bf16.mxu1 %vm2066_vm1, %v2065_v15  ;;  %v1711_v29 = vld [vmem:[%s2497_s2 + $0x2] ss:$0 sm:$0xff] }
0x11c6   :  { %v1310_v31 = vpop.f32.mrb[36].mxu0 }
0x11c7   :  { %v1316_v51 = vmul.f32 0.35355338, %v1310_v31  ;;  %v1927_v33 = vpop.f32.mrb[37].mxu0 }
0x11c8   :  { %v1313_v41 = vpop.f32.mrb[38].mxu0  ;;  %v1712_v33 = vld [vmem:[%s2497_s2 + $0x3] ss:$0 sm:$0xff] }
0x11c9   :  { %v1928_v35 = vpop.f32.mrb[39].mxu0  ;;  %v1317_v36 = vadd.f32 %v1316_v51, %v2190_v45 }
0x11cb   :  { %v1318_v38 = vsel %vm155_vm2, %v1317_v36, -inf }
0x11cc   :  { %1319 = vmax.xlane.f32.xlu1 %v1318_v38  ;;  %v1991_v38 = vld [vmem:[%s2503_s8 + $0x10] sm:$0xff]  }
0x11d0   :  { %1432 = vadd.xlane.f32.xlu1 %v1431_v39  ;;  %v1992_v39 = vld [vmem:[%s2503_s8 + $0x18] sm:$0xff]  }
0x1259   :  { %v1320_v0 = vpop.xlane.xlu1 %1319 }
0x125a   :  { %v1321_v21 = vsub.f32 %v1317_v36, %v1320_v0  ;;  %v1993_v0 = vld [vmem:[%s2503_s8 + $0x20] sm:$0xff]  }
0x125c   :  { %v1322_v40 = vmul.f32 1.442695, %v1321_v21  ;;  %v1994_v21 = vld [vmem:[%s2503_s8 + $0x28] sm:$0xff]  }
0x125e   :  { %2029 = vpow2.f32 %v1322_v40  ;;  %v1995_v40 = vld [vmem:[%s2503_s8 + $0x30] sm:$0xff]  }
0x1268   :  { %v2030_v42 = vpop.eup %2029 }
0x1269   :  { %v1324_v43 = vsel %vm155_vm2, %v2030_v42, 0.0 }
0x126a   :  { %1325 = vadd.xlane.f32.xlu0 %v1324_v43  ;;  %v1713_v43 = vld [vmem:[%s2502_s7] ss:$0 sm:$0xff] }
0x1280   :  { %1330 = vrot.lane.b32.xlu0 %v2287_v26, %s2077_s15 }
0x1294   :  { %v1259_v45 = vpop.f32.mrb[48].mxu1 }
0x1295   :  { %v1265_v44 = vadd.f32 %v1259_v45, %v2370_v58  ;;  %v1921_v46 = vpop.f32.mrb[49].mxu1  ;;  %v1433_v58 = vpop.xlane.xlu1 %1432 }
0x1296   :  { %v1262_v47 = vpop.f32.mrb[50].mxu1  ;;  %v1437_v59 = vmul.f32 0.03125, %v1433_v58  ;;  %v1717_v58 = vld [vmem:[%s2497_s2 + $0x5] ss:$0 sm:$0xff] }
0x1297   :  { %v1922_v48 = vpop.f32.mrb[51].mxu1 }
0x1298   :  { %v1439_v2 = vsub.f32 %v2402_v37, %v1437_v59 }
0x129a   :  { %v1441_v6 = vmul.f32 %v1439_v2, %v1439_v2 }
0x129c   :  { %v1443_v7 = vsel %vm43_vm0, %v1441_v6, 0.0 }
0x12f7   :  { %v1326_v49 = vpop.xlane.xlu0 %1325 }
0x12f8   :  { %2031 = vrcp.f32 %v1326_v49 }
0x12fb   :  { %v1331_v30 = vpop.permute.xlu0 %1330 }
0x12fc   :  { %v1336_v50 = vsel %vm221_vm3, %v1331_v30, 0 }
0x12fd   :  { %1930 = vmatpush3.bf16.msra.mxu1 %v1336_v50 }
0x12fe   :  { %1941 = vmatprep.subr.bf16.mxu1 %v2065_v15 }
0x1302   :  { %v2032_v52 = vpop.eup %2031 }
0x1303   :  { %v1328_v53 = vmul.f32 %v2032_v52, %v2030_v42  ;;  %v1996_v42 = vld [vmem:[%s2503_s8 + $0x38] sm:$0xff]  }
0x1305   :  { %v1329_v54 = vpack.c.bf16 %v1328_v53, %v1328_v53 }
0x1307   :  { %1932 = vmatmul.mubr.msk.bf16.vlgmr.msra.gmra.mrb[52].mxu1 %vm155_vm2, %v1329_v54 }
0x1308   :  { %1945 = vmatprep.mubr.msk.bf16.mxu1 %vm2066_vm1, %v2065_v15 }
0x13da   :  { %v1372_v26 = vpop.f32.mrb[52].mxu1 }
0x13db   :  { %v1378_v24 = vpack.c.bf16 %v1372_v26, %v1372_v26  ;;  %v1933_v55 = vpop.f32.mrb[53].mxu1 }
0x13dc   :  { %v1375_v56 = vpop.f32.mrb[54].mxu1 }
0x13dd   :  { %v1934_v57 = vpop.f32.mrb[55].mxu1  ;;  %1938 = vmatmul.mubr.msk.bf16.vlgmr.msra.gmra.mrb[40].mxu0 %vm155_vm2, %v1378_v24 }
0x13de   :  { %1965 = vmatprep.mubr.msk.bf16.mxu0 %vm2066_vm1, %v2065_v15  ;;  %1950 = vmatpush3.bf16.msra.mxu0 %v1989_v16 }
0x13df   :  { %1951 = vmatprep.subr.bf16.mxu0 %v2065_v15 }
0x13e2   :  { %1952 = vmatpush3.bf16.msra.mxu0 %v1990_v17 }
0x13e3   :  { %1953 = vmatprep.subr.bf16.mxu0 %v2065_v15 }
0x13e6   :  { %1954 = vmatpush3.bf16.msra.mxu0 %v1991_v38 }
0x13e7   :  { %1955 = vmatprep.subr.bf16.mxu0 %v2065_v15 }
0x13ea   :  { %1956 = vmatpush3.bf16.msra.mxu0 %v1992_v39 }
0x13eb   :  { %1957 = vmatprep.subr.bf16.mxu0 %v2065_v15 }
0x13ee   :  { %1958 = vmatpush3.bf16.msra.mxu0 %v1993_v0 }
0x13ef   :  { %1959 = vmatprep.subr.bf16.mxu0 %v2065_v15 }
0x13f2   :  { %1960 = vmatpush3.bf16.msra.mxu0 %v1994_v21 }
0x13f3   :  { %1961 = vmatprep.subr.bf16.mxu0 %v2065_v15 }
0x13f6   :  { %1962 = vmatpush3.bf16.msra.mxu0 %v1995_v40 }
0x13f7   :  { %1963 = vmatprep.subr.bf16.mxu0 %v2065_v15 }
0x13fa   :  { %1964 = vmatpush3.bf16.msra.mxu0 %v1996_v42 }
0x14b0   :  { %v1416_v60 = vpop.f32.mrb[40].mxu0 }
0x14b1   :  { %v1422_v61 = vadd.f32 %v1416_v60, %v1265_v44  ;;  %v1939_v62 = vpop.f32.mrb[41].mxu0 }
0x14b2   :  { %v1419_v63 = vpop.f32.mrb[42].mxu0 }
0x14b3   :  { %v1424_v3 = vadd.f32 %v1422_v61, %v2139_v1  ;;  %v1940_v11 = vpop.f32.mrb[43].mxu0  ;;  %v1987_v1 = vld [vmem:[%s2501_s6] sm:$0xff]  }
0x14b4   :  { %1942 = vmatpush3.bf16.msra.mxu1 %v1987_v1 }
0x14b5   :  { %v2421_v4 = vadd.f32 %v1710_v34, %v1424_v3  ;;  %1943 = vmatprep.subr.bf16.mxu1 %v2065_v15 }
0x14b7   :  { %v1434_v5 = vsel %vm43_vm0, %v2421_v4, 0.0 }
0x14b8   :  { %1435 = vadd.xlane.f32.xlu1 %v1434_v5  ;;  %1944 = vmatpush3.bf16.msra.mxu1 %v1988_v14 }
0x14bc   :  { %1444 = vadd.xlane.f32.xlu1 %v1443_v7 }
0x1545   :  { %v1436_v8 = vpop.xlane.xlu1 %1435 }
0x1546   :  { %v1438_v9 = vmul.f32 0.03125, %v1436_v8 }
0x1548   :  { %v1440_v10 = vsub.f32 %v2421_v4, %v1438_v9 }
0x1549   :  { %v1445_v18 = vpop.xlane.xlu1 %1444 }
0x154a   :  { %v1442_v12 = vmul.f32 %v1440_v10, %v1440_v10  ;;  %v1449_v19 = vmul.f32 0.03125, %v1445_v18 }
0x154c   :  { %v1446_v13 = vsel %vm43_vm0, %v1442_v12, 0.0  ;;  %v1451_v20 = vadd.f32 1e-05, %v1449_v19 }
0x154d   :  { %1447 = vadd.xlane.f32.xlu1 %v1446_v13 }
0x154e   :  { %2033 = vrsqrt.f32 %v1451_v20 }
0x1558   :  { %v2034_v27 = vpop.eup %2033 }
0x1559   :  { %v1455_v28 = vmul.f32 %v2034_v27, %v1439_v2 }
0x155b   :  { %v1461_v32 = vmul.f32 %v1711_v29, %v1455_v28 }
0x155d   :  { %v1467_v41 = vadd.f32 %v1712_v33, %v1461_v32 }
0x15da   :  { %v1448_v22 = vpop.xlane.xlu1 %1447 }
0x15db   :  { %v1450_v23 = vmul.f32 0.03125, %v1448_v22 }
0x15dd   :  { %v1452_v25 = vadd.f32 1e-05, %v1450_v23 }
0x15df   :  { %2035 = vrsqrt.f32 %v1452_v25 }
0x15e9   :  { %v2036_v31 = vpop.eup %2035 }
0x15ea   :  { %v1456_v51 = vmul.f32 %v2036_v31, %v1440_v10 }
0x15ec   :  { %v1462_v34 = vmul.f32 %v1711_v29, %v1456_v51 }
0x15ee   :  { %v1468_v35 = vadd.f32 %v1712_v33, %v1462_v34 }
0x15f0   :  { %v1469_v36 = vpack.c.bf16 %v1468_v35, %v1467_v41 }
0x15f2   :  { %1946 = vmatmul.mubr.msk.bf16.vlgmr.msra.gmra.mrb[56].mxu1 %vm43_vm0, %v1469_v36 }
0x16c5   :  { %v1530_v45 = vpop.f32.mrb[56].mxu1 }
0x16c6   :  { %v1531_v44 = vadd.f32 %v1713_v43, %v1530_v45  ;;  %v1947_v46 = vpop.f32.mrb[57].mxu1 }
0x16c7   :  { %v1533_v47 = vpop.f32.mrb[58].mxu1 }
0x16c8   :  { %v1539_v48 = vmul.f32 0.70710677, %v1531_v44  ;;  %v1534_v49 = vadd.f32 %v1713_v43, %v1533_v47  ;;  %v1948_v30 = vpop.f32.mrb[59].mxu1  ;;  %v1537_v54 = vmul.f32 0.5, %v1531_v44 }
0x16ca   :  { %2037 = verf.f32 %v1539_v48  ;;  %v1540_v50 = vmul.f32 0.70710677, %v1534_v49  ;;  %v1538_v26 = vmul.f32 0.5, %v1534_v49 }
0x16cc   :  { %2039 = verf.f32 %v1540_v50 }
0x16d4   :  { %v2038_v15 = vpop.eup %2037 }
0x16d5   :  { %v1543_v52 = vadd.f32 1.0, %v2038_v15 }
0x16d6   :  { %v2040_v53 = vpop.eup %2039 }
0x16d7   :  { %v1544_v24 = vadd.f32 1.0, %v2040_v53  ;;  %v1545_v55 = vmul.f32 %v1543_v52, %v1537_v54 }
0x16d9   :  { %v1546_v56 = vmul.f32 %v1544_v24, %v1538_v26 }
0x16db   :  { %v1547_v57 = vpack.c.bf16 %v1546_v56, %v1545_v55 }
0x16dd   :  { %1966 = vmatmul.mubr.bf16.vlgmr.msra.gmra.mrb[44].mxu0 %v1547_v57 }
0x17b0   :  { %v1650_v59 = vpop.f32.mrb[44].mxu0 }
0x17b1   :  { %v1651_v60 = vadd.f32 %v1717_v58, %v1650_v59  ;;  %v1967_v61 = vpop.f32.mrb[45].mxu0 }
0x17b2   :  { %v1653_v62 = vpop.f32.mrb[46].mxu0 }
0x17b3   :  { %v1657_v63 = vadd.f32 %v1651_v60, %v2402_v37  ;;  %v1654_v2 = vadd.f32 %v1717_v58, %v1653_v62  ;;  %v1968_v3 = vpop.f32.mrb[47].mxu0 }
0x17b5   :  { %1659 = vst.msk [vmem:[#allocation2] sm:$0xff] %vm43_vm0, %v1657_v63  ;;  %v1658_v11 = vadd.f32 %v1654_v2, %v2421_v4 }
0x17b7   :  { %1660 = vst.msk [vmem:[#allocation2 + $0x8] sm:$0xff] %vm43_vm0, %v1658_v11 }
0x17b8   :  { %2052 = shalt.err (!%p2049_p4)
}
0x17b9   :  { %s2053_s21 = scalar_lea.hbm %s2504_s9, 256 }
0x17ba   :  { %p2054_p5 = scmp.ne.s32.totalorder %s2504_s9, %s2053_s21  ;;  %p2057_p6 = scmp.lt.u32.totalorder %s2053_s21, %s2504_s9 }
0x17bc   :  { %p2059_p7 = pnand %p2057_p6, %p2054_p5 }
0x17be   :  { %2062 = shalt.err (!%p2059_p7)
}
0x17bf   :  { %s2079_s6 = smov 128   ;;  %s2080_s1 = smov 8  }
0x17c0   :  { %1672 = dma.vmem_to_hbm [thread:$0]  %s1667_s18, 256, %s2504_s9, [#allocation3], %s2079_s6, %s2079_s6, %s2080_s1  }
0x17c1   :  { %2063 = dma.done.wait [#allocation3], 256  }
0x17c2   :  { %2064 = vsyncadd [#allocation3], 4294967040 }
0x17c3   :  { %1676 = vsyncpa [#allocation3], 1 }

// kernel: tpu_custom_call.1
= control target key start
LH: loop header
LB: loop body
LE: loop exit
PB: predicated region body
PF: predicated region fallthrough
CT: control target
= control target key end

     0   :  { %vm43_vm0 = vcmask 261120   ;;  %s2495_s0 = inlined_call_operand.vmem [shape: f32[2,8,32], index: 0, kind: input, shape index: {}]   ;;  %s2496_s1 = inlined_call_operand.vmem [shape: f32[8,8], index: 1, kind: input, shape index: {}]   ;;  %s2497_s2 = inlined_call_operand.vmem [shape: f32[6,32], index: 2, kind: input, shape index: {}]   ;;  %s2498_s3 = inlined_call_operand.vmem [shape: bf16[32,96], index: 3, kind: input, shape index: {}]   ;;  %s2499_s4 = inlined_call_operand.vmem [shape: f32[1,96], index: 4, kind: input, shape index: {}]   ;;  %s2500_s5 = inlined_call_operand.vmem [shape: bf16[4,8,32], index: 5, kind: input, shape index: {}]   ;;  %s2501_s6 = inlined_call_operand.vmem [shape: bf16[32,128], index: 6, kind: input, shape index: {}]   ;;  %s2502_s7 = inlined_call_operand.vmem [shape: f32[1,128], index: 7, kind: input, shape index: {}]   ;;  %s2503_s8 = inlined_call_operand.vmem [shape: bf16[128,32], index: 8, kind: input, shape index: {}]   ;;  %s2504_s9 = inlined_call_operand.hbm [shape: f32[2,8,32], index: 9, kind: output, shape index: {}]  }
   0x1   :  { %v2134_v0 = vld [vmem:[%s2495_s0] sm:$0xff]  ;;  %v2139_v1 = vld [vmem:[%s2495_s0 + $0x8] sm:$0xff] }
   0x2   :  { %v44_v2 = vsel %vm43_vm0, %v2134_v0, 0.0  ;;  %v47_v3 = vsel %vm43_vm0, %v2139_v1, 0.0 }
   0x3   :  { %45 = vadd.xlane.f32.xlu0 %v44_v2 }
   0x7   :  { %48 = vadd.xlane.f32.xlu0 %v47_v3 }
   0x8   :  { %14 = vsyncpa [#allocation3], 0  ;;  %v1985_v14 = vld [vmem:[%s2498_s3] sm:$0xff]   ;;  %v2065_v15 = vmov 0.0   ;;  %v1986_v16 = vld [vmem:[%s2498_s3 + $0x8] sm:$0xff]   ;;  %vm2066_vm1 = vmmov 0  }
   0x9   :  { %1789 = vmatprep.subr.bf16.mxu1 %v2065_v15  ;;  %1815 = vmatprep.subr.bf16.mxu0 %v2065_v15  ;;  %v1677_v25 = vld [vmem:[%s2497_s2] ss:$0 sm:$0xff]  ;;  %v1678_v29 = vld [vmem:[%s2497_s2 + $0x1] ss:$0 sm:$0xff]  ;;  %s2067_s21 = smov 96   ;;  %s2068_s22 = smov 88  }
   0xa   :  { %1790 = vmatpush3.bf16.msra.mxu1 %v1985_v14  ;;  %1793 = vmatprep.mubr.msk.bf16.mxu1 %vm2066_vm1, %v2065_v15  ;;  %v1679_v34 = vld [vmem:[%s2499_s4] ss:$0 sm:$0xff]  ;;  %vm155_vm2 = vcmask 64512   ;;  %s2069_s24 = smov 64   ;;  %vm221_vm3 = vcmask 1043456   ;;  %s2071_s25 = smov 56  }
   0xb   :  { %1791 = vmatprep.subr.bf16.mxu1 %v2065_v15  ;;  %1817 = vmatprep.mubr.msk.bf16.mxu0 %vm2066_vm1, %v2065_v15  ;;  %v2190_v45 = vld [vmem:[%s2496_s1] sm:$0xff]  ;;  %s2070_s1 = smov 120   ;;  %s2072_s26 = smov 112  }
   0xc   :  { %s2073_s27 = smov 80   ;;  %s2074_s11 = smov 72  }
   0xd   :  { %s2075_s12 = smov 104   ;;  %s2076_s0 = smov 48  }
   0xe   :  { %1792 = vmatpush3.bf16.msra.mxu1 %v1986_v16  ;;  %s2077_s15 = smov 40   ;;  %s2078_s17 = smov [#allocation2]  }
   0xf   :  { %1797 = vmatprep.subr.bf16.mxu1 %v2065_v15  ;;  %s1666_s18 = sshll.u32 %s2078_s17, 4  ;;  %s1667_s18 = int_to_ptr.vmem [resolvable:$true] %s1666_s18 }
  0x10   :  { %s2041_s19 = scalar_lea.vmem %s1667_s18, 256  ;;  %p2046_p1 = scmp.lt.s32.totalorder %s1667_s18, %s1667_s18 }
  0x11   :  { %p2042_p0 = scmp.ne.s32.totalorder %s1667_s18, %s2041_s19  ;;  %p2047_p2 = scmp.lt.s32.totalorder %s2041_s19, %s2041_s19 }
  0x13   :  { %p2048_p3 = por %p2047_p2, %p2046_p1 }
  0x15   :  { %p2049_p4 = pnand %p2048_p3, %p2042_p0 }
  0x90   :  { %v46_v4 = vpop.xlane.xlu0 %45 }
  0x91   :  { %v51_v5 = vmul.f32 0.03125, %v46_v4 }
  0x93   :  { %v53_v6 = vsub.f32 %v2134_v0, %v51_v5 }
  0x94   :  { %v49_v7 = vpop.xlane.xlu0 %48 }
  0x95   :  { %v52_v8 = vmul.f32 0.03125, %v49_v7  ;;  %v55_v9 = vmul.f32 %v53_v6, %v53_v6 }
  0x97   :  { %v54_v10 = vsub.f32 %v2139_v1, %v52_v8  ;;  %v57_v11 = vsel %vm43_vm0, %v55_v9, 0.0 }
  0x98   :  { %58 = vadd.xlane.f32.xlu1 %v57_v11 }
  0x99   :  { %v56_v12 = vmul.f32 %v54_v10, %v54_v10 }
  0x9b   :  { %v60_v13 = vsel %vm43_vm0, %v56_v12, 0.0 }
  0x9c   :  { %61 = vadd.xlane.f32.xlu1 %v60_v13 }
 0x125   :  { %v59_v17 = vpop.xlane.xlu1 %58 }
 0x126   :  { %v63_v18 = vmul.f32 0.03125, %v59_v17 }
 0x128   :  { %v65_v19 = vadd.f32 1e-05, %v63_v18 }
 0x129   :  { %v62_v20 = vpop.xlane.xlu1 %61 }
 0x12a   :  { %1997 = vrsqrt.f32 %v65_v19  ;;  %v64_v21 = vmul.f32 0.03125, %v62_v20 }
 0x12c   :  { %v66_v22 = vadd.f32 1e-05, %v64_v21 }
 0x12e   :  { %1999 = vrsqrt.f32 %v66_v22 }
 0x134   :  { %v1998_v23 = vpop.eup %1997 }
 0x135   :  { %v69_v24 = vmul.f32 %v1998_v23, %v53_v6  ;;  %v1687_v23 = vld [vmem:[%s2500_s5 + $0x4] sm:$0xf] }
 0x137   :  { %v75_v28 = vmul.f32 %v1677_v25, %v69_v24  ;;  %v2224_v24 = vsel %vm221_vm3, %v1687_v23, 0 }
 0x138   :  { %v2000_v26 = vpop.eup %1999 }
 0x139   :  { %v70_v27 = vmul.f32 %v2000_v26, %v54_v10  ;;  %v81_v31 = vadd.f32 %v1678_v29, %v75_v28 }
 0x13b   :  { %v76_v30 = vmul.f32 %v1677_v25, %v70_v27  ;;  %v266_v27 = vld [vmem:[%s2500_s5] sm:$0xf] }
 0x13d   :  { %v82_v32 = vadd.f32 %v1678_v29, %v76_v30  ;;  %v2232_v30 = vsel %vm221_vm3, %v266_v27, 0 }
 0x13f   :  { %v83_v33 = vpack.c.bf16 %v82_v32, %v81_v31 }
 0x141   :  { %1794 = vmatmul.mubr.msk.bf16.vlgmr.msra.gmra.mrb[0].mxu1 %vm43_vm0, %v83_v33 }
 0x142   :  { %1799 = vmatprep.mubr.msk.bf16.mxu1 %vm2066_vm1, %v2065_v15 }
 0x214   :  { %v144_v35 = vpop.f32.mrb[0].mxu1 }
 0x215   :  { %v1795_v36 = vpop.f32.mrb[1].mxu1  ;;  %v145_v38 = vadd.f32 %v1679_v34, %v144_v35 }
 0x216   :  { %v147_v37 = vpop.f32.mrb[2].mxu1 }
 0x217   :  { %v148_v39 = vadd.f32 %v1679_v34, %v147_v37  ;;  %v1796_v40 = vpop.f32.mrb[3].mxu1 }
 0x219   :  { %v2175_v41 = vpack.c.bf16 %v148_v39, %v145_v38 }
 0x21b   :  { %153 = vrot.lane.b32.xlu0 %v2175_v41, %s2067_s21 }
 0x21f   :  { %269 = vrot.lane.b32.xlu0 %v2175_v41, %s2068_s22 }
 0x28d   :  { %v154_v42 = vpop.permute.xlu0 %153 }
 0x28e   :  { %v160_v43 = vsel %vm155_vm2, %v154_v42, 0 }
 0x28f   :  { %1798 = vmatpush3.bf16.xpose.msra.mxu1 %v160_v43 }
 0x290   :  { %1803 = vmatprep.subr.bf16.mxu1 %v2065_v15 }
 0x291   :  { %v270_v62 = vpop.permute.xlu0 %269 }
 0x292   :  { %v275_v2 = vsel %vm155_vm2, %v270_v62, 0 }
 0x296   :  { %1800 = vmatmul.mubr.msk.bf16.vlgmr.msra.gmra.mrb[4].mxu1 %vm155_vm2, %v2175_v41 }
 0x297   :  { %1805 = vmatprep.mubr.msk.bf16.mxu1 %vm2066_vm1, %v2065_v15 }
 0x369   :  { %v196_v44 = vpop.f32.mrb[4].mxu1 }
 0x36a   :  { %v202_v46 = vmul.f32 0.35355338, %v196_v44  ;;  %v1801_v47 = vpop.f32.mrb[5].mxu1 }
 0x36b   :  { %v199_v48 = vpop.f32.mrb[6].mxu1 }
 0x36c   :  { %v1802_v49 = vpop.f32.mrb[7].mxu1  ;;  %v203_v50 = vadd.f32 %v202_v46, %v2190_v45 }
 0x36e   :  { %v204_v51 = vsel %vm155_vm2, %v203_v50, -inf }
 0x36f   :  { %205 = vmax.xlane.f32.xlu1 %v204_v51 }
 0x3fc   :  { %v206_v52 = vpop.xlane.xlu1 %205 }
 0x3fd   :  { %v207_v53 = vsub.f32 %v203_v50, %v206_v52 }
 0x3ff   :  { %v208_v54 = vmul.f32 1.442695, %v207_v53 }
 0x401   :  { %2001 = vpow2.f32 %v208_v54 }
 0x40b   :  { %v2002_v55 = vpop.eup %2001 }
 0x40c   :  { %v210_v56 = vsel %vm155_vm2, %v2002_v55, 0.0 }
 0x40d   :  { %211 = vadd.xlane.f32.xlu1 %v210_v56 }
 0x41e   :  { %216 = vrot.lane.b32.xlu1 %v2175_v41, %s2069_s24 }
 0x422   :  { %267 = vrot.lane.b32.xlu1 %v2175_v41, %s2070_s1 }
 0x49a   :  { %v212_v57 = vpop.xlane.xlu1 %211 }
 0x49b   :  { %2003 = vrcp.f32 %v212_v57 }
 0x49e   :  { %v217_v58 = vpop.permute.xlu1 %216 }
 0x49f   :  { %v223_v59 = vsel %vm221_vm3, %v217_v58, 0 }
 0x4a0   :  { %1804 = vmatpush3.bf16.msra.mxu1 %v223_v59 }
 0x4a1   :  { %1809 = vmatprep.subr.bf16.mxu1 %v2065_v15 }
 0x4a2   :  { %v268_v3 = vpop.permute.xlu1 %267 }
 0x4a5   :  { %v2004_v60 = vpop.eup %2003 }
 0x4a6   :  { %v214_v61 = vmul.f32 %v2004_v60, %v2002_v55 }
 0x4a8   :  { %v215_v63 = vpack.c.bf16 %v214_v61, %v214_v61 }
 0x4aa   :  { %1806 = vmatmul.mubr.msk.bf16.vlgmr.msra.gmra.mrb[8].mxu1 %vm155_vm2, %v215_v63 }
 0x4ab   :  { %1810 = vmatpush3.bf16.xpose.msra.mxu1 %v275_v2  ;;  %1811 = vmatprep.mubr.msk.bf16.mxu1 %vm2066_vm1, %v2065_v15 }
 0x4ac   :  { %1821 = vmatprep.subr.bf16.mxu1 %v2065_v15 }
 0x4b2   :  { %1812 = vmatmul.mubr.msk.bf16.vlgmr.msra.gmra.mrb[12].mxu1 %vm155_vm2, %v268_v3 }
 0x4b3   :  { %1823 = vmatprep.mubr.msk.bf16.mxu1 %vm2066_vm1, %v2065_v15  ;;  %1822 = vmatpush3.bf16.msra.mxu1 %v2224_v24 }
 0x4b4   :  { %1833 = vmatprep.subr.bf16.mxu1 %v2065_v15 }
 0x57d   :  { %v259_v4 = vpop.f32.mrb[8].mxu1 }
 0x57e   :  { %v1807_v5 = vpop.f32.mrb[9].mxu1  ;;  %v265_v31 = vpack.c.bf16 %v259_v4, %v259_v4 }
 0x57f   :  { %v262_v6 = vpop.f32.mrb[10].mxu1 }
 0x580   :  { %v1808_v7 = vpop.f32.mrb[11].mxu1 }
 0x585   :  { %v311_v8 = vpop.f32.mrb[12].mxu1 }
 0x586   :  { %v317_v9 = vmul.f32 0.35355338, %v311_v8  ;;  %v1813_v10 = vpop.f32.mrb[13].mxu1 }
 0x587   :  { %v314_v11 = vpop.f32.mrb[14].mxu1  ;;  %v1692_v10 = vld [vmem:[%s2500_s5 + $0x8] sm:$0xf] }
 0x588   :  { %v1814_v12 = vpop.f32.mrb[15].mxu1  ;;  %v318_v13 = vadd.f32 %v317_v9, %v2190_v45  ;;  %v2275_v11 = vsel %vm221_vm3, %v1692_v10, 0 }
 0x58a   :  { %v319_v14 = vsel %vm155_vm2, %v318_v13, -inf }
 0x58b   :  { %320 = vmax.xlane.f32.xlu0 %v319_v14 }
 0x5a1   :  { %331 = vrot.lane.b32.xlu0 %v2175_v41, %s2071_s25 }
 0x5a5   :  { %474 = vrot.lane.b32.xlu0 %v2175_v41, %s2072_s26 }
 0x618   :  { %v321_v16 = vpop.xlane.xlu0 %320 }
 0x619   :  { %v322_v17 = vsub.f32 %v318_v13, %v321_v16 }
 0x61b   :  { %v323_v18 = vmul.f32 1.442695, %v322_v17 }
 0x61c   :  { %v332_v19 = vpop.permute.xlu0 %331 }
 0x61d   :  { %2005 = vpow2.f32 %v323_v18  ;;  %v337_v20 = vsel %vm221_vm3, %v332_v19, 0 }
 0x61e   :  { %1816 = vmatpush3.bf16.msra.mxu0 %v337_v20 }
 0x61f   :  { %1827 = vmatprep.subr.bf16.mxu0 %v2065_v15 }
 0x620   :  { %v475_v42 = vpop.permute.xlu0 %474 }
 0x627   :  { %v2006_v21 = vpop.eup %2005 }
 0x628   :  { %v325_v22 = vsel %vm155_vm2, %v2006_v21, 0.0 }
 0x629   :  { %326 = vadd.xlane.f32.xlu1 %v325_v22 }
 0x63a   :  { %476 = vrot.lane.b32.xlu1 %v2175_v41, %s2073_s27 }
 0x6b6   :  { %v327_v25 = vpop.xlane.xlu1 %326 }
 0x6b7   :  { %2007 = vrcp.f32 %v327_v25 }
 0x6ba   :  { %v477_v32 = vpop.permute.xlu1 %476 }
 0x6bb   :  { %v482_v37 = vsel %vm155_vm2, %v477_v32, 0 }
 0x6c1   :  { %v2008_v26 = vpop.eup %2007 }
 0x6c2   :  { %v329_v28 = vmul.f32 %v2008_v26, %v2006_v21  ;;  %v2287_v26 = vrot.slane %v2175_v41, 4 }
 0x6c4   :  { %v330_v29 = vpack.c.bf16 %v329_v28, %v329_v28 }
 0x6c6   :  { %1818 = vmatmul.mubr.msk.bf16.vlgmr.msra.gmra.mrb[0].mxu0 %vm155_vm2, %v330_v29 }
 0x6c7   :  { %1828 = vmatpush3.bf16.msra.mxu0 %v2232_v30  ;;  %1829 = vmatprep.mubr.msk.bf16.mxu0 %vm2066_vm1, %v2065_v15 }
 0x6c8   :  { %1839 = vmatprep.subr.bf16.mxu0 %v2065_v15 }
 0x6ce   :  { %1830 = vmatmul.mubr.msk.bf16.vlgmr.msra.gmra.mrb[4].mxu0 %vm155_vm2, %v265_v31 }
 0x6cf   :  { %1841 = vmatprep.mubr.msk.bf16.mxu0 %vm2066_vm1, %v2065_v15 }
 0x799   :  { %v373_v33 = vpop.f32.mrb[0].mxu0 }
 0x79a   :  { %v379_v34 = vpack.c.bf16 %v373_v33, %v373_v33  ;;  %v1819_v35 = vpop.f32.mrb[1].mxu0 }
 0x79b   :  { %v376_v36 = vpop.f32.mrb[2].mxu0 }
 0x79c   :  { %v1820_v38 = vpop.f32.mrb[3].mxu0  ;;  %1824 = vmatmul.mubr.msk.bf16.vlgmr.msra.gmra.mrb[16].mxu1 %vm155_vm2, %v379_v34 }
 0x79d   :  { %1834 = vmatpush3.bf16.xpose.msra.mxu1 %v482_v37  ;;  %1835 = vmatprep.mubr.msk.bf16.mxu1 %vm2066_vm1, %v2065_v15 }
 0x79e   :  { %1845 = vmatprep.subr.bf16.mxu1 %v2065_v15 }
 0x7a1   :  { %v468_v39 = vpop.f32.mrb[4].mxu0 }
 0x7a2   :  { %v1831_v40 = vpop.f32.mrb[5].mxu0 }
 0x7a3   :  { %v471_v43 = vpop.f32.mrb[6].mxu0 }
 0x7a4   :  { %v1832_v44 = vpop.f32.mrb[7].mxu0  ;;  %1836 = vmatmul.mubr.msk.bf16.vlgmr.msra.gmra.mrb[20].mxu1 %vm155_vm2, %v475_v42 }
 0x7a5   :  { %1847 = vmatprep.mubr.msk.bf16.mxu1 %vm2066_vm1, %v2065_v15  ;;  %1846 = vmatpush3.bf16.msra.mxu1 %v2275_v11 }
 0x7a6   :  { %1857 = vmatprep.subr.bf16.mxu1 %v2065_v15 }
 0x86f   :  { %v422_v46 = vpop.f32.mrb[16].mxu1 }
 0x870   :  { %v2250_v47 = vadd.f32 %v468_v39, %v422_v46  ;;  %v1825_v48 = vpop.f32.mrb[17].mxu1 }
 0x871   :  { %v425_v49 = vpop.f32.mrb[18].mxu1 }
 0x872   :  { %v1826_v50 = vpop.f32.mrb[19].mxu1 }
 0x873   :  { %v1696_v50 = vld [vmem:[%s2500_s5 + $0xc] sm:$0xf] }
 0x877   :  { %v518_v51 = vpop.f32.mrb[20].mxu1 }
 0x878   :  { %v524_v52 = vmul.f32 0.35355338, %v518_v51  ;;  %v1837_v53 = vpop.f32.mrb[21].mxu1  ;;  %v2321_v51 = vsel %vm221_vm3, %v1696_v50, 0 }
 0x879   :  { %v521_v54 = vpop.f32.mrb[22].mxu1 }
 0x87a   :  { %v1838_v55 = vpop.f32.mrb[23].mxu1  ;;  %v525_v56 = vadd.f32 %v524_v52, %v2190_v45 }
 0x87c   :  { %v526_v57 = vsel %vm155_vm2, %v525_v56, -inf }
 0x87d   :  { %527 = vmax.xlane.f32.xlu1 %v526_v57 }
 0x88e   :  { %638 = vrot.lane.b32.xlu1 %v2175_v41, %s2074_s11 }
 0x892   :  { %636 = vrot.lane.b32.xlu1 %v2175_v41, %s2075_s12 }
 0x90a   :  { %v528_v58 = vpop.xlane.xlu1 %527 }
 0x90b   :  { %v529_v59 = vsub.f32 %v525_v56, %v528_v58 }
 0x90d   :  { %v530_v60 = vmul.f32 1.442695, %v529_v59 }
 0x90e   :  { %v639_v6 = vpop.permute.xlu1 %638 }
 0x90f   :  { %2009 = vpow2.f32 %v530_v60  ;;  %v644_v8 = vsel %vm155_vm2, %v639_v6, 0 }
 0x912   :  { %v637_v9 = vpop.permute.xlu1 %636 }
 0x919   :  { %v2010_v61 = vpop.eup %2009 }
 0x91a   :  { %v532_v62 = vsel %vm155_vm2, %v2010_v61, 0.0 }
 0x91b   :  { %533 = vadd.xlane.f32.xlu0 %v532_v62 }
 0x931   :  { %538 = vrot.lane.b32.xlu0 %v2175_v41, %s2076_s0 }
 0x9a8   :  { %v534_v63 = vpop.xlane.xlu0 %533 }
 0x9a9   :  { %2011 = vrcp.f32 %v534_v63 }
 0x9ac   :  { %v539_v2 = vpop.permute.xlu0 %538 }
 0x9ad   :  { %v544_v3 = vsel %vm221_vm3, %v539_v2, 0 }
 0x9ae   :  { %1840 = vmatpush3.bf16.msra.mxu0 %v544_v3 }
 0x9af   :  { %1851 = vmatprep.subr.bf16.mxu0 %v2065_v15 }
 0x9b3   :  { %v2012_v4 = vpop.eup %2011 }
 0x9b4   :  { %v536_v5 = vmul.f32 %v2012_v4, %v2010_v61 }
 0x9b6   :  { %v537_v7 = vpack.c.bf16 %v536_v5, %v536_v5 }
 0x9b8   :  { %1842 = vmatmul.mubr.msk.bf16.vlgmr.msra.gmra.mrb[8].mxu0 %vm155_vm2, %v537_v7 }
 0x9b9   :  { %1852 = vmatpush3.bf16.xpose.msra.mxu0 %v644_v8  ;;  %1853 = vmatprep.mubr.msk.bf16.mxu0 %vm2066_vm1, %v2065_v15 }
 0x9ba   :  { %1863 = vmatprep.subr.bf16.mxu0 %v2065_v15 }
 0x9c0   :  { %1854 = vmatmul.mubr.msk.bf16.vlgmr.msra.gmra.mrb[12].mxu0 %vm155_vm2, %v637_v9 }
 0x9c1   :  { %1865 = vmatprep.mubr.msk.bf16.mxu0 %vm2066_vm1, %v2065_v15  ;;  %1864 = vmatpush3.bf16.msra.mxu0 %v2321_v51 }
 0x9c2   :  { %1875 = vmatprep.subr.bf16.mxu0 %v2065_v15 }
 0xa8b   :  { %v580_v12 = vpop.f32.mrb[8].mxu0 }
 0xa8c   :  { %v586_v13 = vpack.c.bf16 %v580_v12, %v580_v12  ;;  %v1843_v14 = vpop.f32.mrb[9].mxu0 }
 0xa8d   :  { %v583_v16 = vpop.f32.mrb[10].mxu0 }
 0xa8e   :  { %v1844_v17 = vpop.f32.mrb[11].mxu0  ;;  %1848 = vmatmul.mubr.msk.bf16.vlgmr.msra.gmra.mrb[24].mxu1 %vm155_vm2, %v586_v13 }
 0xa8f   :  { %1859 = vmatprep.mubr.msk.bf16.mxu1 %vm2066_vm1, %v2065_v15 }
 0xa93   :  { %v680_v18 = vpop.f32.mrb[12].mxu0 }
 0xa94   :  { %v686_v19 = vmul.f32 0.35355338, %v680_v18  ;;  %v1855_v20 = vpop.f32.mrb[13].mxu0 }
 0xa95   :  { %v683_v21 = vpop.f32.mrb[14].mxu0 }
 0xa96   :  { %v1856_v22 = vpop.f32.mrb[15].mxu0  ;;  %v687_v23 = vadd.f32 %v686_v19, %v2190_v45 }
 0xa98   :  { %v688_v25 = vsel %vm155_vm2, %v687_v23, -inf }
 0xa99   :  { %689 = vmax.xlane.f32.xlu0 %v688_v25 }
 0xaaf   :  { %700 = vrot.lane.b32.xlu0 %v2175_v41, %s2077_s15 }
 0xab3   :  { %912 = vrot.lane.b32.xlu0 %v2287_v26, %s2068_s22 }
 0xb26   :  { %v690_v27 = vpop.xlane.xlu0 %689 }
 0xb27   :  { %v691_v28 = vsub.f32 %v687_v23, %v690_v27 }
 0xb29   :  { %v692_v29 = vmul.f32 1.442695, %v691_v28 }
 0xb2a   :  { %v701_v31 = vpop.permute.xlu0 %700 }
 0xb2b   :  { %2013 = vpow2.f32 %v692_v29  ;;  %v706_v32 = vsel %vm221_vm3, %v701_v31, 0 }
 0xb2c   :  { %1858 = vmatpush3.bf16.msra.mxu1 %v706_v32 }
 0xb2d   :  { %1869 = vmatprep.subr.bf16.mxu1 %v2065_v15 }
 0xb35   :  { %v2014_v33 = vpop.eup %2013 }
 0xb36   :  { %v694_v34 = vsel %vm155_vm2, %v2014_v33, 0.0 }
 0xb37   :  { %695 = vadd.xlane.f32.xlu1 %v694_v34 }
 0xb48   :  { %799 = vrot.lane.b32.xlu1 %v2287_v26, %s2067_s21 }
 0xb4c   :  { %910 = vrot.lane.b32.xlu1 %v2287_v26, %s2070_s1 }
 0xb61   :  { %v629_v41 = vpop.f32.mrb[24].mxu1 }
 0xb62   :  { %v2299_v35 = vadd.f32 %v629_v41, %v2250_v47  ;;  %v1849_v36 = vpop.f32.mrb[25].mxu1  ;;  %v913_v47 = vpop.permute.xlu0 %912 }
 0xb63   :  { %v632_v37 = vpop.f32.mrb[26].mxu1  ;;  %v918_v48 = vsel %vm155_vm2, %v913_v47, 0 }
 0xb64   :  { %v1850_v38 = vpop.f32.mrb[27].mxu1 }
 0xbc4   :  { %v696_v39 = vpop.xlane.xlu1 %695 }
 0xbc5   :  { %2015 = vrcp.f32 %v696_v39 }
 0xbc8   :  { %v800_v43 = vpop.permute.xlu1 %799 }
 0xbc9   :  { %v805_v46 = vsel %vm155_vm2, %v800_v43, 0 }
 0xbcc   :  { %v911_v49 = vpop.permute.xlu1 %910 }
 0xbcf   :  { %v2016_v40 = vpop.eup %2015 }
 0xbd0   :  { %v698_v42 = vmul.f32 %v2016_v40, %v2014_v33 }
 0xbd2   :  { %v699_v44 = vpack.c.bf16 %v698_v42, %v698_v42 }
 0xbd4   :  { %1860 = vmatmul.mubr.msk.bf16.vlgmr.msra.gmra.mrb[28].mxu1 %vm155_vm2, %v699_v44 }
 0xbd5   :  { %1870 = vmatpush3.bf16.xpose.msra.mxu1 %v805_v46  ;;  %1871 = vmatprep.mubr.msk.bf16.mxu1 %vm2066_vm1, %v2065_v15 }
 0xbd6   :  { %1881 = vmatprep.subr.bf16.mxu1 %v2065_v15 }
 0xbdc   :  { %1872 = vmatmul.mubr.msk.bf16.vlgmr.msra.gmra.mrb[32].mxu1 %vm155_vm2, %v2287_v26 }
 0xbdd   :  { %1882 = vmatpush3.bf16.xpose.msra.mxu1 %v918_v48  ;;  %1883 = vmatprep.mubr.msk.bf16.mxu1 %vm2066_vm1, %v2065_v15 }
 0xbde   :  { %1893 = vmatprep.subr.bf16.mxu1 %v2065_v15 }
 0xbe4   :  { %1884 = vmatmul.mubr.msk.bf16.vlgmr.msra.gmra.mrb[36].mxu1 %vm155_vm2, %v911_v49 }
 0xbe5   :  { %1894 = vmatpush3.bf16.msra.mxu1 %v2224_v24  ;;  %1895 = vmatprep.mubr.msk.bf16.mxu1 %vm2066_vm1, %v2065_v15 }
 0xbe6   :  { %1905 = vmatprep.subr.bf16.mxu1 %v2065_v15 }
 0xca7   :  { %v742_v52 = vpop.f32.mrb[28].mxu1 }
 0xca8   :  { %v748_v53 = vpack.c.bf16 %v742_v52, %v742_v52  ;;  %v1861_v54 = vpop.f32.mrb[29].mxu1 }
 0xca9   :  { %v745_v24 = vpop.f32.mrb[30].mxu1 }
 0xcaa   :  { %v1862_v55 = vpop.f32.mrb[31].mxu1  ;;  %1866 = vmatmul.mubr.msk.bf16.vlgmr.msra.gmra.mrb[16].mxu0 %vm155_vm2, %v748_v53 }
 0xcab   :  { %1877 = vmatprep.mubr.msk.bf16.mxu0 %vm2066_vm1, %v2065_v15 }
 0xcaf   :  { %v841_v56 = vpop.f32.mrb[32].mxu1 }
 0xcb0   :  { %v847_v57 = vmul.f32 0.35355338, %v841_v56  ;;  %v1873_v58 = vpop.f32.mrb[33].mxu1 }
 0xcb1   :  { %v844_v59 = vpop.f32.mrb[34].mxu1 }
 0xcb2   :  { %v1874_v60 = vpop.f32.mrb[35].mxu1  ;;  %v848_v61 = vadd.f32 %v847_v57, %v2190_v45 }
 0xcb4   :  { %v849_v62 = vsel %vm155_vm2, %v848_v61, -inf }
 0xcb5   :  { %850 = vmax.xlane.f32.xlu0 %v849_v62 }
 0xcb7   :  { %v954_v63 = vpop.f32.mrb[36].mxu1 }
 0xcb8   :  { %v960_v2 = vmul.f32 0.35355338, %v954_v63  ;;  %v1885_v3 = vpop.f32.mrb[37].mxu1 }
 0xcb9   :  { %v957_v4 = vpop.f32.mrb[38].mxu1 }
 0xcba   :  { %v1886_v5 = vpop.f32.mrb[39].mxu1  ;;  %v961_v6 = vadd.f32 %v960_v2, %v2190_v45 }
 0xcbc   :  { %v962_v7 = vsel %vm155_vm2, %v961_v6, -inf }
 0xcbd   :  { %963 = vmax.xlane.f32.xlu1 %v962_v7 }
 0xcce   :  { %974 = vrot.lane.b32.xlu1 %v2287_v26, %s2071_s25 }
 0xcd2   :  { %1111 = vrot.lane.b32.xlu1 %v2287_v26, %s2073_s27 }
 0xcd6   :  { %1109 = vrot.lane.b32.xlu1 %v2287_v26, %s2072_s26 }
 0xd42   :  { %v851_v8 = vpop.xlane.xlu0 %850 }
 0xd43   :  { %v852_v9 = vsub.f32 %v848_v61, %v851_v8 }
 0xd45   :  { %v853_v10 = vmul.f32 1.442695, %v852_v9 }
 0xd47   :  { %2017 = vpow2.f32 %v853_v10 }
 0xd4a   :  { %v964_v12 = vpop.xlane.xlu1 %963 }
 0xd4b   :  { %v965_v13 = vsub.f32 %v961_v6, %v964_v12 }
 0xd4d   :  { %v966_v14 = vmul.f32 1.442695, %v965_v13 }
 0xd4e   :  { %v975_v34 = vpop.permute.xlu1 %974 }
 0xd4f   :  { %2019 = vpow2.f32 %v966_v14 }
 0xd51   :  { %v2018_v16 = vpop.eup %2017 }
 0xd52   :  { %v855_v17 = vsel %vm155_vm2, %v2018_v16, 0.0  ;;  %v1112_v46 = vpop.permute.xlu1 %1111 }
 0xd53   :  { %856 = vadd.xlane.f32.xlu0 %v855_v17  ;;  %v1117_v50 = vsel %vm155_vm2, %v1112_v46, 0 }
 0xd56   :  { %v1110_v53 = vpop.permute.xlu1 %1109 }
 0xd59   :  { %v2020_v18 = vpop.eup %2019 }
 0xd5a   :  { %v968_v19 = vsel %vm155_vm2, %v2020_v18, 0.0 }
 0xd5b   :  { %969 = vadd.xlane.f32.xlu0 %v968_v19 }
 0xd71   :  { %861 = vrot.lane.b32.xlu0 %v2287_v26, %s2069_s24 }
 0xd7d   :  { %v791_v20 = vpop.f32.mrb[16].mxu0 }
 0xd7e   :  { %v2343_v21 = vadd.f32 %v791_v20, %v2299_v35  ;;  %v1867_v22 = vpop.f32.mrb[17].mxu0  ;;  %v980_v35 = vsel %vm221_vm3, %v975_v34, 0  ;;  %v1710_v34 = vld [vmem:[%s2497_s2 + $0x4] ss:$0 sm:$0xff] }
 0xd7f   :  { %v794_v23 = vpop.f32.mrb[18].mxu0 }
 0xd80   :  { %v1868_v25 = vpop.f32.mrb[19].mxu0 }
 0xde0   :  { %v857_v27 = vpop.xlane.xlu0 %856 }
 0xde1   :  { %2021 = vrcp.f32 %v857_v27 }
 0xde8   :  { %v970_v28 = vpop.xlane.xlu0 %969 }
 0xde9   :  { %2023 = vrcp.f32 %v970_v28 }
 0xdeb   :  { %v2022_v29 = vpop.eup %2021 }
 0xdec   :  { %v859_v31 = vmul.f32 %v2022_v29, %v2018_v16  ;;  %v862_v32 = vpop.permute.xlu0 %861 }
 0xded   :  { %v867_v33 = vsel %vm221_vm3, %v862_v32, 0  ;;  %v1423_v32 = vadd.f32 %v2343_v21, %v2134_v0 }
 0xdee   :  { %1876 = vmatpush3.bf16.msra.mxu0 %v867_v33  ;;  %v860_v41 = vpack.c.bf16 %v859_v31, %v859_v31 }
 0xdef   :  { %1887 = vmatprep.subr.bf16.mxu0 %v2065_v15 }
 0xdf1   :  { %1878 = vmatmul.mubr.msk.bf16.vlgmr.msra.gmra.mrb[20].mxu0 %vm155_vm2, %v860_v41 }
 0xdf2   :  { %1888 = vmatpush3.bf16.msra.mxu0 %v980_v35  ;;  %1889 = vmatprep.mubr.msk.bf16.mxu0 %vm2066_vm1, %v2065_v15 }
 0xdf3   :  { %v2024_v36 = vpop.eup %2023  ;;  %1899 = vmatprep.subr.bf16.mxu0 %v2065_v15 }
 0xdf4   :  { %v972_v37 = vmul.f32 %v2024_v36, %v2020_v18 }
 0xdf6   :  { %v973_v38 = vpack.c.bf16 %v972_v37, %v972_v37  ;;  %v2402_v37 = vadd.f32 %v1710_v34, %v1423_v32 }
 0xdf9   :  { %1890 = vmatmul.mubr.msk.bf16.vlgmr.msra.gmra.mrb[24].mxu0 %vm155_vm2, %v973_v38 }
 0xdfa   :  { %1900 = vmatpush3.bf16.msra.mxu0 %v2232_v30  ;;  %1901 = vmatprep.mubr.msk.bf16.mxu0 %vm2066_vm1, %v2065_v15 }
 0xdfb   :  { %1911 = vmatprep.subr.bf16.mxu0 %v2065_v15 }
 0xec4   :  { %v903_v39 = vpop.f32.mrb[20].mxu0 }
 0xec5   :  { %v909_v40 = vpack.c.bf16 %v903_v39, %v903_v39  ;;  %v1879_v42 = vpop.f32.mrb[21].mxu0  ;;  %v1431_v39 = vsel %vm43_vm0, %v2402_v37, 0.0 }
 0xec6   :  { %v906_v43 = vpop.f32.mrb[22].mxu0 }
 0xec7   :  { %v1880_v44 = vpop.f32.mrb[23].mxu0  ;;  %1902 = vmatmul.mubr.msk.bf16.vlgmr.msra.gmra.mrb[28].mxu0 %vm155_vm2, %v909_v40 }
 0xec8   :  { %1913 = vmatprep.mubr.msk.bf16.mxu0 %vm2066_vm1, %v2065_v15 }
 0xecc   :  { %v1016_v47 = vpop.f32.mrb[24].mxu0 }
 0xecd   :  { %v1022_v48 = vpack.c.bf16 %v1016_v47, %v1016_v47  ;;  %v1891_v49 = vpop.f32.mrb[25].mxu0 }
 0xece   :  { %v1019_v30 = vpop.f32.mrb[26].mxu0 }
 0xecf   :  { %v1892_v52 = vpop.f32.mrb[27].mxu0  ;;  %1896 = vmatmul.mubr.msk.bf16.vlgmr.msra.gmra.mrb[40].mxu1 %vm155_vm2, %v1022_v48 }
 0xed0   :  { %1906 = vmatpush3.bf16.xpose.msra.mxu1 %v1117_v50  ;;  %1907 = vmatprep.mubr.msk.bf16.mxu1 %vm2066_vm1, %v2065_v15 }
 0xed1   :  { %1917 = vmatprep.subr.bf16.mxu1 %v2065_v15 }
 0xed7   :  { %1908 = vmatmul.mubr.msk.bf16.vlgmr.msra.gmra.mrb[44].mxu1 %vm155_vm2, %v1110_v53 }
 0xed8   :  { %1918 = vmatpush3.bf16.msra.mxu1 %v2275_v11  ;;  %1919 = vmatprep.mubr.msk.bf16.mxu1 %vm2066_vm1, %v2065_v15 }
 0xed9   :  { %1929 = vmatprep.subr.bf16.mxu1 %v2065_v15 }
 0xf9a   :  { %v1103_v54 = vpop.f32.mrb[28].mxu0 }
 0xf9b   :  { %v1903_v24 = vpop.f32.mrb[29].mxu0 }
 0xf9c   :  { %v1106_v55 = vpop.f32.mrb[30].mxu0 }
 0xf9d   :  { %v1904_v56 = vpop.f32.mrb[31].mxu0 }
 0xfa2   :  { %v1060_v57 = vpop.f32.mrb[40].mxu1 }
 0xfa3   :  { %v2370_v58 = vadd.f32 %v1103_v54, %v1060_v57  ;;  %v1897_v59 = vpop.f32.mrb[41].mxu1 }
 0xfa4   :  { %v1063_v60 = vpop.f32.mrb[42].mxu1 }
 0xfa5   :  { %v1898_v61 = vpop.f32.mrb[43].mxu1 }
 0xfaa   :  { %v1153_v62 = vpop.f32.mrb[44].mxu1 }
 0xfab   :  { %v1159_v63 = vmul.f32 0.35355338, %v1153_v62  ;;  %v1909_v2 = vpop.f32.mrb[45].mxu1 }
 0xfac   :  { %v1156_v3 = vpop.f32.mrb[46].mxu1 }
 0xfad   :  { %v1910_v11 = vpop.f32.mrb[47].mxu1  ;;  %v1160_v4 = vadd.f32 %v1159_v63, %v2190_v45 }
 0xfaf   :  { %v1161_v5 = vsel %vm155_vm2, %v1160_v4, -inf }
 0xfb0   :  { %1162 = vmax.xlane.f32.xlu0 %v1161_v5 }
 0xfc6   :  { %1173 = vrot.lane.b32.xlu0 %v2287_v26, %s2076_s0 }
 0xfca   :  { %1266 = vrot.lane.b32.xlu0 %v2287_v26, %s2075_s12 }
0x103d   :  { %v1163_v6 = vpop.xlane.xlu0 %1162 }
0x103e   :  { %v1164_v7 = vsub.f32 %v1160_v4, %v1163_v6 }
0x1040   :  { %v1165_v8 = vmul.f32 1.442695, %v1164_v7 }
0x1041   :  { %v1174_v9 = vpop.permute.xlu0 %1173 }
0x1042   :  { %2025 = vpow2.f32 %v1165_v8  ;;  %v1179_v10 = vsel %vm221_vm3, %v1174_v9, 0 }
0x1043   :  { %1912 = vmatpush3.bf16.msra.mxu0 %v1179_v10 }
0x1044   :  { %1923 = vmatprep.subr.bf16.mxu0 %v2065_v15 }
0x1045   :  { %v1267_v22 = vpop.permute.xlu0 %1266 }
0x104c   :  { %v2026_v12 = vpop.eup %2025 }
0x104d   :  { %v1167_v13 = vsel %vm155_vm2, %v2026_v12, 0.0 }
0x104e   :  { %1168 = vadd.xlane.f32.xlu1 %v1167_v13 }
0x105f   :  { %1268 = vrot.lane.b32.xlu1 %v2287_v26, %s2074_s11 }
0x10db   :  { %v1169_v14 = vpop.xlane.xlu1 %1168 }
0x10dc   :  { %2027 = vrcp.f32 %v1169_v14  ;;  %v1988_v14 = vld [vmem:[%s2501_s6 + $0x8] sm:$0xff]  }
0x10df   :  { %v1269_v18 = vpop.permute.xlu1 %1268 }
0x10e0   :  { %v1274_v20 = vsel %vm155_vm2, %v1269_v18, 0 }
0x10e6   :  { %v2028_v16 = vpop.eup %2027 }
0x10e7   :  { %v1171_v17 = vmul.f32 %v2028_v16, %v2026_v12  ;;  %v1989_v16 = vld [vmem:[%s2503_s8] sm:$0xff]  }
0x10e9   :  { %v1172_v19 = vpack.c.bf16 %v1171_v17, %v1171_v17  ;;  %v1990_v17 = vld [vmem:[%s2503_s8 + $0x8] sm:$0xff]  }
0x10eb   :  { %1914 = vmatmul.mubr.msk.bf16.vlgmr.msra.gmra.mrb[32].mxu0 %vm155_vm2, %v1172_v19 }
0x10ec   :  { %1924 = vmatpush3.bf16.xpose.msra.mxu0 %v1274_v20  ;;  %1925 = vmatprep.mubr.msk.bf16.mxu0 %vm2066_vm1, %v2065_v15 }
0x10ed   :  { %1935 = vmatprep.subr.bf16.mxu0 %v2065_v15 }
0x10f3   :  { %1926 = vmatmul.mubr.msk.bf16.vlgmr.msra.gmra.mrb[36].mxu0 %vm155_vm2, %v1267_v22 }
0x10f4   :  { %1936 = vmatpush3.bf16.msra.mxu0 %v2321_v51  ;;  %1937 = vmatprep.mubr.msk.bf16.mxu0 %vm2066_vm1, %v2065_v15 }
0x10f5   :  { %1949 = vmatprep.subr.bf16.mxu0 %v2065_v15 }
0x11be   :  { %v1215_v23 = vpop.f32.mrb[32].mxu0 }
0x11bf   :  { %v1221_v25 = vpack.c.bf16 %v1215_v23, %v1215_v23  ;;  %v1915_v27 = vpop.f32.mrb[33].mxu0 }
0x11c0   :  { %v1218_v28 = vpop.f32.mrb[34].mxu0 }
0x11c1   :  { %v1916_v29 = vpop.f32.mrb[35].mxu0  ;;  %1920 = vmatmul.mubr.msk.bf16.vlgmr.msra.gmra.mrb[48].mxu1 %vm155_vm2, %v1221_v25 }
0x11c2   :  { %1931 = vmatprep.mubr.msk.bf16.mxu1 %vm2066_vm1, %v2065_v15  ;;  %v1711_v29 = vld [vmem:[%s2497_s2 + $0x2] ss:$0 sm:$0xff] }
0x11c6   :  { %v1310_v31 = vpop.f32.mrb[36].mxu0 }
0x11c7   :  { %v1316_v51 = vmul.f32 0.35355338, %v1310_v31  ;;  %v1927_v33 = vpop.f32.mrb[37].mxu0 }
0x11c8   :  { %v1313_v41 = vpop.f32.mrb[38].mxu0  ;;  %v1712_v33 = vld [vmem:[%s2497_s2 + $0x3] ss:$0 sm:$0xff] }
0x11c9   :  { %v1928_v35 = vpop.f32.mrb[39].mxu0  ;;  %v1317_v36 = vadd.f32 %v1316_v51, %v2190_v45 }
0x11cb   :  { %v1318_v38 = vsel %vm155_vm2, %v1317_v36, -inf }
0x11cc   :  { %1319 = vmax.xlane.f32.xlu1 %v1318_v38  ;;  %v1991_v38 = vld [vmem:[%s2503_s8 + $0x10] sm:$0xff]  }
0x11d0   :  { %1432 = vadd.xlane.f32.xlu1 %v1431_v39  ;;  %v1992_v39 = vld [vmem:[%s2503_s8 + $0x18] sm:$0xff]  }
0x1259   :  { %v1320_v0 = vpop.xlane.xlu1 %1319 }
0x125a   :  { %v1321_v21 = vsub.f32 %v1317_v36, %v1320_v0  ;;  %v1993_v0 = vld [vmem:[%s2503_s8 + $0x20] sm:$0xff]  }
0x125c   :  { %v1322_v40 = vmul.f32 1.442695, %v1321_v21  ;;  %v1994_v21 = vld [vmem:[%s2503_s8 + $0x28] sm:$0xff]  }
0x125e   :  { %2029 = vpow2.f32 %v1322_v40  ;;  %v1995_v40 = vld [vmem:[%s2503_s8 + $0x30] sm:$0xff]  }
0x1268   :  { %v2030_v42 = vpop.eup %2029 }
0x1269   :  { %v1324_v43 = vsel %vm155_vm2, %v2030_v42, 0.0 }
0x126a   :  { %1325 = vadd.xlane.f32.xlu0 %v1324_v43  ;;  %v1713_v43 = vld [vmem:[%s2502_s7] ss:$0 sm:$0xff] }
0x1280   :  { %1330 = vrot.lane.b32.xlu0 %v2287_v26, %s2077_s15 }
0x1294   :  { %v1259_v45 = vpop.f32.mrb[48].mxu1 }
0x1295   :  { %v1265_v44 = vadd.f32 %v1259_v45, %v2370_v58  ;;  %v1921_v46 = vpop.f32.mrb[49].mxu1  ;;  %v1433_v58 = vpop.xlane.xlu1 %1432 }
0x1296   :  { %v1262_v47 = vpop.f32.mrb[50].mxu1  ;;  %v1437_v59 = vmul.f32 0.03125, %v1433_v58  ;;  %v1717_v58 = vld [vmem:[%s2497_s2 + $0x5] ss:$0 sm:$0xff] }
0x1297   :  { %v1922_v48 = vpop.f32.mrb[51].mxu1 }
0x1298   :  { %v1439_v2 = vsub.f32 %v2402_v37, %v1437_v59 }
0x129a   :  { %v1441_v6 = vmul.f32 %v1439_v2, %v1439_v2 }
0x129c   :  { %v1443_v7 = vsel %vm43_vm0, %v1441_v6, 0.0 }
0x12f7   :  { %v1326_v49 = vpop.xlane.xlu0 %1325 }
0x12f8   :  { %2031 = vrcp.f32 %v1326_v49 }
0x12fb   :  { %v1331_v30 = vpop.permute.xlu0 %1330 }
0x12fc   :  { %v1336_v50 = vsel %vm221_vm3, %v1331_v30, 0 }
0x12fd   :  { %1930 = vmatpush3.bf16.msra.mxu1 %v1336_v50 }
0x12fe   :  { %1941 = vmatprep.subr.bf16.mxu1 %v2065_v15 }
0x1302   :  { %v2032_v52 = vpop.eup %2031 }
0x1303   :  { %v1328_v53 = vmul.f32 %v2032_v52, %v2030_v42  ;;  %v1996_v42 = vld [vmem:[%s2503_s8 + $0x38] sm:$0xff]  }
0x1305   :  { %v1329_v54 = vpack.c.bf16 %v1328_v53, %v1328_v53 }
0x1307   :  { %1932 = vmatmul.mubr.msk.bf16.vlgmr.msra.gmra.mrb[52].mxu1 %vm155_vm2, %v1329_v54 }
0x1308   :  { %1945 = vmatprep.mubr.msk.bf16.mxu1 %vm2066_vm1, %v2065_v15 }
0x13da   :  { %v1372_v26 = vpop.f32.mrb[52].mxu1 }
0x13db   :  { %v1378_v24 = vpack.c.bf16 %v1372_v26, %v1372_v26  ;;  %v1933_v55 = vpop.f32.mrb[53].mxu1 }
0x13dc   :  { %v1375_v56 = vpop.f32.mrb[54].mxu1 }
0x13dd   :  { %v1934_v57 = vpop.f32.mrb[55].mxu1  ;;  %1938 = vmatmul.mubr.msk.bf16.vlgmr.msra.gmra.mrb[40].mxu0 %vm155_vm2, %v1378_v24 }
0x13de   :  { %1965 = vmatprep.mubr.msk.bf16.mxu0 %vm2066_vm1, %v2065_v15  ;;  %1950 = vmatpush3.bf16.msra.mxu0 %v1989_v16 }
0x13df   :  { %1951 = vmatprep.subr.bf16.mxu0 %v2065_v15 }
0x13e2   :  { %1952 = vmatpush3.bf16.msra.mxu0 %v1990_v17 }
0x13e3   :  { %1953 = vmatprep.subr.bf16.mxu0 %v2065_v15 }
0x13e6   :  { %1954 = vmatpush3.bf16.msra.mxu0 %v1991_v38 }
0x13e7   :  { %1955 = vmatprep.subr.bf16.mxu0 %v2065_v15 }
0x13ea   :  { %1956 = vmatpush3.bf16.msra.mxu0 %v1992_v39 }
0x13eb   :  { %1957 = vmatprep.subr.bf16.mxu0 %v2065_v15 }
0x13ee   :  { %1958 = vmatpush3.bf16.msra.mxu0 %v1993_v0 }
0x13ef   :  { %1959 = vmatprep.subr.bf16.mxu0 %v2065_v15 }
0x13f2   :  { %1960 = vmatpush3.bf16.msra.mxu0 %v1994_v21 }
0x13f3   :  { %1961 = vmatprep.subr.bf16.mxu0 %v2065_v15 }
0x13f6   :  { %1962 = vmatpush3.bf16.msra.mxu0 %v1995_v40 }
0x13f7   :  { %1963 = vmatprep.subr.bf16.mxu0 %v2065_v15 }
0x13fa   :  { %1964 = vmatpush3.bf16.msra.mxu0 %v1996_v42 }
0x14b0   :  { %v1416_v60 = vpop.f32.mrb[40].mxu0 }
0x14b1   :  { %v1422_v61 = vadd.f32 %v1416_v60, %v1265_v44  ;;  %v1939_v62 = vpop.f32.mrb[41].mxu0 }
0x14b2   :  { %v1419_v63 = vpop.f32.mrb[42].mxu0 }
0x14b3   :  { %v1424_v3 = vadd.f32 %v1422_v61, %v2139_v1  ;;  %v1940_v11 = vpop.f32.mrb[43].mxu0  ;;  %v1987_v1 = vld [vmem:[%s2501_s6] sm:$0xff]  }
0x14b4   :  { %1942 = vmatpush3.bf16.msra.mxu1 %v1987_v1 }
0x14b5   :  { %v2421_v4 = vadd.f32 %v1710_v34, %v1424_v3  ;;  %1943 = vmatprep.subr.bf16.mxu1 %v2065_v15 }
0x14b7   :  { %v1434_v5 = vsel %vm43_vm0, %v2421_v4, 0.0 }
0x14b8   :  { %1435 = vadd.xlane.f32.xlu1 %v1434_v5  ;;  %1944 = vmatpush3.bf16.msra.mxu1 %v1988_v14 }
0x14bc   :  { %1444 = vadd.xlane.f32.xlu1 %v1443_v7 }
0x1545   :  { %v1436_v8 = vpop.xlane.xlu1 %1435 }
0x1546   :  { %v1438_v9 = vmul.f32 0.03125, %v1436_v8 }
0x1548   :  { %v1440_v10 = vsub.f32 %v2421_v4, %v1438_v9 }
0x1549   :  { %v1445_v18 = vpop.xlane.xlu1 %1444 }
0x154a   :  { %v1442_v12 = vmul.f32 %v1440_v10, %v1440_v10  ;;  %v1449_v19 = vmul.f32 0.03125, %v1445_v18 }
0x154c   :  { %v1446_v13 = vsel %vm43_vm0, %v1442_v12, 0.0  ;;  %v1451_v20 = vadd.f32 1e-05, %v1449_v19 }
0x154d   :  { %1447 = vadd.xlane.f32.xlu1 %v1446_v13 }
0x154e   :  { %2033 = vrsqrt.f32 %v1451_v20 }
0x1558   :  { %v2034_v27 = vpop.eup %2033 }
0x1559   :  { %v1455_v28 = vmul.f32 %v2034_v27, %v1439_v2 }
0x155b   :  { %v1461_v32 = vmul.f32 %v1711_v29, %v1455_v28 }
0x155d   :  { %v1467_v41 = vadd.f32 %v1712_v33, %v1461_v32 }
0x15da   :  { %v1448_v22 = vpop.xlane.xlu1 %1447 }
0x15db   :  { %v1450_v23 = vmul.f32 0.03125, %v1448_v22 }
0x15dd   :  { %v1452_v25 = vadd.f32 1e-05, %v1450_v23 }
0x15df   :  { %2035 = vrsqrt.f32 %v1452_v25 }
0x15e9   :  { %v2036_v31 = vpop.eup %2035 }
0x15ea   :  { %v1456_v51 = vmul.f32 %v2036_v31, %v1440_v10 }
0x15ec   :  { %v1462_v34 = vmul.f32 %v1711_v29, %v1456_v51 }
0x15ee   :  { %v1468_v35 = vadd.f32 %v1712_v33, %v1462_v34 }
0x15f0   :  { %v1469_v36 = vpack.c.bf16 %v1468_v35, %v1467_v41 }
0x15f2   :  { %1946 = vmatmul.mubr.msk.bf16.vlgmr.msra.gmra.mrb[56].mxu1 %vm43_vm0, %v1469_v36 }
0x16c5   :  { %v1530_v45 = vpop.f32.mrb[56].mxu1 }
0x16c6   :  { %v1531_v44 = vadd.f32 %v1713_v43, %v1530_v45  ;;  %v1947_v46 = vpop.f32.mrb[57].mxu1 }
0x16c7   :  { %v1533_v47 = vpop.f32.mrb[58].mxu1 }
0x16c8   :  { %v1539_v48 = vmul.f32 0.70710677, %v1531_v44  ;;  %v1534_v49 = vadd.f32 %v1713_v43, %v1533_v47  ;;  %v1948_v30 = vpop.f32.mrb[59].mxu1  ;;  %v1537_v54 = vmul.f32 0.5, %v1531_v44 }
0x16ca   :  { %2037 = verf.f32 %v1539_v48  ;;  %v1540_v50 = vmul.f32 0.70710677, %v1534_v49  ;;  %v1538_v26 = vmul.f32 0.5, %v1534_v49 }
0x16cc   :  { %2039 = verf.f32 %v1540_v50 }
0x16d4   :  { %v2038_v15 = vpop.eup %2037 }
0x16d5   :  { %v1543_v52 = vadd.f32 1.0, %v2038_v15 }
0x16d6   :  { %v2040_v53 = vpop.eup %2039 }
0x16d7   :  { %v1544_v24 = vadd.f32 1.0, %v2040_v53  ;;  %v1545_v55 = vmul.f32 %v1543_v52, %v1537_v54 }
0x16d9   :  { %v1546_v56 = vmul.f32 %v1544_v24, %v1538_v26 }
0x16db   :  { %v1547_v57 = vpack.c.bf16 %v1546_v56, %v1545_v55 }
0x16dd   :  { %1966 = vmatmul.mubr.bf16.vlgmr.msra.gmra.mrb[44].mxu0 %v1547_v57 }
0x17b0   :  { %v1650_v59 = vpop.f32.mrb[44].mxu0 }
0x17b1   :  { %v1651_v60 = vadd.f32 %v1717_v58, %v1650_v59  ;;  %v1967_v61 = vpop.f32.mrb[45].mxu0 }
0x17b2   :  { %v1653_v62 = vpop.f32.mrb[46].mxu0 }
0x17b3   :  { %v1657_v63 = vadd.f32 %v1651_v60, %v2402_v37  ;;  %v1654_v2 = vadd.f32 %v1717_v58, %v1653_v62  ;;  %v1968_v3 = vpop.f32.mrb[47].mxu0 }
0x17b5   :  { %1659 = vst.msk [vmem:[#allocation2] sm:$0xff] %vm43_vm0, %v1657_v63  ;;  %v1658_v11 = vadd.f32 %v1654_v2, %v2421_v4 }
0x17b7   :  { %1660 = vst.msk [vmem:[#allocation2 + $0x8] sm:$0xff] %vm43_vm0, %v1658_v11 }
0x17b8   :  { %2052 = shalt.err (!%p2049_p4)
}
0x17b9   :  { %s2053_s21 = scalar_lea.hbm %s2504_s9, 256 }
0x17ba   :  { %p2054_p5 = scmp.ne.s32.totalorder %s2504_s9, %s2053_s21  ;;  %p2057_p6 = scmp.lt.u32.totalorder %s2053_s21, %s2504_s9 }
0x17bc   :  { %p2059_p7 = pnand %p2057_p6, %p2054_p5 }
0x17be   :  { %2062 = shalt.err (!%p2059_p7)
}
0x17bf   :  { %s2079_s6 = smov 128   ;;  %s2080_s1 = smov 8  }
0x17c0   :  { %1672 = dma.vmem_to_hbm [thread:$0]  %s1667_s18, 256, %s2504_s9, [#allocation3], %s2079_s6, %s2079_s6, %s2080_s1  }
0x17c1   :  { %2063 = dma.done.wait [#allocation3], 256  }
0x17c2   :  { %2064 = vsyncadd [#allocation3], 4294967040 }
0x17c3   :  { %1676 = vsyncpa [#allocation3], 1 }

</bundles_post_ra>
